<compile_context>
chip_gen: v6e
topology: v6e:2x2x1
jax: 0.10.0
libtpu: 0.0.40
codegen_flags: <defaults>
</compile_context>

<pallas_src>
from math import ceil

import numpy as np
import jax
import jax.numpy as jnp
from jax.experimental import pallas as pl
from jax.experimental.pallas import tpu as pltpu

# ------------------------- model configuration ------------------------------
B = 2
IN_CHANS = 4                 # EEG channels (the H axis)
T = 16                       # input_window_samples (the W axis)
S_GROWTH = 4
T_FILTERS = 8
DROP_PROB = 0.0              # Dropout2d is identity at inference
POOLING = 2
TEMP_LAYERS = 2
SPAT_LAYERS = 2
TEMP_SPAN = 0.25
BOTTLENECK = 2
SUMMARY = 4                  # AdaptiveAvgPool1d target
TEMP_LEN0 = ceil(TEMP_SPAN * T)            # 4
TEMP_LEN = TEMP_LEN0 + 1 - TEMP_LEN0 % 2   # forced odd -> 5
DENSE_KLEN = 5                             # (5,1) conv of _DenseFilter, pad (2,0)
NF = T_FILTERS + S_GROWTH * SPAT_LAYERS
NUM_FEATURES = NF * SUMMARY
LRELU_SLOPE = 0.01
BN_EPS = 1e-5

WP = T // POOLING            # time samples after MaxPool2d((1, POOLING))
HB = IN_CHANS * B            # flattened (eeg_chan, batch) row blocks
N1 = HB * T                  # lane width of the temporal stage   (= 128)
N2 = HB * WP                 # lane width of the spatial stage    (= 64)
N3 = B * WP                  # lane width after channel collapse  (= 16)
GROWTH_PAD = max(S_GROWTH, 8)  # pad dense growth blocks to a full sublane tile

assert T % POOLING == 0 and WP % SUMMARY == 0

# ------------------- host-built constant selection matrices -----------------

def _shift_sel(n, group, extent, offsets):
    """Banded 0/1 matrices S_o with (A @ S_o)[:, m] = A[:, m + o*group] when the
    index (m // group) % extent stays inside [0, extent) after the shift,
    else 0.  Expresses "conv tap with zero padding" as a plain MXU matmul."""
    mats = np.zeros((len(offsets), n, n), np.float32)
    for i, off in enumerate(offsets):
        for m in range(n):
            a = (m // group) % extent
            if 0 <= a + off < extent:
                mats[i, m + off * group, m] = 1.0
    return jnp.asarray(mats)


def _pool_sel(blocks, w_in, w_out, stride, phase):
    """(A @ sel)[:, blk*w_out + j] = A[:, blk*w_in + j*stride + phase]."""
    m = np.zeros((blocks * w_in, blocks * w_out), np.float32)
    for blk in range(blocks):
        for j in range(w_out):
            m[blk * w_in + j * stride + phase, blk * w_out + j] = 1.0
    return jnp.asarray(m)


def _collapse_sel():
    """Per-tap selector picking the (h == kh) slice of the (h, b, w) lane axis."""
    mats = np.zeros((IN_CHANS, N2, N3), np.float32)
    for kh in range(IN_CHANS):
        for b in range(B):
            for w in range(WP):
                mats[kh, (kh * B + b) * WP + w, b * WP + w] = 1.0
    return jnp.asarray(mats)


def _summary_sel():
    """Per-batch AdaptiveAvgPool1d(SUMMARY) as an (N3, SUMMARY) averaging matmul."""
    r = WP // SUMMARY
    mats = np.zeros((B, N3, SUMMARY), np.float32)
    for b in range(B):
        for j in range(SUMMARY):
            for t in range(r):
                mats[b, b * WP + j * r + t, j] = 1.0 / r
    return jnp.asarray(mats)


# --------------------------- host-side weight prep --------------------------

def _col(v):
    return v.reshape(-1, 1)


def _pad1(v, n, fill=0.0):
    return jnp.pad(v, (0, n - v.shape[0]), constant_values=fill)


def _pad_last(a, n):
    pad = [(0, 0)] * a.ndim
    pad[-1] = (0, n - a.shape[-1])
    return jnp.pad(a, pad)


def _pad_axis(a, axis, n):
    pad = [(0, 0)] * a.ndim
    pad[axis] = (0, n - a.shape[axis])
    return jnp.pad(a, pad)


def _bn_fold(gamma, beta, rm, rv):
    scale = gamma / jnp.sqrt(rv + BN_EPS)
    return scale, beta - rm * scale


def _shift_rows(xv, offsets):
    """Host im2col of the raw input for the first temporal conv: row k holds x
    shifted by offsets[k] along time with zero fill, flattened to the
    lane-dense (eeg_chan, batch, time) layout."""
    rows, w = xv.shape
    out = []
    for o in offsets:
        z = jnp.zeros_like(xv)
        lo, hi = max(0, -o), w - max(0, o)
        z = z.at[:, lo:hi].set(xv[:, lo + o:hi + o])
        out.append(z.reshape(1, rows * w))
    return jnp.concatenate(out, axis=0)


def _prepare_inputs(x, params):
    inputs = {}

    # ---- _TemporalFilter (the spec module) ---------------------------------
    xv = jnp.transpose(x, (1, 0, 2)).reshape(HB, T)   # rows = (eeg_chan, batch)
    dil0 = TEMP_LAYERS
    pad0 = dil0 * (TEMP_LEN - 1) // 2
    inputs["x_col"] = _shift_rows(xv, [k * dil0 - pad0 for k in range(TEMP_LEN)])
    inputs["x_res"] = xv.reshape(1, N1)

    w0, b0 = params["temporal"]["layers"][0]          # cin == 1 for layer 0
    inputs["t0_w"] = w0[:, 0, 0, :]                   # (F, K)
    inputs["t0_b"] = _col(b0)
    for i in range(1, TEMP_LAYERS):
        wi, bi = params["temporal"]["layers"][i]
        dil = TEMP_LAYERS - i
        pad = dil * (TEMP_LEN - 1) // 2
        inputs[f"t{i}_w"] = jnp.transpose(wi[:, :, 0, :], (2, 0, 1))  # (K, co, ci)
        inputs[f"t{i}_b"] = _col(bi)
        inputs[f"t{i}_s"] = _shift_sel(N1, 1, T,
                                       [k * dil - pad for k in range(TEMP_LEN)])
    rw, rb = params["temporal"]["residual"]           # Conv2d(1, F, (1,1))
    inputs["res_w"] = rw.reshape(T_FILTERS, 1)
    inputs["res_b"] = _col(rb)
    for p in range(POOLING):
        inputs[f"pool_p{p}"] = _pool_sel(HB, T, WP, POOLING, p)

    # ---- _DenseSpatialFilter ------------------------------------------------
    real_ch = [T_FILTERS]    # channel counts in torch.cat order
    pad_ch = [T_FILTERS]     # padded row counts actually carried in-kernel
    for d in range(SPAT_LAYERS):
        pd = params["spatial"]["dense"][d]
        s1, h1 = _bn_fold(*pd["bn1"])
        c1w = pd["conv1_w"][:, :, 0, 0]               # (mid, cin_real)
        off = 0
        for bi, (rc, pc) in enumerate(zip(real_ch, pad_ch)):
            inputs[f"d{d}_bn1_s{bi}"] = _col(_pad1(s1[off:off + rc], pc, 1.0))
            inputs[f"d{d}_bn1_h{bi}"] = _col(_pad1(h1[off:off + rc], pc, 0.0))
            inputs[f"d{d}_c1_w{bi}"] = _pad_last(c1w[:, off:off + rc], pc)
            off += rc
        inputs[f"d{d}_c1_b"] = _col(pd["conv1_b"])
        s2, h2 = _bn_fold(*pd["bn2"])
        inputs[f"d{d}_bn2_s"] = _col(s2)
        inputs[f"d{d}_bn2_h"] = _col(h2)
        c2w = jnp.transpose(pd["conv2_w"][:, :, :, 0], (2, 0, 1))    # (K, growth, mid)
        inputs[f"d{d}_c2_w"] = _pad_axis(c2w, 1, GROWTH_PAD)
        inputs[f"d{d}_c2_b"] = _col(_pad1(pd["conv2_b"], GROWTH_PAD, 0.0))
        real_ch.append(S_GROWTH)
        pad_ch.append(GROWTH_PAD)
    inputs["h_shift"] = _shift_sel(N2, B * WP, IN_CHANS,
                                   [k - DENSE_KLEN // 2 for k in range(DENSE_KLEN)])

    # ---- channel collapse + summary -----------------------------------------
    cc = params["spatial"]["collapse"]
    ccw = cc["conv_w"]                                # (NF, NF, IN_CHANS, 1)
    inputs["cc_sel"] = _collapse_sel()
    off = 0
    for bi, (rc, pc) in enumerate(zip(real_ch, pad_ch)):
        wblk = jnp.transpose(ccw[:, off:off + rc, :, 0], (2, 0, 1))  # (IN_CHANS, NF, rc)
        inputs[f"cc_w{bi}"] = _pad_last(wblk, pc)
        off += rc
    scc, hcc = _bn_fold(*cc["bn"])
    inputs["cc_bn_s"] = _col(scc)
    inputs["cc_bn_h"] = _col(hcc)
    inputs["summary"] = _summary_sel()
    return inputs


# ------------------------------ fused kernel --------------------------------

def _make_kernel(names):
    def kernel(*refs):
        r = dict(zip(names, refs))
        o_ref = refs[-1]

        def lrelu(v):
            return jnp.where(v >= 0, v, LRELU_SLOPE * v)

        def mm(a, b):
            return jnp.dot(a, b, preferred_element_type=jnp.float32)

        # ---- _TemporalFilter (netwise residual), fully fused ----
        # layer 0: conv over host-built im2col rows; bias + LeakyReLU epilogue.
        h = lrelu(mm(r["t0_w"][...], r["x_col"][...]) + r["t0_b"][...])
        for i in range(1, TEMP_LAYERS):
            acc = None
            for k in range(TEMP_LEN):
                term = mm(r[f"t{i}_w"][k], mm(h, r[f"t{i}_s"][k]))
                acc = term if acc is None else acc + term
            h = lrelu(acc + r[f"t{i}_b"][...])
            # TODO(synk): Dropout2d is identity here (inference mode).
        # 1x1 residual conv (cin == 1 -> broadcast multiply, no MXU round-trip).
        h = h + (r["res_w"][...] * r["x_res"][...] + r["res_b"][...])

        # ---- MaxPool2d((1, POOLING)) via phase-selection matmuls ----
        pooled = None
        for p in range(POOLING):
            cand = mm(h, r[f"pool_p{p}"][...])
            pooled = cand if pooled is None else jnp.maximum(pooled, cand)
        h = pooled                                           # (F, N2)

        # ---- _DenseSpatialFilter: channel blocks kept in registers ----
        blocks = [h]
        for d in range(SPAT_LAYERS):
            # BN1 -> LReLU -> 1x1 conv, applied per concat block and summed.
            z = None
            for bi, blk in enumerate(blocks):
                yb = lrelu(blk * r[f"d{d}_bn1_s{bi}"][...] + r[f"d{d}_bn1_h{bi}"][...])
                t = mm(r[f"d{d}_c1_w{bi}"][...], yb)
                z = t if z is None else z + t
            # bias -> BN2 -> LReLU epilogue.
            z = lrelu((z + r[f"d{d}_c1_b"][...]) * r[f"d{d}_bn2_s"][...]
                      + r[f"d{d}_bn2_h"][...])
            # (5,1) conv along the EEG-channel axis via banded selection matmuls.
            acc = None
            for k in range(DENSE_KLEN):
                term = mm(r[f"d{d}_c2_w"][k], mm(z, r["h_shift"][k]))
                acc = term if acc is None else acc + term
            blocks.append(acc + r[f"d{d}_c2_b"][...])        # dense concat (no copy)

        # ---- channel collapse conv (IN_CHANS,1), no bias -> LReLU -> BN ----
        acc = None
        for k in range(IN_CHANS):
            sel = r["cc_sel"][k]
            for bi, blk in enumerate(blocks):
                term = mm(r[f"cc_w{bi}"][k], mm(blk, sel))
                acc = term if acc is None else acc + term
        y = lrelu(acc)
        y = y * r["cc_bn_s"][...] + r["cc_bn_h"][...]        # (NF, N3)

        # ---- AdaptiveAvgPool1d(SUMMARY) + per-batch store ----
        for b in range(B):
            o_ref[b, :, :] = mm(y, r["summary"][b])          # (NF, SUMMARY)

    return kernel


@jax.jit
def tidnet_features_forward(x, params):
    inputs = _prepare_inputs(x, params)
    names = list(inputs)
    out = pl.pallas_call(
        _make_kernel(names),
        out_shape=jax.ShapeDtypeStruct((B, NF, SUMMARY), jnp.float32),
        in_specs=[pl.BlockSpec(memory_space=pltpu.MemorySpace.VMEM)] * len(names),
        out_specs=pl.BlockSpec(memory_space=pltpu.MemorySpace.VMEM),
    )(*inputs.values())
    return out.reshape(B, -1)                                # Flatten -> (B, NF*SUMMARY)


# ------------------------------- parameters ---------------------------------

def init_params(key):
    keys = iter(jax.random.split(key, 128))

    def nrm(shape, s=0.1):
        return s * jax.random.normal(next(keys), shape, dtype=jnp.float32)

    def bn(c):
        gamma = 1.0 + 0.1 * jax.random.normal(next(keys), (c,), dtype=jnp.float32)
        beta = 0.1 * jax.random.normal(next(keys), (c,), dtype=jnp.float32)
        rm = 0.1 * jax.random.normal(next(keys), (c,), dtype=jnp.float32)
        rv = 1.0 + 0.5 * jax.random.uniform(next(keys), (c,), dtype=jnp.float32)
        return (gamma, beta, rm, rv)

    params = {}
    # _TemporalFilter: depth dilated (1, TEMP_LEN) convs (weight_norm -> we
    # initialise the *effective* conv weight directly) + 1x1 residual conv.
    # TODO(synk): real checkpoints need g*v/||v|| weight_norm folding.
    tlayers = []
    for i in range(TEMP_LAYERS):
        cin = 1 if i == 0 else T_FILTERS
        tlayers.append((nrm((T_FILTERS, cin, 1, TEMP_LEN)), nrm((T_FILTERS,))))
    params["temporal"] = {
        "layers": tlayers,
        "residual": (nrm((T_FILTERS, 1, 1, 1)), nrm((T_FILTERS,))),
    }
    # _DenseSpatialFilter: SPAT_LAYERS x _DenseFilter + channel-collapse block
    dense = []
    for d in range(SPAT_LAYERS):
        cin = T_FILTERS + S_GROWTH * d
        mid = BOTTLENECK * S_GROWTH
        dense.append({
            "bn1": bn(cin),
            "conv1_w": nrm((mid, cin, 1, 1)), "conv1_b": nrm((mid,)),
            "bn2": bn(mid),
            "conv2_w": nrm((S_GROWTH, mid, DENSE_KLEN, 1)), "conv2_b": nrm((S_GROWTH,)),
        })
    params["spatial"] = {
        "dense": dense,
        "collapse": {"conv_w": nrm((NF, NF, IN_CHANS, 1)), "bn": bn(NF)},  # conv: no bias
    }
    return params


# --------------------------------- main --------------------------------------
# TODO(synk): BatchNorm / Dropout are implemented in inference (eval) mode.
if __name__ == "__main__":
    x = jax.random.normal(jax.random.PRNGKey(0), (B, IN_CHANS, T), dtype=jnp.float32)
    params = init_params(jax.random.PRNGKey(1))
    out = tidnet_features_forward(x, params)
    out = jax.block_until_ready(out)
    assert out.shape == (B, NUM_FEATURES), out.shape
    assert bool(jnp.all(jnp.isfinite(out)))
    print("KERNEL_OK")
</pallas_src>

<mosaic_0001>
module attributes {stable_mosaic.version = 11 : i64} {
  func.func @kernel(%arg0: memref<5x128xf32, #tpu.memory_space<vmem>>, %arg1: memref<1x128xf32, #tpu.memory_space<vmem>>, %arg2: memref<8x5xf32, #tpu.memory_space<vmem>>, %arg3: memref<8x1xf32, #tpu.memory_space<vmem>>, %arg4: memref<5x8x8xf32, #tpu.memory_space<vmem>>, %arg5: memref<8x1xf32, #tpu.memory_space<vmem>>, %arg6: memref<5x128x128xf32, #tpu.memory_space<vmem>>, %arg7: memref<8x1xf32, #tpu.memory_space<vmem>>, %arg8: memref<8x1xf32, #tpu.memory_space<vmem>>, %arg9: memref<128x64xf32, #tpu.memory_space<vmem>>, %arg10: memref<128x64xf32, #tpu.memory_space<vmem>>, %arg11: memref<8x1xf32, #tpu.memory_space<vmem>>, %arg12: memref<8x1xf32, #tpu.memory_space<vmem>>, %arg13: memref<8x8xf32, #tpu.memory_space<vmem>>, %arg14: memref<8x1xf32, #tpu.memory_space<vmem>>, %arg15: memref<8x1xf32, #tpu.memory_space<vmem>>, %arg16: memref<8x1xf32, #tpu.memory_space<vmem>>, %arg17: memref<5x8x8xf32, #tpu.memory_space<vmem>>, %arg18: memref<8x1xf32, #tpu.memory_space<vmem>>, %arg19: memref<8x1xf32, #tpu.memory_space<vmem>>, %arg20: memref<8x1xf32, #tpu.memory_space<vmem>>, %arg21: memref<8x8xf32, #tpu.memory_space<vmem>>, %arg22: memref<8x1xf32, #tpu.memory_space<vmem>>, %arg23: memref<8x1xf32, #tpu.memory_space<vmem>>, %arg24: memref<8x8xf32, #tpu.memory_space<vmem>>, %arg25: memref<8x1xf32, #tpu.memory_space<vmem>>, %arg26: memref<8x1xf32, #tpu.memory_space<vmem>>, %arg27: memref<8x1xf32, #tpu.memory_space<vmem>>, %arg28: memref<5x8x8xf32, #tpu.memory_space<vmem>>, %arg29: memref<8x1xf32, #tpu.memory_space<vmem>>, %arg30: memref<5x64x64xf32, #tpu.memory_space<vmem>>, %arg31: memref<4x64x16xf32, #tpu.memory_space<vmem>>, %arg32: memref<4x16x8xf32, #tpu.memory_space<vmem>>, %arg33: memref<4x16x8xf32, #tpu.memory_space<vmem>>, %arg34: memref<4x16x8xf32, #tpu.memory_space<vmem>>, %arg35: memref<16x1xf32, #tpu.memory_space<vmem>>, %arg36: memref<16x1xf32, #tpu.memory_space<vmem>>, %arg37: memref<2x16x4xf32, #tpu.memory_space<vmem>>, %arg38: memref<2x16x4xf32, #tpu.memory_space<vmem>>) attributes {dimension_semantics = [], scalar_prefetch = 0 : i64, scratch_operands = 0 : i64, tpu.core_type = #tpu.core_type<tc>} {
    %c0 = arith.constant 0 : index
    %c0_0 = arith.constant 0 : index
    %0 = vector.load %arg2[%c0, %c0_0] : memref<8x5xf32, #tpu.memory_space<vmem>>, vector<8x5xf32>
    %c0_1 = arith.constant 0 : index
    %c0_2 = arith.constant 0 : index
    %1 = vector.load %arg0[%c0_1, %c0_2] : memref<5x128xf32, #tpu.memory_space<vmem>>, vector<5x128xf32>
    %cst = arith.constant dense<0.000000e+00> : vector<8x128xf32>
    %2 = tpu.matmul %0, %1, %cst {dimension_numbers = #tpu.dot_dimension_numbers<[1], [0], [0], [1], [0, 0, 1, 1], [], []>} : vector<8x5xf32>, vector<5x128xf32>, vector<8x128xf32> -> vector<8x128xf32>
    %c0_3 = arith.constant 0 : index
    %c0_4 = arith.constant 0 : index
    %3 = vector.load %arg3[%c0_3, %c0_4] : memref<8x1xf32, #tpu.memory_space<vmem>>, vector<8x1xf32>
    %4 = vector.broadcast %3 : vector<8x1xf32> to vector<8x128xf32>
    %5 = arith.addf %2, %4 : vector<8x128xf32>
    %cst_5 = arith.constant 0.000000e+00 : f32
    %6 = vector.broadcast %cst_5 : f32 to vector<8x128xf32>
    %7 = arith.cmpf oge, %5, %6 : vector<8x128xf32>
    %cst_6 = arith.constant 0.00999999977 : f32
    %8 = vector.broadcast %cst_6 : f32 to vector<8x128xf32>
    %9 = arith.mulf %8, %5 : vector<8x128xf32>
    %10 = arith.select %7, %5, %9 : vector<8x128xi1>, vector<8x128xf32>
    %c0_7 = arith.constant 0 : index
    %c0_8 = arith.constant 0 : index
    %c0_9 = arith.constant 0 : index
    %11 = vector.load %arg4[%c0_7, %c0_8, %c0_9] : memref<5x8x8xf32, #tpu.memory_space<vmem>>, vector<1x8x8xf32>
    %12 = vector.shape_cast %11 : vector<1x8x8xf32> to vector<8x8xf32>
    %c0_10 = arith.constant 0 : index
    %c0_11 = arith.constant 0 : index
    %c0_12 = arith.constant 0 : index
    %13 = vector.load %arg6[%c0_10, %c0_11, %c0_12] : memref<5x128x128xf32, #tpu.memory_space<vmem>>, vector<1x128x128xf32>
    %14 = vector.shape_cast %13 : vector<1x128x128xf32> to vector<128x128xf32>
    %cst_13 = arith.constant dense<0.000000e+00> : vector<8x128xf32>
    %15 = tpu.matmul %10, %14, %cst_13 {dimension_numbers = #tpu.dot_dimension_numbers<[1], [0], [0], [1], [0, 0, 1, 1], [], []>} : vector<8x128xf32>, vector<128x128xf32>, vector<8x128xf32> -> vector<8x128xf32>
    %cst_14 = arith.constant dense<0.000000e+00> : vector<8x128xf32>
    %16 = tpu.matmul %12, %15, %cst_14 {dimension_numbers = #tpu.dot_dimension_numbers<[1], [0], [0], [1], [0, 0, 1, 1], [], []>} : vector<8x8xf32>, vector<8x128xf32>, vector<8x128xf32> -> vector<8x128xf32>
    %c1 = arith.constant 1 : index
    %c0_15 = arith.constant 0 : index
    %c0_16 = arith.constant 0 : index
    %17 = vector.load %arg4[%c1, %c0_15, %c0_16] : memref<5x8x8xf32, #tpu.memory_space<vmem>>, vector<1x8x8xf32>
    %18 = vector.shape_cast %17 : vector<1x8x8xf32> to vector<8x8xf32>
    %c1_17 = arith.constant 1 : index
    %c0_18 = arith.constant 0 : index
    %c0_19 = arith.constant 0 : index
    %19 = vector.load %arg6[%c1_17, %c0_18, %c0_19] : memref<5x128x128xf32, #tpu.memory_space<vmem>>, vector<1x128x128xf32>
    %20 = vector.shape_cast %19 : vector<1x128x128xf32> to vector<128x128xf32>
    %cst_20 = arith.constant dense<0.000000e+00> : vector<8x128xf32>
    %21 = tpu.matmul %10, %20, %cst_20 {dimension_numbers = #tpu.dot_dimension_numbers<[1], [0], [0], [1], [0, 0, 1, 1], [], []>} : vector<8x128xf32>, vector<128x128xf32>, vector<8x128xf32> -> vector<8x128xf32>
    %cst_21 = arith.constant dense<0.000000e+00> : vector<8x128xf32>
    %22 = tpu.matmul %18, %21, %cst_21 {dimension_numbers = #tpu.dot_dimension_numbers<[1], [0], [0], [1], [0, 0, 1, 1], [], []>} : vector<8x8xf32>, vector<8x128xf32>, vector<8x128xf32> -> vector<8x128xf32>
    %23 = arith.addf %16, %22 : vector<8x128xf32>
    %c2 = arith.constant 2 : index
    %c0_22 = arith.constant 0 : index
    %c0_23 = arith.constant 0 : index
    %24 = vector.load %arg4[%c2, %c0_22, %c0_23] : memref<5x8x8xf32, #tpu.memory_space<vmem>>, vector<1x8x8xf32>
    %25 = vector.shape_cast %24 : vector<1x8x8xf32> to vector<8x8xf32>
    %c2_24 = arith.constant 2 : index
    %c0_25 = arith.constant 0 : index
    %c0_26 = arith.constant 0 : index
    %26 = vector.load %arg6[%c2_24, %c0_25, %c0_26] : memref<5x128x128xf32, #tpu.memory_space<vmem>>, vector<1x128x128xf32>
    %27 = vector.shape_cast %26 : vector<1x128x128xf32> to vector<128x128xf32>
    %cst_27 = arith.constant dense<0.000000e+00> : vector<8x128xf32>
    %28 = tpu.matmul %10, %27, %cst_27 {dimension_numbers = #tpu.dot_dimension_numbers<[1], [0], [0], [1], [0, 0, 1, 1], [], []>} : vector<8x128xf32>, vector<128x128xf32>, vector<8x128xf32> -> vector<8x128xf32>
    %cst_28 = arith.constant dense<0.000000e+00> : vector<8x128xf32>
    %29 = tpu.matmul %25, %28, %cst_28 {dimension_numbers = #tpu.dot_dimension_numbers<[1], [0], [0], [1], [0, 0, 1, 1], [], []>} : vector<8x8xf32>, vector<8x128xf32>, vector<8x128xf32> -> vector<8x128xf32>
    %30 = arith.addf %23, %29 : vector<8x128xf32>
    %c3 = arith.constant 3 : index
    %c0_29 = arith.constant 0 : index
    %c0_30 = arith.constant 0 : index
    %31 = vector.load %arg4[%c3, %c0_29, %c0_30] : memref<5x8x8xf32, #tpu.memory_space<vmem>>, vector<1x8x8xf32>
    %32 = vector.shape_cast %31 : vector<1x8x8xf32> to vector<8x8xf32>
    %c3_31 = arith.constant 3 : index
    %c0_32 = arith.constant 0 : index
    %c0_33 = arith.constant 0 : index
    %33 = vector.load %arg6[%c3_31, %c0_32, %c0_33] : memref<5x128x128xf32, #tpu.memory_space<vmem>>, vector<1x128x128xf32>
    %34 = vector.shape_cast %33 : vector<1x128x128xf32> to vector<128x128xf32>
    %cst_34 = arith.constant dense<0.000000e+00> : vector<8x128xf32>
    %35 = tpu.matmul %10, %34, %cst_34 {dimension_numbers = #tpu.dot_dimension_numbers<[1], [0], [0], [1], [0, 0, 1, 1], [], []>} : vector<8x128xf32>, vector<128x128xf32>, vector<8x128xf32> -> vector<8x128xf32>
    %cst_35 = arith.constant dense<0.000000e+00> : vector<8x128xf32>
    %36 = tpu.matmul %32, %35, %cst_35 {dimension_numbers = #tpu.dot_dimension_numbers<[1], [0], [0], [1], [0, 0, 1, 1], [], []>} : vector<8x8xf32>, vector<8x128xf32>, vector<8x128xf32> -> vector<8x128xf32>
    %37 = arith.addf %30, %36 : vector<8x128xf32>
    %c4 = arith.constant 4 : index
    %c0_36 = arith.constant 0 : index
    %c0_37 = arith.constant 0 : index
    %38 = vector.load %arg4[%c4, %c0_36, %c0_37] : memref<5x8x8xf32, #tpu.memory_space<vmem>>, vector<1x8x8xf32>
    %39 = vector.shape_cast %38 : vector<1x8x8xf32> to vector<8x8xf32>
    %c4_38 = arith.constant 4 : index
    %c0_39 = arith.constant 0 : index
    %c0_40 = arith.constant 0 : index
    %40 = vector.load %arg6[%c4_38, %c0_39, %c0_40] : memref<5x128x128xf32, #tpu.memory_space<vmem>>, vector<1x128x128xf32>
    %41 = vector.shape_cast %40 : vector<1x128x128xf32> to vector<128x128xf32>
    %cst_41 = arith.constant dense<0.000000e+00> : vector<8x128xf32>
    %42 = tpu.matmul %10, %41, %cst_41 {dimension_numbers = #tpu.dot_dimension_numbers<[1], [0], [0], [1], [0, 0, 1, 1], [], []>} : vector<8x128xf32>, vector<128x128xf32>, vector<8x128xf32> -> vector<8x128xf32>
    %cst_42 = arith.constant dense<0.000000e+00> : vector<8x128xf32>
    %43 = tpu.matmul %39, %42, %cst_42 {dimension_numbers = #tpu.dot_dimension_numbers<[1], [0], [0], [1], [0, 0, 1, 1], [], []>} : vector<8x8xf32>, vector<8x128xf32>, vector<8x128xf32> -> vector<8x128xf32>
    %44 = arith.addf %37, %43 : vector<8x128xf32>
    %c0_43 = arith.constant 0 : index
    %c0_44 = arith.constant 0 : index
    %45 = vector.load %arg5[%c0_43, %c0_44] : memref<8x1xf32, #tpu.memory_space<vmem>>, vector<8x1xf32>
    %46 = vector.broadcast %45 : vector<8x1xf32> to vector<8x128xf32>
    %47 = arith.addf %44, %46 : vector<8x128xf32>
    %cst_45 = arith.constant 0.000000e+00 : f32
    %48 = vector.broadcast %cst_45 : f32 to vector<8x128xf32>
    %49 = arith.cmpf oge, %47, %48 : vector<8x128xf32>
    %cst_46 = arith.constant 0.00999999977 : f32
    %50 = vector.broadcast %cst_46 : f32 to vector<8x128xf32>
    %51 = arith.mulf %50, %47 : vector<8x128xf32>
    %52 = arith.select %49, %47, %51 : vector<8x128xi1>, vector<8x128xf32>
    %c0_47 = arith.constant 0 : index
    %c0_48 = arith.constant 0 : index
    %53 = vector.load %arg7[%c0_47, %c0_48] : memref<8x1xf32, #tpu.memory_space<vmem>>, vector<8x1xf32>
    %c0_49 = arith.constant 0 : index
    %c0_50 = arith.constant 0 : index
    %54 = vector.load %arg1[%c0_49, %c0_50] : memref<1x128xf32, #tpu.memory_space<vmem>>, vector<1x128xf32>
    %55 = vector.broadcast %53 : vector<8x1xf32> to vector<8x128xf32>
    %56 = vector.broadcast %54 : vector<1x128xf32> to vector<8x128xf32>
    %57 = arith.mulf %55, %56 : vector<8x128xf32>
    %c0_51 = arith.constant 0 : index
    %c0_52 = arith.constant 0 : index
    %58 = vector.load %arg8[%c0_51, %c0_52] : memref<8x1xf32, #tpu.memory_space<vmem>>, vector<8x1xf32>
    %59 = vector.broadcast %58 : vector<8x1xf32> to vector<8x128xf32>
    %60 = arith.addf %57, %59 : vector<8x128xf32>
    %61 = arith.addf %52, %60 : vector<8x128xf32>
    %c0_53 = arith.constant 0 : index
    %c0_54 = arith.constant 0 : index
    %62 = vector.load %arg9[%c0_53, %c0_54] : memref<128x64xf32, #tpu.memory_space<vmem>>, vector<128x64xf32>
    %cst_55 = arith.constant dense<0.000000e+00> : vector<8x64xf32>
    %63 = tpu.matmul %61, %62, %cst_55 {dimension_numbers = #tpu.dot_dimension_numbers<[1], [0], [0], [1], [0, 0, 1, 1], [], []>} : vector<8x128xf32>, vector<128x64xf32>, vector<8x64xf32> -> vector<8x64xf32>
    %c0_56 = arith.constant 0 : index
    %c0_57 = arith.constant 0 : index
    %64 = vector.load %arg10[%c0_56, %c0_57] : memref<128x64xf32, #tpu.memory_space<vmem>>, vector<128x64xf32>
    %cst_58 = arith.constant dense<0.000000e+00> : vector<8x64xf32>
    %65 = tpu.matmul %61, %64, %cst_58 {dimension_numbers = #tpu.dot_dimension_numbers<[1], [0], [0], [1], [0, 0, 1, 1], [], []>} : vector<8x128xf32>, vector<128x64xf32>, vector<8x64xf32> -> vector<8x64xf32>
    %66 = arith.maximumf %63, %65 : vector<8x64xf32>
    %c0_59 = arith.constant 0 : index
    %c0_60 = arith.constant 0 : index
    %67 = vector.load %arg11[%c0_59, %c0_60] : memref<8x1xf32, #tpu.memory_space<vmem>>, vector<8x1xf32>
    %68 = vector.broadcast %67 : vector<8x1xf32> to vector<8x64xf32>
    %69 = arith.mulf %66, %68 : vector<8x64xf32>
    %c0_61 = arith.constant 0 : index
    %c0_62 = arith.constant 0 : index
    %70 = vector.load %arg12[%c0_61, %c0_62] : memref<8x1xf32, #tpu.memory_space<vmem>>, vector<8x1xf32>
    %71 = vector.broadcast %70 : vector<8x1xf32> to vector<8x64xf32>
    %72 = arith.addf %69, %71 : vector<8x64xf32>
    %cst_63 = arith.constant 0.000000e+00 : f32
    %73 = vector.broadcast %cst_63 : f32 to vector<8x64xf32>
    %74 = arith.cmpf oge, %72, %73 : vector<8x64xf32>
    %cst_64 = arith.constant 0.00999999977 : f32
    %75 = vector.broadcast %cst_64 : f32 to vector<8x64xf32>
    %76 = arith.mulf %75, %72 : vector<8x64xf32>
    %77 = arith.select %74, %72, %76 : vector<8x64xi1>, vector<8x64xf32>
    %c0_65 = arith.constant 0 : index
    %c0_66 = arith.constant 0 : index
    %78 = vector.load %arg13[%c0_65, %c0_66] : memref<8x8xf32, #tpu.memory_space<vmem>>, vector<8x8xf32>
    %cst_67 = arith.constant dense<0.000000e+00> : vector<8x64xf32>
    %79 = tpu.matmul %78, %77, %cst_67 {dimension_numbers = #tpu.dot_dimension_numbers<[1], [0], [0], [1], [0, 0, 1, 1], [], []>} : vector<8x8xf32>, vector<8x64xf32>, vector<8x64xf32> -> vector<8x64xf32>
    %c0_68 = arith.constant 0 : index
    %c0_69 = arith.constant 0 : index
    %80 = vector.load %arg14[%c0_68, %c0_69] : memref<8x1xf32, #tpu.memory_space<vmem>>, vector<8x1xf32>
    %81 = vector.broadcast %80 : vector<8x1xf32> to vector<8x64xf32>
    %82 = arith.addf %79, %81 : vector<8x64xf32>
    %c0_70 = arith.constant 0 : index
    %c0_71 = arith.constant 0 : index
    %83 = vector.load %arg15[%c0_70, %c0_71] : memref<8x1xf32, #tpu.memory_space<vmem>>, vector<8x1xf32>
    %84 = vector.broadcast %83 : vector<8x1xf32> to vector<8x64xf32>
    %85 = arith.mulf %82, %84 : vector<8x64xf32>
    %c0_72 = arith.constant 0 : index
    %c0_73 = arith.constant 0 : index
    %86 = vector.load %arg16[%c0_72, %c0_73] : memref<8x1xf32, #tpu.memory_space<vmem>>, vector<8x1xf32>
    %87 = vector.broadcast %86 : vector<8x1xf32> to vector<8x64xf32>
    %88 = arith.addf %85, %87 : vector<8x64xf32>
    %cst_74 = arith.constant 0.000000e+00 : f32
    %89 = vector.broadcast %cst_74 : f32 to vector<8x64xf32>
    %90 = arith.cmpf oge, %88, %89 : vector<8x64xf32>
    %cst_75 = arith.constant 0.00999999977 : f32
    %91 = vector.broadcast %cst_75 : f32 to vector<8x64xf32>
    %92 = arith.mulf %91, %88 : vector<8x64xf32>
    %93 = arith.select %90, %88, %92 : vector<8x64xi1>, vector<8x64xf32>
    %c0_76 = arith.constant 0 : index
    %c0_77 = arith.constant 0 : index
    %c0_78 = arith.constant 0 : index
    %94 = vector.load %arg17[%c0_76, %c0_77, %c0_78] : memref<5x8x8xf32, #tpu.memory_space<vmem>>, vector<1x8x8xf32>
    %95 = vector.shape_cast %94 : vector<1x8x8xf32> to vector<8x8xf32>
    %c0_79 = arith.constant 0 : index
    %c0_80 = arith.constant 0 : index
    %c0_81 = arith.constant 0 : index
    %96 = vector.load %arg30[%c0_79, %c0_80, %c0_81] : memref<5x64x64xf32, #tpu.memory_space<vmem>>, vector<1x64x64xf32>
    %97 = vector.shape_cast %96 : vector<1x64x64xf32> to vector<64x64xf32>
    %cst_82 = arith.constant dense<0.000000e+00> : vector<8x64xf32>
    %98 = tpu.matmul %93, %97, %cst_82 {dimension_numbers = #tpu.dot_dimension_numbers<[1], [0], [0], [1], [0, 0, 1, 1], [], []>} : vector<8x64xf32>, vector<64x64xf32>, vector<8x64xf32> -> vector<8x64xf32>
    %cst_83 = arith.constant dense<0.000000e+00> : vector<8x64xf32>
    %99 = tpu.matmul %95, %98, %cst_83 {dimension_numbers = #tpu.dot_dimension_numbers<[1], [0], [0], [1], [0, 0, 1, 1], [], []>} : vector<8x8xf32>, vector<8x64xf32>, vector<8x64xf32> -> vector<8x64xf32>
    %c1_84 = arith.constant 1 : index
    %c0_85 = arith.constant 0 : index
    %c0_86 = arith.constant 0 : index
    %100 = vector.load %arg17[%c1_84, %c0_85, %c0_86] : memref<5x8x8xf32, #tpu.memory_space<vmem>>, vector<1x8x8xf32>
    %101 = vector.shape_cast %100 : vector<1x8x8xf32> to vector<8x8xf32>
    %c1_87 = arith.constant 1 : index
    %c0_88 = arith.constant 0 : index
    %c0_89 = arith.constant 0 : index
    %102 = vector.load %arg30[%c1_87, %c0_88, %c0_89] : memref<5x64x64xf32, #tpu.memory_space<vmem>>, vector<1x64x64xf32>
    %103 = vector.shape_cast %102 : vector<1x64x64xf32> to vector<64x64xf32>
    %cst_90 = arith.constant dense<0.000000e+00> : vector<8x64xf32>
    %104 = tpu.matmul %93, %103, %cst_90 {dimension_numbers = #tpu.dot_dimension_numbers<[1], [0], [0], [1], [0, 0, 1, 1], [], []>} : vector<8x64xf32>, vector<64x64xf32>, vector<8x64xf32> -> vector<8x64xf32>
    %cst_91 = arith.constant dense<0.000000e+00> : vector<8x64xf32>
    %105 = tpu.matmul %101, %104, %cst_91 {dimension_numbers = #tpu.dot_dimension_numbers<[1], [0], [0], [1], [0, 0, 1, 1], [], []>} : vector<8x8xf32>, vector<8x64xf32>, vector<8x64xf32> -> vector<8x64xf32>
    %106 = arith.addf %99, %105 : vector<8x64xf32>
    %c2_92 = arith.constant 2 : index
    %c0_93 = arith.constant 0 : index
    %c0_94 = arith.constant 0 : index
    %107 = vector.load %arg17[%c2_92, %c0_93, %c0_94] : memref<5x8x8xf32, #tpu.memory_space<vmem>>, vector<1x8x8xf32>
    %108 = vector.shape_cast %107 : vector<1x8x8xf32> to vector<8x8xf32>
    %c2_95 = arith.constant 2 : index
    %c0_96 = arith.constant 0 : index
    %c0_97 = arith.constant 0 : index
    %109 = vector.load %arg30[%c2_95, %c0_96, %c0_97] : memref<5x64x64xf32, #tpu.memory_space<vmem>>, vector<1x64x64xf32>
    %110 = vector.shape_cast %109 : vector<1x64x64xf32> to vector<64x64xf32>
    %cst_98 = arith.constant dense<0.000000e+00> : vector<8x64xf32>
    %111 = tpu.matmul %93, %110, %cst_98 {dimension_numbers = #tpu.dot_dimension_numbers<[1], [0], [0], [1], [0, 0, 1, 1], [], []>} : vector<8x64xf32>, vector<64x64xf32>, vector<8x64xf32> -> vector<8x64xf32>
    %cst_99 = arith.constant dense<0.000000e+00> : vector<8x64xf32>
    %112 = tpu.matmul %108, %111, %cst_99 {dimension_numbers = #tpu.dot_dimension_numbers<[1], [0], [0], [1], [0, 0, 1, 1], [], []>} : vector<8x8xf32>, vector<8x64xf32>, vector<8x64xf32> -> vector<8x64xf32>
    %113 = arith.addf %106, %112 : vector<8x64xf32>
    %c3_100 = arith.constant 3 : index
    %c0_101 = arith.constant 0 : index
    %c0_102 = arith.constant 0 : index
    %114 = vector.load %arg17[%c3_100, %c0_101, %c0_102] : memref<5x8x8xf32, #tpu.memory_space<vmem>>, vector<1x8x8xf32>
    %115 = vector.shape_cast %114 : vector<1x8x8xf32> to vector<8x8xf32>
    %c3_103 = arith.constant 3 : index
    %c0_104 = arith.constant 0 : index
    %c0_105 = arith.constant 0 : index
    %116 = vector.load %arg30[%c3_103, %c0_104, %c0_105] : memref<5x64x64xf32, #tpu.memory_space<vmem>>, vector<1x64x64xf32>
    %117 = vector.shape_cast %116 : vector<1x64x64xf32> to vector<64x64xf32>
    %cst_106 = arith.constant dense<0.000000e+00> : vector<8x64xf32>
    %118 = tpu.matmul %93, %117, %cst_106 {dimension_numbers = #tpu.dot_dimension_numbers<[1], [0], [0], [1], [0, 0, 1, 1], [], []>} : vector<8x64xf32>, vector<64x64xf32>, vector<8x64xf32> -> vector<8x64xf32>
    %cst_107 = arith.constant dense<0.000000e+00> : vector<8x64xf32>
    %119 = tpu.matmul %115, %118, %cst_107 {dimension_numbers = #tpu.dot_dimension_numbers<[1], [0], [0], [1], [0, 0, 1, 1], [], []>} : vector<8x8xf32>, vector<8x64xf32>, vector<8x64xf32> -> vector<8x64xf32>
    %120 = arith.addf %113, %119 : vector<8x64xf32>
    %c4_108 = arith.constant 4 : index
    %c0_109 = arith.constant 0 : index
    %c0_110 = arith.constant 0 : index
    %121 = vector.load %arg17[%c4_108, %c0_109, %c0_110] : memref<5x8x8xf32, #tpu.memory_space<vmem>>, vector<1x8x8xf32>
    %122 = vector.shape_cast %121 : vector<1x8x8xf32> to vector<8x8xf32>
    %c4_111 = arith.constant 4 : index
    %c0_112 = arith.constant 0 : index
    %c0_113 = arith.constant 0 : index
    %123 = vector.load %arg30[%c4_111, %c0_112, %c0_113] : memref<5x64x64xf32, #tpu.memory_space<vmem>>, vector<1x64x64xf32>
    %124 = vector.shape_cast %123 : vector<1x64x64xf32> to vector<64x64xf32>
    %cst_114 = arith.constant dense<0.000000e+00> : vector<8x64xf32>
    %125 = tpu.matmul %93, %124, %cst_114 {dimension_numbers = #tpu.dot_dimension_numbers<[1], [0], [0], [1], [0, 0, 1, 1], [], []>} : vector<8x64xf32>, vector<64x64xf32>, vector<8x64xf32> -> vector<8x64xf32>
    %cst_115 = arith.constant dense<0.000000e+00> : vector<8x64xf32>
    %126 = tpu.matmul %122, %125, %cst_115 {dimension_numbers = #tpu.dot_dimension_numbers<[1], [0], [0], [1], [0, 0, 1, 1], [], []>} : vector<8x8xf32>, vector<8x64xf32>, vector<8x64xf32> -> vector<8x64xf32>
    %127 = arith.addf %120, %126 : vector<8x64xf32>
    %c0_116 = arith.constant 0 : index
    %c0_117 = arith.constant 0 : index
    %128 = vector.load %arg18[%c0_116, %c0_117] : memref<8x1xf32, #tpu.memory_space<vmem>>, vector<8x1xf32>
    %129 = vector.broadcast %128 : vector<8x1xf32> to vector<8x64xf32>
    %130 = arith.addf %127, %129 : vector<8x64xf32>
    %c0_118 = arith.constant 0 : index
    %c0_119 = arith.constant 0 : index
    %131 = vector.load %arg19[%c0_118, %c0_119] : memref<8x1xf32, #tpu.memory_space<vmem>>, vector<8x1xf32>
    %132 = vector.broadcast %131 : vector<8x1xf32> to vector<8x64xf32>
    %133 = arith.mulf %66, %132 : vector<8x64xf32>
    %c0_120 = arith.constant 0 : index
    %c0_121 = arith.constant 0 : index
    %134 = vector.load %arg20[%c0_120, %c0_121] : memref<8x1xf32, #tpu.memory_space<vmem>>, vector<8x1xf32>
    %135 = vector.broadcast %134 : vector<8x1xf32> to vector<8x64xf32>
    %136 = arith.addf %133, %135 : vector<8x64xf32>
    %cst_122 = arith.constant 0.000000e+00 : f32
    %137 = vector.broadcast %cst_122 : f32 to vector<8x64xf32>
    %138 = arith.cmpf oge, %136, %137 : vector<8x64xf32>
    %cst_123 = arith.constant 0.00999999977 : f32
    %139 = vector.broadcast %cst_123 : f32 to vector<8x64xf32>
    %140 = arith.mulf %139, %136 : vector<8x64xf32>
    %141 = arith.select %138, %136, %140 : vector<8x64xi1>, vector<8x64xf32>
    %c0_124 = arith.constant 0 : index
    %c0_125 = arith.constant 0 : index
    %142 = vector.load %arg21[%c0_124, %c0_125] : memref<8x8xf32, #tpu.memory_space<vmem>>, vector<8x8xf32>
    %cst_126 = arith.constant dense<0.000000e+00> : vector<8x64xf32>
    %143 = tpu.matmul %142, %141, %cst_126 {dimension_numbers = #tpu.dot_dimension_numbers<[1], [0], [0], [1], [0, 0, 1, 1], [], []>} : vector<8x8xf32>, vector<8x64xf32>, vector<8x64xf32> -> vector<8x64xf32>
    %c0_127 = arith.constant 0 : index
    %c0_128 = arith.constant 0 : index
    %144 = vector.load %arg22[%c0_127, %c0_128] : memref<8x1xf32, #tpu.memory_space<vmem>>, vector<8x1xf32>
    %145 = vector.broadcast %144 : vector<8x1xf32> to vector<8x64xf32>
    %146 = arith.mulf %130, %145 : vector<8x64xf32>
    %c0_129 = arith.constant 0 : index
    %c0_130 = arith.constant 0 : index
    %147 = vector.load %arg23[%c0_129, %c0_130] : memref<8x1xf32, #tpu.memory_space<vmem>>, vector<8x1xf32>
    %148 = vector.broadcast %147 : vector<8x1xf32> to vector<8x64xf32>
    %149 = arith.addf %146, %148 : vector<8x64xf32>
    %cst_131 = arith.constant 0.000000e+00 : f32
    %150 = vector.broadcast %cst_131 : f32 to vector<8x64xf32>
    %151 = arith.cmpf oge, %149, %150 : vector<8x64xf32>
    %cst_132 = arith.constant 0.00999999977 : f32
    %152 = vector.broadcast %cst_132 : f32 to vector<8x64xf32>
    %153 = arith.mulf %152, %149 : vector<8x64xf32>
    %154 = arith.select %151, %149, %153 : vector<8x64xi1>, vector<8x64xf32>
    %c0_133 = arith.constant 0 : index
    %c0_134 = arith.constant 0 : index
    %155 = vector.load %arg24[%c0_133, %c0_134] : memref<8x8xf32, #tpu.memory_space<vmem>>, vector<8x8xf32>
    %cst_135 = arith.constant dense<0.000000e+00> : vector<8x64xf32>
    %156 = tpu.matmul %155, %154, %cst_135 {dimension_numbers = #tpu.dot_dimension_numbers<[1], [0], [0], [1], [0, 0, 1, 1], [], []>} : vector<8x8xf32>, vector<8x64xf32>, vector<8x64xf32> -> vector<8x64xf32>
    %157 = arith.addf %143, %156 : vector<8x64xf32>
    %c0_136 = arith.constant 0 : index
    %c0_137 = arith.constant 0 : index
    %158 = vector.load %arg25[%c0_136, %c0_137] : memref<8x1xf32, #tpu.memory_space<vmem>>, vector<8x1xf32>
    %159 = vector.broadcast %158 : vector<8x1xf32> to vector<8x64xf32>
    %160 = arith.addf %157, %159 : vector<8x64xf32>
    %c0_138 = arith.constant 0 : index
    %c0_139 = arith.constant 0 : index
    %161 = vector.load %arg26[%c0_138, %c0_139] : memref<8x1xf32, #tpu.memory_space<vmem>>, vector<8x1xf32>
    %162 = vector.broadcast %161 : vector<8x1xf32> to vector<8x64xf32>
    %163 = arith.mulf %160, %162 : vector<8x64xf32>
    %c0_140 = arith.constant 0 : index
    %c0_141 = arith.constant 0 : index
    %164 = vector.load %arg27[%c0_140, %c0_141] : memref<8x1xf32, #tpu.memory_space<vmem>>, vector<8x1xf32>
    %165 = vector.broadcast %164 : vector<8x1xf32> to vector<8x64xf32>
    %166 = arith.addf %163, %165 : vector<8x64xf32>
    %cst_142 = arith.constant 0.000000e+00 : f32
    %167 = vector.broadcast %cst_142 : f32 to vector<8x64xf32>
    %168 = arith.cmpf oge, %166, %167 : vector<8x64xf32>
    %cst_143 = arith.constant 0.00999999977 : f32
    %169 = vector.broadcast %cst_143 : f32 to vector<8x64xf32>
    %170 = arith.mulf %169, %166 : vector<8x64xf32>
    %171 = arith.select %168, %166, %170 : vector<8x64xi1>, vector<8x64xf32>
    %c0_144 = arith.constant 0 : index
    %c0_145 = arith.constant 0 : index
    %c0_146 = arith.constant 0 : index
    %172 = vector.load %arg28[%c0_144, %c0_145, %c0_146] : memref<5x8x8xf32, #tpu.memory_space<vmem>>, vector<1x8x8xf32>
    %173 = vector.shape_cast %172 : vector<1x8x8xf32> to vector<8x8xf32>
    %c0_147 = arith.constant 0 : index
    %c0_148 = arith.constant 0 : index
    %c0_149 = arith.constant 0 : index
    %174 = vector.load %arg30[%c0_147, %c0_148, %c0_149] : memref<5x64x64xf32, #tpu.memory_space<vmem>>, vector<1x64x64xf32>
    %175 = vector.shape_cast %174 : vector<1x64x64xf32> to vector<64x64xf32>
    %cst_150 = arith.constant dense<0.000000e+00> : vector<8x64xf32>
    %176 = tpu.matmul %171, %175, %cst_150 {dimension_numbers = #tpu.dot_dimension_numbers<[1], [0], [0], [1], [0, 0, 1, 1], [], []>} : vector<8x64xf32>, vector<64x64xf32>, vector<8x64xf32> -> vector<8x64xf32>
    %cst_151 = arith.constant dense<0.000000e+00> : vector<8x64xf32>
    %177 = tpu.matmul %173, %176, %cst_151 {dimension_numbers = #tpu.dot_dimension_numbers<[1], [0], [0], [1], [0, 0, 1, 1], [], []>} : vector<8x8xf32>, vector<8x64xf32>, vector<8x64xf32> -> vector<8x64xf32>
    %c1_152 = arith.constant 1 : index
    %c0_153 = arith.constant 0 : index
    %c0_154 = arith.constant 0 : index
    %178 = vector.load %arg28[%c1_152, %c0_153, %c0_154] : memref<5x8x8xf32, #tpu.memory_space<vmem>>, vector<1x8x8xf32>
    %179 = vector.shape_cast %178 : vector<1x8x8xf32> to vector<8x8xf32>
    %c1_155 = arith.constant 1 : index
    %c0_156 = arith.constant 0 : index
    %c0_157 = arith.constant 0 : index
    %180 = vector.load %arg30[%c1_155, %c0_156, %c0_157] : memref<5x64x64xf32, #tpu.memory_space<vmem>>, vector<1x64x64xf32>
    %181 = vector.shape_cast %180 : vector<1x64x64xf32> to vector<64x64xf32>
    %cst_158 = arith.constant dense<0.000000e+00> : vector<8x64xf32>
    %182 = tpu.matmul %171, %181, %cst_158 {dimension_numbers = #tpu.dot_dimension_numbers<[1], [0], [0], [1], [0, 0, 1, 1], [], []>} : vector<8x64xf32>, vector<64x64xf32>, vector<8x64xf32> -> vector<8x64xf32>
    %cst_159 = arith.constant dense<0.000000e+00> : vector<8x64xf32>
    %183 = tpu.matmul %179, %182, %cst_159 {dimension_numbers = #tpu.dot_dimension_numbers<[1], [0], [0], [1], [0, 0, 1, 1], [], []>} : vector<8x8xf32>, vector<8x64xf32>, vector<8x64xf32> -> vector<8x64xf32>
    %184 = arith.addf %177, %183 : vector<8x64xf32>
    %c2_160 = arith.constant 2 : index
    %c0_161 = arith.constant 0 : index
    %c0_162 = arith.constant 0 : index
    %185 = vector.load %arg28[%c2_160, %c0_161, %c0_162] : memref<5x8x8xf32, #tpu.memory_space<vmem>>, vector<1x8x8xf32>
    %186 = vector.shape_cast %185 : vector<1x8x8xf32> to vector<8x8xf32>
    %c2_163 = arith.constant 2 : index
    %c0_164 = arith.constant 0 : index
    %c0_165 = arith.constant 0 : index
    %187 = vector.load %arg30[%c2_163, %c0_164, %c0_165] : memref<5x64x64xf32, #tpu.memory_space<vmem>>, vector<1x64x64xf32>
    %188 = vector.shape_cast %187 : vector<1x64x64xf32> to vector<64x64xf32>
    %cst_166 = arith.constant dense<0.000000e+00> : vector<8x64xf32>
    %189 = tpu.matmul %171, %188, %cst_166 {dimension_numbers = #tpu.dot_dimension_numbers<[1], [0], [0], [1], [0, 0, 1, 1], [], []>} : vector<8x64xf32>, vector<64x64xf32>, vector<8x64xf32> -> vector<8x64xf32>
    %cst_167 = arith.constant dense<0.000000e+00> : vector<8x64xf32>
    %190 = tpu.matmul %186, %189, %cst_167 {dimension_numbers = #tpu.dot_dimension_numbers<[1], [0], [0], [1], [0, 0, 1, 1], [], []>} : vector<8x8xf32>, vector<8x64xf32>, vector<8x64xf32> -> vector<8x64xf32>
    %191 = arith.addf %184, %190 : vector<8x64xf32>
    %c3_168 = arith.constant 3 : index
    %c0_169 = arith.constant 0 : index
    %c0_170 = arith.constant 0 : index
    %192 = vector.load %arg28[%c3_168, %c0_169, %c0_170] : memref<5x8x8xf32, #tpu.memory_space<vmem>>, vector<1x8x8xf32>
    %193 = vector.shape_cast %192 : vector<1x8x8xf32> to vector<8x8xf32>
    %c3_171 = arith.constant 3 : index
    %c0_172 = arith.constant 0 : index
    %c0_173 = arith.constant 0 : index
    %194 = vector.load %arg30[%c3_171, %c0_172, %c0_173] : memref<5x64x64xf32, #tpu.memory_space<vmem>>, vector<1x64x64xf32>
    %195 = vector.shape_cast %194 : vector<1x64x64xf32> to vector<64x64xf32>
    %cst_174 = arith.constant dense<0.000000e+00> : vector<8x64xf32>
    %196 = tpu.matmul %171, %195, %cst_174 {dimension_numbers = #tpu.dot_dimension_numbers<[1], [0], [0], [1], [0, 0, 1, 1], [], []>} : vector<8x64xf32>, vector<64x64xf32>, vector<8x64xf32> -> vector<8x64xf32>
    %cst_175 = arith.constant dense<0.000000e+00> : vector<8x64xf32>
    %197 = tpu.matmul %193, %196, %cst_175 {dimension_numbers = #tpu.dot_dimension_numbers<[1], [0], [0], [1], [0, 0, 1, 1], [], []>} : vector<8x8xf32>, vector<8x64xf32>, vector<8x64xf32> -> vector<8x64xf32>
    %198 = arith.addf %191, %197 : vector<8x64xf32>
    %c4_176 = arith.constant 4 : index
    %c0_177 = arith.constant 0 : index
    %c0_178 = arith.constant 0 : index
    %199 = vector.load %arg28[%c4_176, %c0_177, %c0_178] : memref<5x8x8xf32, #tpu.memory_space<vmem>>, vector<1x8x8xf32>
    %200 = vector.shape_cast %199 : vector<1x8x8xf32> to vector<8x8xf32>
    %c4_179 = arith.constant 4 : index
    %c0_180 = arith.constant 0 : index
    %c0_181 = arith.constant 0 : index
    %201 = vector.load %arg30[%c4_179, %c0_180, %c0_181] : memref<5x64x64xf32, #tpu.memory_space<vmem>>, vector<1x64x64xf32>
    %202 = vector.shape_cast %201 : vector<1x64x64xf32> to vector<64x64xf32>
    %cst_182 = arith.constant dense<0.000000e+00> : vector<8x64xf32>
    %203 = tpu.matmul %171, %202, %cst_182 {dimension_numbers = #tpu.dot_dimension_numbers<[1], [0], [0], [1], [0, 0, 1, 1], [], []>} : vector<8x64xf32>, vector<64x64xf32>, vector<8x64xf32> -> vector<8x64xf32>
    %cst_183 = arith.constant dense<0.000000e+00> : vector<8x64xf32>
    %204 = tpu.matmul %200, %203, %cst_183 {dimension_numbers = #tpu.dot_dimension_numbers<[1], [0], [0], [1], [0, 0, 1, 1], [], []>} : vector<8x8xf32>, vector<8x64xf32>, vector<8x64xf32> -> vector<8x64xf32>
    %205 = arith.addf %198, %204 : vector<8x64xf32>
    %c0_184 = arith.constant 0 : index
    %c0_185 = arith.constant 0 : index
    %206 = vector.load %arg29[%c0_184, %c0_185] : memref<8x1xf32, #tpu.memory_space<vmem>>, vector<8x1xf32>
    %207 = vector.broadcast %206 : vector<8x1xf32> to vector<8x64xf32>
    %208 = arith.addf %205, %207 : vector<8x64xf32>
    %c0_186 = arith.constant 0 : index
    %c0_187 = arith.constant 0 : index
    %c0_188 = arith.constant 0 : index
    %209 = vector.load %arg31[%c0_186, %c0_187, %c0_188] : memref<4x64x16xf32, #tpu.memory_space<vmem>>, vector<1x64x16xf32>
    %210 = vector.shape_cast %209 : vector<1x64x16xf32> to vector<64x16xf32>
    %c0_189 = arith.constant 0 : index
    %c0_190 = arith.constant 0 : index
    %c0_191 = arith.constant 0 : index
    %211 = vector.load %arg32[%c0_189, %c0_190, %c0_191] : memref<4x16x8xf32, #tpu.memory_space<vmem>>, vector<1x16x8xf32>
    %212 = vector.shape_cast %211 : vector<1x16x8xf32> to vector<16x8xf32>
    %cst_192 = arith.constant dense<0.000000e+00> : vector<8x16xf32>
    %213 = tpu.matmul %66, %210, %cst_192 {dimension_numbers = #tpu.dot_dimension_numbers<[1], [0], [0], [1], [0, 0, 1, 1], [], []>} : vector<8x64xf32>, vector<64x16xf32>, vector<8x16xf32> -> vector<8x16xf32>
    %cst_193 = arith.constant dense<0.000000e+00> : vector<16x16xf32>
    %214 = tpu.matmul %212, %213, %cst_193 {dimension_numbers = #tpu.dot_dimension_numbers<[1], [0], [0], [1], [0, 0, 1, 1], [], []>} : vector<16x8xf32>, vector<8x16xf32>, vector<16x16xf32> -> vector<16x16xf32>
    %c0_194 = arith.constant 0 : index
    %c0_195 = arith.constant 0 : index
    %c0_196 = arith.constant 0 : index
    %215 = vector.load %arg33[%c0_194, %c0_195, %c0_196] : memref<4x16x8xf32, #tpu.memory_space<vmem>>, vector<1x16x8xf32>
    %216 = vector.shape_cast %215 : vector<1x16x8xf32> to vector<16x8xf32>
    %cst_197 = arith.constant dense<0.000000e+00> : vector<8x16xf32>
    %217 = tpu.matmul %130, %210, %cst_197 {dimension_numbers = #tpu.dot_dimension_numbers<[1], [0], [0], [1], [0, 0, 1, 1], [], []>} : vector<8x64xf32>, vector<64x16xf32>, vector<8x16xf32> -> vector<8x16xf32>
    %cst_198 = arith.constant dense<0.000000e+00> : vector<16x16xf32>
    %218 = tpu.matmul %216, %217, %cst_198 {dimension_numbers = #tpu.dot_dimension_numbers<[1], [0], [0], [1], [0, 0, 1, 1], [], []>} : vector<16x8xf32>, vector<8x16xf32>, vector<16x16xf32> -> vector<16x16xf32>
    %219 = arith.addf %214, %218 : vector<16x16xf32>
    %c0_199 = arith.constant 0 : index
    %c0_200 = arith.constant 0 : index
    %c0_201 = arith.constant 0 : index
    %220 = vector.load %arg34[%c0_199, %c0_200, %c0_201] : memref<4x16x8xf32, #tpu.memory_space<vmem>>, vector<1x16x8xf32>
    %221 = vector.shape_cast %220 : vector<1x16x8xf32> to vector<16x8xf32>
    %cst_202 = arith.constant dense<0.000000e+00> : vector<8x16xf32>
    %222 = tpu.matmul %208, %210, %cst_202 {dimension_numbers = #tpu.dot_dimension_numbers<[1], [0], [0], [1], [0, 0, 1, 1], [], []>} : vector<8x64xf32>, vector<64x16xf32>, vector<8x16xf32> -> vector<8x16xf32>
    %cst_203 = arith.constant dense<0.000000e+00> : vector<16x16xf32>
    %223 = tpu.matmul %221, %222, %cst_203 {dimension_numbers = #tpu.dot_dimension_numbers<[1], [0], [0], [1], [0, 0, 1, 1], [], []>} : vector<16x8xf32>, vector<8x16xf32>, vector<16x16xf32> -> vector<16x16xf32>
    %224 = arith.addf %219, %223 : vector<16x16xf32>
    %c1_204 = arith.constant 1 : index
    %c0_205 = arith.constant 0 : index
    %c0_206 = arith.constant 0 : index
    %225 = vector.load %arg31[%c1_204, %c0_205, %c0_206] : memref<4x64x16xf32, #tpu.memory_space<vmem>>, vector<1x64x16xf32>
    %226 = vector.shape_cast %225 : vector<1x64x16xf32> to vector<64x16xf32>
    %c1_207 = arith.constant 1 : index
    %c0_208 = arith.constant 0 : index
    %c0_209 = arith.constant 0 : index
    %227 = vector.load %arg32[%c1_207, %c0_208, %c0_209] : memref<4x16x8xf32, #tpu.memory_space<vmem>>, vector<1x16x8xf32>
    %228 = vector.shape_cast %227 : vector<1x16x8xf32> to vector<16x8xf32>
    %cst_210 = arith.constant dense<0.000000e+00> : vector<8x16xf32>
    %229 = tpu.matmul %66, %226, %cst_210 {dimension_numbers = #tpu.dot_dimension_numbers<[1], [0], [0], [1], [0, 0, 1, 1], [], []>} : vector<8x64xf32>, vector<64x16xf32>, vector<8x16xf32> -> vector<8x16xf32>
    %cst_211 = arith.constant dense<0.000000e+00> : vector<16x16xf32>
    %230 = tpu.matmul %228, %229, %cst_211 {dimension_numbers = #tpu.dot_dimension_numbers<[1], [0], [0], [1], [0, 0, 1, 1], [], []>} : vector<16x8xf32>, vector<8x16xf32>, vector<16x16xf32> -> vector<16x16xf32>
    %231 = arith.addf %224, %230 : vector<16x16xf32>
    %c1_212 = arith.constant 1 : index
    %c0_213 = arith.constant 0 : index
    %c0_214 = arith.constant 0 : index
    %232 = vector.load %arg33[%c1_212, %c0_213, %c0_214] : memref<4x16x8xf32, #tpu.memory_space<vmem>>, vector<1x16x8xf32>
    %233 = vector.shape_cast %232 : vector<1x16x8xf32> to vector<16x8xf32>
    %cst_215 = arith.constant dense<0.000000e+00> : vector<8x16xf32>
    %234 = tpu.matmul %130, %226, %cst_215 {dimension_numbers = #tpu.dot_dimension_numbers<[1], [0], [0], [1], [0, 0, 1, 1], [], []>} : vector<8x64xf32>, vector<64x16xf32>, vector<8x16xf32> -> vector<8x16xf32>
    %cst_216 = arith.constant dense<0.000000e+00> : vector<16x16xf32>
    %235 = tpu.matmul %233, %234, %cst_216 {dimension_numbers = #tpu.dot_dimension_numbers<[1], [0], [0], [1], [0, 0, 1, 1], [], []>} : vector<16x8xf32>, vector<8x16xf32>, vector<16x16xf32> -> vector<16x16xf32>
    %236 = arith.addf %231, %235 : vector<16x16xf32>
    %c1_217 = arith.constant 1 : index
    %c0_218 = arith.constant 0 : index
    %c0_219 = arith.constant 0 : index
    %237 = vector.load %arg34[%c1_217, %c0_218, %c0_219] : memref<4x16x8xf32, #tpu.memory_space<vmem>>, vector<1x16x8xf32>
    %238 = vector.shape_cast %237 : vector<1x16x8xf32> to vector<16x8xf32>
    %cst_220 = arith.constant dense<0.000000e+00> : vector<8x16xf32>
    %239 = tpu.matmul %208, %226, %cst_220 {dimension_numbers = #tpu.dot_dimension_numbers<[1], [0], [0], [1], [0, 0, 1, 1], [], []>} : vector<8x64xf32>, vector<64x16xf32>, vector<8x16xf32> -> vector<8x16xf32>
    %cst_221 = arith.constant dense<0.000000e+00> : vector<16x16xf32>
    %240 = tpu.matmul %238, %239, %cst_221 {dimension_numbers = #tpu.dot_dimension_numbers<[1], [0], [0], [1], [0, 0, 1, 1], [], []>} : vector<16x8xf32>, vector<8x16xf32>, vector<16x16xf32> -> vector<16x16xf32>
    %241 = arith.addf %236, %240 : vector<16x16xf32>
    %c2_222 = arith.constant 2 : index
    %c0_223 = arith.constant 0 : index
    %c0_224 = arith.constant 0 : index
    %242 = vector.load %arg31[%c2_222, %c0_223, %c0_224] : memref<4x64x16xf32, #tpu.memory_space<vmem>>, vector<1x64x16xf32>
    %243 = vector.shape_cast %242 : vector<1x64x16xf32> to vector<64x16xf32>
    %c2_225 = arith.constant 2 : index
    %c0_226 = arith.constant 0 : index
    %c0_227 = arith.constant 0 : index
    %244 = vector.load %arg32[%c2_225, %c0_226, %c0_227] : memref<4x16x8xf32, #tpu.memory_space<vmem>>, vector<1x16x8xf32>
    %245 = vector.shape_cast %244 : vector<1x16x8xf32> to vector<16x8xf32>
    %cst_228 = arith.constant dense<0.000000e+00> : vector<8x16xf32>
    %246 = tpu.matmul %66, %243, %cst_228 {dimension_numbers = #tpu.dot_dimension_numbers<[1], [0], [0], [1], [0, 0, 1, 1], [], []>} : vector<8x64xf32>, vector<64x16xf32>, vector<8x16xf32> -> vector<8x16xf32>
    %cst_229 = arith.constant dense<0.000000e+00> : vector<16x16xf32>
    %247 = tpu.matmul %245, %246, %cst_229 {dimension_numbers = #tpu.dot_dimension_numbers<[1], [0], [0], [1], [0, 0, 1, 1], [], []>} : vector<16x8xf32>, vector<8x16xf32>, vector<16x16xf32> -> vector<16x16xf32>
    %248 = arith.addf %241, %247 : vector<16x16xf32>
    %c2_230 = arith.constant 2 : index
    %c0_231 = arith.constant 0 : index
    %c0_232 = arith.constant 0 : index
    %249 = vector.load %arg33[%c2_230, %c0_231, %c0_232] : memref<4x16x8xf32, #tpu.memory_space<vmem>>, vector<1x16x8xf32>
    %250 = vector.shape_cast %249 : vector<1x16x8xf32> to vector<16x8xf32>
    %cst_233 = arith.constant dense<0.000000e+00> : vector<8x16xf32>
    %251 = tpu.matmul %130, %243, %cst_233 {dimension_numbers = #tpu.dot_dimension_numbers<[1], [0], [0], [1], [0, 0, 1, 1], [], []>} : vector<8x64xf32>, vector<64x16xf32>, vector<8x16xf32> -> vector<8x16xf32>
    %cst_234 = arith.constant dense<0.000000e+00> : vector<16x16xf32>
    %252 = tpu.matmul %250, %251, %cst_234 {dimension_numbers = #tpu.dot_dimension_numbers<[1], [0], [0], [1], [0, 0, 1, 1], [], []>} : vector<16x8xf32>, vector<8x16xf32>, vector<16x16xf32> -> vector<16x16xf32>
    %253 = arith.addf %248, %252 : vector<16x16xf32>
    %c2_235 = arith.constant 2 : index
    %c0_236 = arith.constant 0 : index
    %c0_237 = arith.constant 0 : index
    %254 = vector.load %arg34[%c2_235, %c0_236, %c0_237] : memref<4x16x8xf32, #tpu.memory_space<vmem>>, vector<1x16x8xf32>
    %255 = vector.shape_cast %254 : vector<1x16x8xf32> to vector<16x8xf32>
    %cst_238 = arith.constant dense<0.000000e+00> : vector<8x16xf32>
    %256 = tpu.matmul %208, %243, %cst_238 {dimension_numbers = #tpu.dot_dimension_numbers<[1], [0], [0], [1], [0, 0, 1, 1], [], []>} : vector<8x64xf32>, vector<64x16xf32>, vector<8x16xf32> -> vector<8x16xf32>
    %cst_239 = arith.constant dense<0.000000e+00> : vector<16x16xf32>
    %257 = tpu.matmul %255, %256, %cst_239 {dimension_numbers = #tpu.dot_dimension_numbers<[1], [0], [0], [1], [0, 0, 1, 1], [], []>} : vector<16x8xf32>, vector<8x16xf32>, vector<16x16xf32> -> vector<16x16xf32>
    %258 = arith.addf %253, %257 : vector<16x16xf32>
    %c3_240 = arith.constant 3 : index
    %c0_241 = arith.constant 0 : index
    %c0_242 = arith.constant 0 : index
    %259 = vector.load %arg31[%c3_240, %c0_241, %c0_242] : memref<4x64x16xf32, #tpu.memory_space<vmem>>, vector<1x64x16xf32>
    %260 = vector.shape_cast %259 : vector<1x64x16xf32> to vector<64x16xf32>
    %c3_243 = arith.constant 3 : index
    %c0_244 = arith.constant 0 : index
    %c0_245 = arith.constant 0 : index
    %261 = vector.load %arg32[%c3_243, %c0_244, %c0_245] : memref<4x16x8xf32, #tpu.memory_space<vmem>>, vector<1x16x8xf32>
    %262 = vector.shape_cast %261 : vector<1x16x8xf32> to vector<16x8xf32>
    %cst_246 = arith.constant dense<0.000000e+00> : vector<8x16xf32>
    %263 = tpu.matmul %66, %260, %cst_246 {dimension_numbers = #tpu.dot_dimension_numbers<[1], [0], [0], [1], [0, 0, 1, 1], [], []>} : vector<8x64xf32>, vector<64x16xf32>, vector<8x16xf32> -> vector<8x16xf32>
    %cst_247 = arith.constant dense<0.000000e+00> : vector<16x16xf32>
    %264 = tpu.matmul %262, %263, %cst_247 {dimension_numbers = #tpu.dot_dimension_numbers<[1], [0], [0], [1], [0, 0, 1, 1], [], []>} : vector<16x8xf32>, vector<8x16xf32>, vector<16x16xf32> -> vector<16x16xf32>
    %265 = arith.addf %258, %264 : vector<16x16xf32>
    %c3_248 = arith.constant 3 : index
    %c0_249 = arith.constant 0 : index
    %c0_250 = arith.constant 0 : index
    %266 = vector.load %arg33[%c3_248, %c0_249, %c0_250] : memref<4x16x8xf32, #tpu.memory_space<vmem>>, vector<1x16x8xf32>
    %267 = vector.shape_cast %266 : vector<1x16x8xf32> to vector<16x8xf32>
    %cst_251 = arith.constant dense<0.000000e+00> : vector<8x16xf32>
    %268 = tpu.matmul %130, %260, %cst_251 {dimension_numbers = #tpu.dot_dimension_numbers<[1], [0], [0], [1], [0, 0, 1, 1], [], []>} : vector<8x64xf32>, vector<64x16xf32>, vector<8x16xf32> -> vector<8x16xf32>
    %cst_252 = arith.constant dense<0.000000e+00> : vector<16x16xf32>
    %269 = tpu.matmul %267, %268, %cst_252 {dimension_numbers = #tpu.dot_dimension_numbers<[1], [0], [0], [1], [0, 0, 1, 1], [], []>} : vector<16x8xf32>, vector<8x16xf32>, vector<16x16xf32> -> vector<16x16xf32>
    %270 = arith.addf %265, %269 : vector<16x16xf32>
    %c3_253 = arith.constant 3 : index
    %c0_254 = arith.constant 0 : index
    %c0_255 = arith.constant 0 : index
    %271 = vector.load %arg34[%c3_253, %c0_254, %c0_255] : memref<4x16x8xf32, #tpu.memory_space<vmem>>, vector<1x16x8xf32>
    %272 = vector.shape_cast %271 : vector<1x16x8xf32> to vector<16x8xf32>
    %cst_256 = arith.constant dense<0.000000e+00> : vector<8x16xf32>
    %273 = tpu.matmul %208, %260, %cst_256 {dimension_numbers = #tpu.dot_dimension_numbers<[1], [0], [0], [1], [0, 0, 1, 1], [], []>} : vector<8x64xf32>, vector<64x16xf32>, vector<8x16xf32> -> vector<8x16xf32>
    %cst_257 = arith.constant dense<0.000000e+00> : vector<16x16xf32>
    %274 = tpu.matmul %272, %273, %cst_257 {dimension_numbers = #tpu.dot_dimension_numbers<[1], [0], [0], [1], [0, 0, 1, 1], [], []>} : vector<16x8xf32>, vector<8x16xf32>, vector<16x16xf32> -> vector<16x16xf32>
    %275 = arith.addf %270, %274 : vector<16x16xf32>
    %cst_258 = arith.constant 0.000000e+00 : f32
    %276 = vector.broadcast %cst_258 : f32 to vector<16x16xf32>
    %277 = arith.cmpf oge, %275, %276 : vector<16x16xf32>
    %cst_259 = arith.constant 0.00999999977 : f32
    %278 = vector.broadcast %cst_259 : f32 to vector<16x16xf32>
    %279 = arith.mulf %278, %275 : vector<16x16xf32>
    %280 = arith.select %277, %275, %279 : vector<16x16xi1>, vector<16x16xf32>
    %c0_260 = arith.constant 0 : index
    %c0_261 = arith.constant 0 : index
    %281 = vector.load %arg35[%c0_260, %c0_261] : memref<16x1xf32, #tpu.memory_space<vmem>>, vector<16x1xf32>
    %282 = vector.broadcast %281 : vector<16x1xf32> to vector<16x16xf32>
    %283 = arith.mulf %280, %282 : vector<16x16xf32>
    %c0_262 = arith.constant 0 : index
    %c0_263 = arith.constant 0 : index
    %284 = vector.load %arg36[%c0_262, %c0_263] : memref<16x1xf32, #tpu.memory_space<vmem>>, vector<16x1xf32>
    %285 = vector.broadcast %284 : vector<16x1xf32> to vector<16x16xf32>
    %286 = arith.addf %283, %285 : vector<16x16xf32>
    %c0_264 = arith.constant 0 : index
    %c0_265 = arith.constant 0 : index
    %c0_266 = arith.constant 0 : index
    %287 = vector.load %arg37[%c0_264, %c0_265, %c0_266] : memref<2x16x4xf32, #tpu.memory_space<vmem>>, vector<1x16x4xf32>
    %288 = vector.shape_cast %287 : vector<1x16x4xf32> to vector<16x4xf32>
    %cst_267 = arith.constant dense<0.000000e+00> : vector<16x4xf32>
    %289 = tpu.matmul %286, %288, %cst_267 {dimension_numbers = #tpu.dot_dimension_numbers<[1], [0], [0], [1], [0, 0, 1, 1], [], []>} : vector<16x16xf32>, vector<16x4xf32>, vector<16x4xf32> -> vector<16x4xf32>
    %c0_268 = arith.constant 0 : index
    %c0_269 = arith.constant 0 : index
    %c0_270 = arith.constant 0 : index
    %290 = vector.load %arg38[%c0_268, %c0_269, %c0_270] : memref<2x16x4xf32, #tpu.memory_space<vmem>>, vector<1x16x4xf32>
    %291 = vector.shape_cast %290 : vector<1x16x4xf32> to vector<16x4xf32>
    %292 = vector.shape_cast %289 : vector<16x4xf32> to vector<1x16x4xf32>
    tpu.vector_store %arg38[%c0_268, %c0_269, %c0_270], %292 {strides = array<i32>} : memref<2x16x4xf32, #tpu.memory_space<vmem>>, vector<1x16x4xf32>,
    %c1_271 = arith.constant 1 : index
    %c0_272 = arith.constant 0 : index
    %c0_273 = arith.constant 0 : index
    %293 = vector.load %arg37[%c1_271, %c0_272, %c0_273] : memref<2x16x4xf32, #tpu.memory_space<vmem>>, vector<1x16x4xf32>
    %294 = vector.shape_cast %293 : vector<1x16x4xf32> to vector<16x4xf32>
    %cst_274 = arith.constant dense<0.000000e+00> : vector<16x4xf32>
    %295 = tpu.matmul %286, %294, %cst_274 {dimension_numbers = #tpu.dot_dimension_numbers<[1], [0], [0], [1], [0, 0, 1, 1], [], []>} : vector<16x16xf32>, vector<16x4xf32>, vector<16x4xf32> -> vector<16x4xf32>
    %c1_275 = arith.constant 1 : index
    %c0_276 = arith.constant 0 : index
    %c0_277 = arith.constant 0 : index
    %296 = vector.load %arg38[%c1_275, %c0_276, %c0_277] : memref<2x16x4xf32, #tpu.memory_space<vmem>>, vector<1x16x4xf32>
    %297 = vector.shape_cast %296 : vector<1x16x4xf32> to vector<16x4xf32>
    %298 = vector.shape_cast %295 : vector<16x4xf32> to vector<1x16x4xf32>
    tpu.vector_store %arg38[%c1_275, %c0_276, %c0_277], %298 {strides = array<i32>} : memref<2x16x4xf32, #tpu.memory_space<vmem>>, vector<1x16x4xf32>,
    return
  }
}

</mosaic_0001>

<bundles_post_ra>
// kernel: tidnet_features_forward.1
= control target key start
LH: loop header
LB: loop body
LE: loop exit
PB: predicated region body
PF: predicated region fallthrough
CT: control target
= control target key end

     0   :  { %v6755_v0 = vmov 0.0   ;;  %vm6756_vm0 = vmmov 0   ;;  %s6757_s6 = smov 2   ;;  %v6758_v1 = vmov 0   ;;  %s6759_s10 = smov 3   ;;  %vm170_vm1 = vcmask 1044480   ;;  %s7996_s0 = inlined_call_operand.smem [shape: u32[39], index: -1, kind: input, shape index: {}] }
   0x1   :  { %5880 = vmatprep.subr.mxu0 %v6755_v0  ;;  %s1_s5 = sld [smem:[%s7996_s0]]   ;;  %5882 = vmatprep.mubr.msk.f32.mxu0 %vm6756_vm0, %v6755_v0  ;;  %s6760_s14 = smov 5   ;;  %vm166_vm2 = vcmask 39936   ;;  %vm423_vm4 = vcmask 64512   ;;  %vm1387_vm8 = vcmask 523264   ;;  %vm5048_vm14 = vcmask 130048  }
   0x2   :  { %s5219_s9 = sld [smem:[%s7996_s0 + %s6757_s6]]   ;;  %6753 = vset.pattern.permute.xlu0 %v6758_v1  ;;  %5885 = vmatprep.subr.mxu1 %v6755_v0  ;;  %s6761_s18 = smov 11   ;;  %vm5130_vm15 = vcmask 31744  }
   0x3   :  { %s5220_s13 = sld [smem:[%s7996_s0 + %s6759_s10]]   ;;  %5917 = vmatprep.mubr.msk.f32.mxu1 %vm6756_vm0, %v6755_v0  ;;  %6754 = vset.pattern.permute.xlu1 %v6758_v1  ;;  %s6762_s22 = smov 14  }
   0x4   :  { %s5222_s17 = sld [smem:[%s7996_s0 + %s6760_s14]]   ;;  %s6763_s26 = smov 16  }
   0x5   :  { %s5228_s21 = sld [smem:[%s7996_s0 + %s6761_s18]]   ;;  %s6764_s30 = smov 6  }
   0x6   :  { %s5231_s25 = sld [smem:[%s7996_s0 + %s6762_s22]]   ;;  %s6765_s4 = smov 22  }
   0x7   :  { %v159_v2 = vld [vmem:[%s1_s5] sm:$0x1f]  ;;  %s5233_s29 = sld [smem:[%s7996_s0 + %s6763_s26]]   ;;  %s6766_s8 = smov 19  }
   0x8   :  { %5881 = vmatpush3.msk.msra.mxu0 %vm170_vm1, %v159_v2  ;;  %v158_v3 = vld [vmem:[%s5219_s9] sm:$0xff]  ;;  %s6834_s3 = sld [smem:[%s7996_s0 + %s6764_s30]]   ;;  %s6767_s12 = smov 25  }
   0x9   :  { %5883 = vmatmul.mubr.msk.f32.vlgmr.msra.gmra.mxu0 %vm166_vm2, %v158_v3  ;;  %v160_v4 = vld [vmem:[%s5220_s13] sm:$0xff]  ;;  %5920 = vmatprep.subr.mxu0 %v6755_v0  ;;  %s5239_s7 = sld [smem:[%s7996_s0 + %s6765_s4]]   ;;  %s6768_s16 = smov 27  }
   0xa   :  { %163 = vperm.xlu0 %6753, %v160_v4   ;;  %5952 = vmatprep.mubr.msk.f32.mxu0 %vm6756_vm0, %v6755_v0  ;;  %v1059_v5 = vld [vmem:[%s5222_s17] sm:$0xff]  ;;  %s5236_s11 = sld [smem:[%s7996_s0 + %s6766_s8]]   ;;  %s6769_s20 = smov 35  }
   0xb   :  { %v1264_v6 = vld [vmem:[%s5228_s21] sm:$0xff]  ;;  %s5242_s15 = sld [smem:[%s7996_s0 + %s6767_s12]]   ;;  %s6770_s24 = smov 36  }
   0xc   :  { %v1282_v7 = vld [vmem:[%s5231_s25] sm:$0xff]  ;;  %s5244_s19 = sld [smem:[%s7996_s0 + %s6768_s16]]   ;;  %s6771_s28 = smov 4  }
   0xd   :  { %v1368_v8 = vld [vmem:[%s5233_s29] sm:$0xff]  ;;  %s6871_s23 = sld [smem:[%s7996_s0 + %s6769_s20]]   ;;  %s6772_s2 = smov 7  }
   0xe   :  { %1062 = vperm.xlu0 %6753, %v1059_v5   ;;  %v263_v9 = vld [vmem:[%s6834_s3 + $0x78] sm:$0xff]  ;;  %v262_v11 = vld [vmem:[%s6834_s3 + $0x70] sm:$0xff]  ;;  %v261_v13 = vld [vmem:[%s6834_s3 + $0x68] sm:$0xff]  ;;  %s6884_s27 = sld [smem:[%s7996_s0 + %s6770_s24]]   ;;  %s6774_s10 = smov 12  }
   0xf   :  { %v5274_v10 = vld [vmem:[%s6834_s3 + $0xf8] sm:$0xff]  ;;  %5886 = vmatpush3.msra.mxu1 %v263_v9  ;;  %v5273_v12 = vld [vmem:[%s6834_s3 + $0xf0] sm:$0xff]  ;;  %v2178_v14 = vld [vmem:[%s5239_s7] sm:$0xff]  ;;  %s6935_s1 = sld [smem:[%s7996_s0 + %s6771_s28]]   ;;  %s6773_s7 = smov 8  }
  0x10   :  { %5921 = vmatpush3.msra.mxu0 %v5274_v10  ;;  %5887 = vmatprep.subr.mxu1 %v6755_v0  ;;  %v5272_v15 = vld [vmem:[%s6834_s3 + $0xe8] sm:$0xff]  ;;  %v260_v16 = vld [vmem:[%s6834_s3 + $0x60] sm:$0xff]  ;;  %v259_v19 = vld [vmem:[%s6834_s3 + $0x58] sm:$0xff]  ;;  %s5224_s6 = sld [smem:[%s7996_s0 + %s6772_s2]]   ;;  %s6775_s14 = smov 15  }
  0x11   :  { %5922 = vmatprep.subr.mxu0 %v6755_v0  ;;  %5888 = vmatpush3.msra.mxu1 %v262_v11  ;;  %v5271_v17 = vld [vmem:[%s6834_s3 + $0xe0] sm:$0xff]  ;;  %v5270_v20 = vld [vmem:[%s6834_s3 + $0xd8] sm:$0xff]  ;;  %v258_v21 = vld [vmem:[%s6834_s3 + $0x50] sm:$0xff]  ;;  %s5229_s13 = sld [smem:[%s7996_s0 + %s6774_s10]]   ;;  %s6776_s18 = smov 18  }
  0x12   :  { %1267 = vperm.xlu0 %6753, %v1264_v6   ;;  %5923 = vmatpush3.msra.mxu0 %v5273_v12  ;;  %v2160_v18 = vld [vmem:[%s5236_s11] sm:$0xff]  ;;  %v5269_v22 = vld [vmem:[%s6834_s3 + $0xd0] sm:$0xff]  ;;  %v257_v24 = vld [vmem:[%s6834_s3 + $0x48] sm:$0xff]  ;;  %s5232_s17 = sld [smem:[%s7996_s0 + %s6775_s14]]   ;;  %s6777_s22 = smov 23  }
  0x13   :  { %5889 = vmatprep.subr.mxu1 %v6755_v0  ;;  %5924 = vmatprep.subr.mxu0 %v6755_v0  ;;  %v2342_v23 = vld [vmem:[%s5242_s15] sm:$0xff]  ;;  %v5268_v25 = vld [vmem:[%s6834_s3 + $0xc8] sm:$0xff]  ;;  %v255_v29 = vld [vmem:[%s6834_s3 + $0x38] sm:$0xff]  ;;  %s5235_s21 = sld [smem:[%s7996_s0 + %s6776_s18]]   ;;  %s6778_s28 = smov 20  }
  0x14   :  { %5890 = vmatpush3.msra.mxu1 %v261_v13  ;;  %5925 = vmatpush3.msra.mxu0 %v5272_v15  ;;  %v256_v26 = vld [vmem:[%s6834_s3 + $0x40] sm:$0xff]  ;;  %v5266_v30 = vld [vmem:[%s6834_s3 + $0xb8] sm:$0xff]  ;;  %v254_v31 = vld [vmem:[%s6834_s3 + $0x30] sm:$0xff]  ;;  %s5240_s26 = sld [smem:[%s7996_s0 + %s6777_s22]]   ;;  %s6779_s4 = smov 10  }
  0x15   :  { %5891 = vmatprep.subr.mxu1 %v6755_v0  ;;  %5926 = vmatprep.subr.mxu0 %v6755_v0  ;;  %v5267_v27 = vld [vmem:[%s6834_s3 + $0xc0] sm:$0xff]  ;;  %v5265_v33 = vld [vmem:[%s6834_s3 + $0xb0] sm:$0xff]  ;;  %v253_v34 = vld [vmem:[%s6834_s3 + $0x28] sm:$0xff]  ;;  %s5237_s2 = sld [smem:[%s7996_s0 + %s6778_s28]]   ;;  %s6780_s8 = smov 26  }
  0x16   :  { %1285 = vperm.xlu0 %6753, %v1282_v7   ;;  %5892 = vmatpush3.msra.mxu1 %v260_v16  ;;  %v2356_v28 = vld [vmem:[%s5244_s19] sm:$0xff]  ;;  %v5264_v35 = vld [vmem:[%s6834_s3 + $0xa8] sm:$0xff]  ;;  %v251_v39 = vld [vmem:[%s6834_s3 + $0x18] sm:$0xff]  ;;  %s5243_s10 = sld [smem:[%s7996_s0 + %s6780_s8]]   ;;  %s6781_s11 = smov 29  }
  0x17   :  { %5927 = vmatpush3.msra.mxu0 %v5271_v17  ;;  %5893 = vmatprep.subr.mxu1 %v6755_v0  ;;  %v5018_v32 = vld [vmem:[%s6871_s23] sm:$0xff]  ;;  %v5262_v40 = vld [vmem:[%s6834_s3 + $0x98] sm:$0xff]  ;;  %v250_v41 = vld [vmem:[%s6834_s3 + $0x10] sm:$0xff]  ;;  %s5246_s14 = sld [smem:[%s7996_s0 + %s6781_s11]]   ;;  %s6784_s20 = smov 13  }
  0x18   :  { %5928 = vmatprep.subr.mxu0 %v6755_v0  ;;  %5894 = vmatpush3.msra.mxu1 %v259_v19  ;;  %v5032_v36 = vld [vmem:[%s6884_s27] sm:$0xff]  ;;  %v5261_v42 = vld [vmem:[%s6834_s3 + $0x90] sm:$0xff]  ;;  %v249_v43 = vld [vmem:[%s6834_s3 + $0x8] sm:$0xff]  ;;  %s5230_s24 = sld [smem:[%s7996_s0 + %s6784_s20]]   ;;  %s6785_s25 = smov 30  }
  0x19   :  { %5929 = vmatpush3.msra.mxu0 %v5270_v20  ;;  %5895 = vmatprep.subr.mxu1 %v6755_v0  ;;  %v252_v37 = vld [vmem:[%s6834_s3 + $0x20] sm:$0xff]  ;;  %v5260_v44 = vld [vmem:[%s6834_s3 + $0x88] sm:$0xff]  ;;  %v5293_v57 = vld [vmem:[%s6834_s3 + $0x178] sm:$0xff]  ;;  %s7191_s29 = sld [smem:[%s7996_s0 + %s6785_s25]]   ;;  %s6786_s30 = smov 17  }
  0x1a   :  { %1371 = vperm.xlu0 %6753, %v1368_v8   ;;  %5930 = vmatprep.subr.mxu0 %v6755_v0  ;;  %v5263_v38 = vld [vmem:[%s6834_s3 + $0xa0] sm:$0xff]  ;;  %v5258_v53 = vld [vmem:[%s6935_s1 + $0x8] sm:$0xff]  ;;  %v5292_v60 = vld [vmem:[%s6834_s3 + $0x170] sm:$0xff]  ;;  %s7291_s5 = sld [smem:[%s7996_s0 + %s6786_s30]]   ;;  %s6790_s16 = smov 31  }
  0x1b   :  { %5896 = vmatpush3.msra.mxu1 %v258_v21  ;;  %5931 = vmatpush3.msra.mxu0 %v5269_v22  ;;  %v248_v45 = vld [vmem:[%s6834_s3] sm:$0xff]  ;;  %v5291_v61 = vld [vmem:[%s6834_s3 + $0x168] sm:$0xff]  ;;  %v5289_v63 = vld [vmem:[%s6834_s3 + $0x158] sm:$0xff]  ;;  %s6791_s18 = smov 33   ;;  %s6792_s22 = smov 32  }
  0x1c   :  { %5897 = vmatprep.subr.mxu1 %v6755_v0  ;;  %5932 = vmatprep.subr.mxu0 %v6755_v0  ;;  %v5259_v46 = vld [vmem:[%s6834_s3 + $0x80] sm:$0xff]  ;;  %v5288_v1 = vld [vmem:[%s6834_s3 + $0x150] sm:$0xff]  ;;  %v5287_v2 = vld [vmem:[%s6834_s3 + $0x148] sm:$0xff]  ;;  %s6793_s28 = smov 34   ;;  %s6795_s8 = smov 38  }
  0x1d   :  { %5898 = vmatpush3.msra.mxu1 %v257_v24  ;;  %5933 = vmatpush3.msra.mxu0 %v5268_v25  ;;  %v247_v56 = vld [vmem:[%s6935_s1] sm:$0xff]  ;;  %v5285_v4 = vld [vmem:[%s6834_s3 + $0x138] sm:$0xff]  ;;  %v5284_v5 = vld [vmem:[%s6834_s3 + $0x130] sm:$0xff] }
  0x1e   :  { %2181 = vperm.xlu0 %6753, %v2178_v14   ;;  %5899 = vmatprep.subr.mxu1 %v6755_v0  ;;  %v5290_v62 = vld [vmem:[%s6834_s3 + $0x160] sm:$0xff]  ;;  %v5283_v6 = vld [vmem:[%s6834_s3 + $0x128] sm:$0xff]  ;;  %v5281_v8 = vld [vmem:[%s6834_s3 + $0x118] sm:$0xff] }
  0x1f   :  { %5934 = vmatprep.subr.mxu0 %v6755_v0  ;;  %5900 = vmatpush3.msra.mxu1 %v256_v26  ;;  %v5286_v3 = vld [vmem:[%s6834_s3 + $0x140] sm:$0xff]  ;;  %v5280_v9 = vld [vmem:[%s6834_s3 + $0x110] sm:$0xff]  ;;  %v5279_v10 = vld [vmem:[%s6834_s3 + $0x108] sm:$0xff] }
  0x20   :  { %5935 = vmatpush3.msra.mxu0 %v5267_v27  ;;  %5901 = vmatprep.subr.mxu1 %v6755_v0  ;;  %v5282_v7 = vld [vmem:[%s6834_s3 + $0x120] sm:$0xff]  ;;  %v5277_v17 = vld [vmem:[%s6935_s1 + $0x10] sm:$0xff]  ;;  %v5311_v19 = vld [vmem:[%s6834_s3 + $0x1f8] sm:$0xff] }
  0x21   :  { %5936 = vmatprep.subr.mxu0 %v6755_v0  ;;  %5902 = vmatpush3.msra.mxu1 %v255_v29  ;;  %v5278_v11 = vld [vmem:[%s6834_s3 + $0x100] sm:$0xff]  ;;  %v5310_v21 = vld [vmem:[%s6834_s3 + $0x1f0] sm:$0xff]  ;;  %v5309_v22 = vld [vmem:[%s6834_s3 + $0x1e8] sm:$0xff] }
  0x22   :  { %2163 = vperm.xlu0 %6753, %v2160_v18   ;;  %5937 = vmatpush3.msra.mxu0 %v5266_v30  ;;  %v5307_v24 = vld [vmem:[%s6834_s3 + $0x1d8] sm:$0xff]  ;;  %v5306_v25 = vld [vmem:[%s6834_s3 + $0x1d0] sm:$0xff]  ;;  %v5305_v26 = vld [vmem:[%s6834_s3 + $0x1c8] sm:$0xff] }
  0x23   :  { %5903 = vmatprep.subr.mxu1 %v6755_v0  ;;  %5938 = vmatprep.subr.mxu0 %v6755_v0  ;;  %v5304_v27 = vld [vmem:[%s6834_s3 + $0x1c0] sm:$0xff]  ;;  %v5302_v29 = vld [vmem:[%s6834_s3 + $0x1b0] sm:$0xff]  ;;  %v5301_v30 = vld [vmem:[%s6834_s3 + $0x1a8] sm:$0xff] }
  0x24   :  { %5904 = vmatpush3.msra.mxu1 %v254_v31  ;;  %5939 = vmatpush3.msra.mxu0 %v5265_v33  ;;  %v5300_v31 = vld [vmem:[%s6834_s3 + $0x1a0] sm:$0xff]  ;;  %v5298_v33 = vld [vmem:[%s6834_s3 + $0x190] sm:$0xff] }
  0x25   :  { %5905 = vmatprep.subr.mxu1 %v6755_v0  ;;  %5940 = vmatprep.subr.mxu0 %v6755_v0 }
  0x26   :  { %2345 = vperm.xlu0 %6753, %v2342_v23   ;;  %5906 = vmatpush3.msra.mxu1 %v253_v34  ;;  %v5308_v23 = vld [vmem:[%s6834_s3 + $0x1e0] sm:$0xff]  ;;  %v5297_v34 = vld [vmem:[%s6834_s3 + $0x188] sm:$0xff] }
  0x27   :  { %5941 = vmatpush3.msra.mxu0 %v5264_v35  ;;  %5907 = vmatprep.subr.mxu1 %v6755_v0  ;;  %v5296_v35 = vld [vmem:[%s6834_s3 + $0x180] sm:$0xff] }
  0x28   :  { %5942 = vmatprep.subr.mxu0 %v6755_v0  ;;  %5908 = vmatpush3.msra.mxu1 %v252_v37 }
  0x29   :  { %5943 = vmatpush3.msra.mxu0 %v5263_v38  ;;  %5909 = vmatprep.subr.mxu1 %v6755_v0 }
  0x2a   :  { %2359 = vperm.xlu0 %6753, %v2356_v28   ;;  %5944 = vmatprep.subr.mxu0 %v6755_v0  ;;  %v5303_v28 = vld [vmem:[%s6834_s3 + $0x1b8] sm:$0xff] }
  0x2b   :  { %5910 = vmatpush3.msra.mxu1 %v251_v39  ;;  %5945 = vmatpush3.msra.mxu0 %v5262_v40  ;;  %v5295_v39 = vld [vmem:[%s6935_s1 + $0x18] sm:$0xff] }
  0x2c   :  { %5911 = vmatprep.subr.mxu1 %v6755_v0  ;;  %5946 = vmatprep.subr.mxu0 %v6755_v0 }
  0x2d   :  { %5912 = vmatpush3.msra.mxu1 %v250_v41  ;;  %5947 = vmatpush3.msra.mxu0 %v5261_v42  ;;  %v5329_v41 = vld [vmem:[%s6834_s3 + $0x278] sm:$0xff] }
  0x2e   :  { %5022 = vperm.xlu0 %6753, %v5018_v32   ;;  %5913 = vmatprep.subr.mxu1 %v6755_v0  ;;  %v5299_v32 = vld [vmem:[%s6834_s3 + $0x198] sm:$0xff] }
  0x2f   :  { %5948 = vmatprep.subr.mxu0 %v6755_v0  ;;  %5914 = vmatpush3.msra.mxu1 %v249_v43  ;;  %v5328_v43 = vld [vmem:[%s6834_s3 + $0x270] sm:$0xff] }
  0x30   :  { %5949 = vmatpush3.msra.mxu0 %v5260_v44  ;;  %5915 = vmatprep.subr.mxu1 %v6755_v0  ;;  %v5327_v44 = vld [vmem:[%s6834_s3 + $0x268] sm:$0xff] }
  0x31   :  { %5950 = vmatprep.subr.mxu0 %v6755_v0  ;;  %5916 = vmatpush3.msra.mxu1 %v248_v45  ;;  %v5326_v45 = vld [vmem:[%s6834_s3 + $0x260] sm:$0xff] }
  0x32   :  { %5036 = vperm.xlu0 %6753, %v5032_v36   ;;  %5951 = vmatpush3.msra.mxu0 %v5259_v46  ;;  %v5325_v46 = vld [vmem:[%s6834_s3 + $0x258] sm:$0xff] }
  0x33   :  { %5955 = vmatprep.subr.mxu1 %v6755_v0  ;;  %5960 = vmatprep.subr.mxu0 %v6755_v0 }
  0x85   :  { %v164_v47 = vpop.permute.xlu0 %163 }
  0xc9   :  { %v240_v48 = vpop.f32.mrf.mxu0 }
  0xca   :  { %v241_v49 = vadd.f32 %v240_v48, %v164_v47  ;;  %v5324_v47 = vld [vmem:[%s6834_s3 + $0x250] sm:$0xff]  ;;  %v5323_v48 = vld [vmem:[%s6834_s3 + $0x248] sm:$0xff] }
  0xcb   :  { %v5884_v50 = vpop.f32.mrf.mxu0 }
  0xcc   :  { %vm244_vm3 = vcmp.ge.f32.partialorder %v241_v49, 0.0  ;;  %v245_v51 = vmul.f32 0.01, %v241_v49  ;;  %v5321_v50 = vld [vmem:[%s6834_s3 + $0x238] sm:$0xff] }
  0xce   :  { %v6924_v52 = vsel %vm244_vm3, %v241_v49, %v245_v51  ;;  %v5322_v49 = vld [vmem:[%s6834_s3 + $0x240] sm:$0xff]  ;;  %v5320_v51 = vld [vmem:[%s6834_s3 + $0x230] sm:$0xff] }
  0xcf   :  { %5918 = vmatmul.mubr.f32.vlgmr.msra.gmra.mxu1 %v6924_v52  ;;  %5953 = vmatmul.mubr.f32.vlgmr.msra.gmra.mxu0 %v6924_v52 }
  0xd0   :  { %5957 = vmatprep.mubr.msk.f32.mxu1 %vm6756_vm0, %v6755_v0  ;;  %5962 = vmatprep.mubr.msk.f32.mxu0 %vm6756_vm0, %v6755_v0 }
 0x18f   :  { %v330_v54 = vpop.f32.mrf.mxu1  ;;  %v419_v55 = vpop.f32.mrf.mxu0 }
 0x190   :  { %5956 = vmatpush3.msra.mxu1 %v419_v55  ;;  %5961 = vmatpush3.msra.mxu0 %v330_v54  ;;  %v5318_v54 = vld [vmem:[%s6834_s3 + $0x220] sm:$0xff]  ;;  %v5317_v55 = vld [vmem:[%s6834_s3 + $0x218] sm:$0xff] }
 0x191   :  { %v5919_v58 = vpop.f32.mrf.mxu1  ;;  %v5954_v59 = vpop.f32.mrf.mxu0  ;;  %5958 = vmatmul.mubr.msk.f32.vlgmr.msra.gmra.mxu1 %vm423_vm4, %v5258_v53  ;;  %5965 = vmatprep.subr.mxu1 %v6755_v0  ;;  %v5319_v53 = vld [vmem:[%s6834_s3 + $0x228] sm:$0xff] }
 0x192   :  { %5963 = vmatmul.mubr.msk.f32.vlgmr.msra.gmra.mxu0 %vm423_vm4, %v247_v56  ;;  %5966 = vmatpush3.msra.mxu1 %v5293_v57  ;;  %v5316_v56 = vld [vmem:[%s6834_s3 + $0x210] sm:$0xff]  ;;  %v5315_v57 = vld [vmem:[%s6834_s3 + $0x208] sm:$0xff]  ;;  %v5314_v58 = vld [vmem:[%s6834_s3 + $0x200] sm:$0xff]  ;;  %s5225_s3 = sld [smem:[%s7996_s0 + %s6773_s7]]  }
 0x193   :  { %5967 = vmatprep.subr.mxu1 %v6755_v0  ;;  %5997 = vmatprep.mubr.msk.f32.mxu1 %vm6756_vm0, %v6755_v0  ;;  %s7088_s7 = sld [smem:[%s7996_s0 + %s6779_s4]]   ;;  %s6794_s4 = smov 37  }
 0x194   :  { %5968 = vmatpush3.msra.mxu1 %v5292_v60  ;;  %6000 = vmatprep.subr.mxu0 %v6755_v0  ;;  %v1271_v60 = vld [vmem:[%s5229_s13] sm:$0xff]  ;;  %s6789_s13 = smov 28  }
 0x195   :  { %5969 = vmatprep.subr.mxu1 %v6755_v0  ;;  %6002 = vmatprep.mubr.msk.f32.mxu0 %vm6756_vm0, %v6755_v0  ;;  %s7513_s15 = sld [smem:[%s7996_s0 + %s6789_s13]]  }
 0x196   :  { %5970 = vmatpush3.msra.mxu1 %v5291_v61  ;;  %v1361_v61 = vld [vmem:[%s5232_s17] sm:$0xff]  ;;  %s7584_s17 = sld [smem:[%s7996_s0 + %s6790_s16]]  }
 0x197   :  { %5971 = vmatprep.subr.mxu1 %v6755_v0 }
 0x198   :  { %5972 = vmatpush3.msra.mxu1 %v5290_v62  ;;  %v1083_v59 = vld [vmem:[%s5225_s3] sm:$0xff]  ;;  %s6788_s3 = smov 21  }
 0x199   :  { %5973 = vmatprep.subr.mxu1 %v6755_v0  ;;  %v2153_v62 = vld [vmem:[%s5235_s21] sm:$0xff]  ;;  %s5238_s12 = sld [smem:[%s7996_s0 + %s6788_s3]]  }
 0x19a   :  { %5974 = vmatpush3.msra.mxu1 %v5289_v63  ;;  %v2185_v63 = vld [vmem:[%s5240_s26] sm:$0xff]  ;;  %s7666_s21 = sld [smem:[%s7996_s0 + %s6791_s18]]  }
 0x19b   :  { %5975 = vmatprep.subr.mxu1 %v6755_v0  ;;  %s7674_s26 = sld [smem:[%s7996_s0 + %s6792_s22]]  }
 0x19c   :  { %5976 = vmatpush3.msra.mxu1 %v5288_v1  ;;  %v1192_v1 = vld [vmem:[%s7088_s7 + $0x78] sm:$0xff] }
 0x19d   :  { %5977 = vmatprep.subr.mxu1 %v6755_v0 }
 0x19e   :  { %5978 = vmatpush3.msra.mxu1 %v5287_v2  ;;  %v1191_v2 = vld [vmem:[%s7088_s7 + $0x70] sm:$0xff] }
 0x19f   :  { %5979 = vmatprep.subr.mxu1 %v6755_v0 }
 0x1a0   :  { %5980 = vmatpush3.msra.mxu1 %v5286_v3  ;;  %v2167_v3 = vld [vmem:[%s5237_s2] sm:$0xff]  ;;  %s7706_s2 = sld [smem:[%s7996_s0 + %s6793_s28]]  }
 0x1a1   :  { %5981 = vmatprep.subr.mxu1 %v6755_v0 }
 0x1a2   :  { %5982 = vmatpush3.msra.mxu1 %v5285_v4  ;;  %v1190_v4 = vld [vmem:[%s7088_s7 + $0x68] sm:$0xff] }
 0x1a3   :  { %5983 = vmatprep.subr.mxu1 %v6755_v0 }
 0x1a4   :  { %5984 = vmatpush3.msra.mxu1 %v5284_v5  ;;  %v1189_v5 = vld [vmem:[%s7088_s7 + $0x60] sm:$0xff] }
 0x1a5   :  { %5985 = vmatprep.subr.mxu1 %v6755_v0 }
 0x1a6   :  { %5986 = vmatpush3.msra.mxu1 %v5283_v6  ;;  %v2349_v6 = vld [vmem:[%s5243_s10] sm:$0xff]  ;;  %s5255_s10 = sld [smem:[%s7996_s0 + %s6795_s8]]  }
 0x1a7   :  { %5987 = vmatprep.subr.mxu1 %v6755_v0 }
 0x1a8   :  { %5988 = vmatpush3.msra.mxu1 %v5282_v7  ;;  %v1188_v7 = vld [vmem:[%s7088_s7 + $0x58] sm:$0xff] }
 0x1a9   :  { %5989 = vmatprep.subr.mxu1 %v6755_v0 }
 0x1aa   :  { %5990 = vmatpush3.msra.mxu1 %v5281_v8  ;;  %v1187_v8 = vld [vmem:[%s7088_s7 + $0x50] sm:$0xff] }
 0x1ab   :  { %5991 = vmatprep.subr.mxu1 %v6755_v0 }
 0x1ac   :  { %5992 = vmatpush3.msra.mxu1 %v5280_v9  ;;  %v3096_v9 = vld [vmem:[%s5246_s14] sm:$0xff] }
 0x1ad   :  { %5993 = vmatprep.subr.mxu1 %v6755_v0 }
 0x1ae   :  { %5994 = vmatpush3.msra.mxu1 %v5279_v10  ;;  %v1186_v10 = vld [vmem:[%s7088_s7 + $0x48] sm:$0xff] }
 0x1af   :  { %5995 = vmatprep.subr.mxu1 %v6755_v0 }
 0x1b0   :  { %5996 = vmatpush3.msra.mxu1 %v5278_v11  ;;  %v1185_v11 = vld [vmem:[%s7088_s7 + $0x40] sm:$0xff] }
 0x1b1   :  { %5998 = vmatmul.mubr.f32.vlgmr.msra.gmra.mxu1 %v6924_v52  ;;  %6040 = vmatprep.subr.mxu1 %v6755_v0 }
 0x1b2   :  { %6042 = vmatprep.mubr.msk.f32.mxu1 %vm6756_vm0, %v6755_v0 }
 0x251   :  { %v493_v12 = vpop.f32.mrf.mxu1 }
 0x252   :  { %v566_v13 = vpop.f32.mrf.mxu0 }
 0x253   :  { %v567_v14 = vadd.f32 %v566_v13, %v493_v12  ;;  %v5959_v15 = vpop.f32.mrf.mxu1  ;;  %v5019_v12 = vld [vmem:[%s6871_s23 + $0x8] sm:$0xff]  ;;  %v1184_v13 = vld [vmem:[%s7088_s7 + $0x38] sm:$0xff]  ;;  %s6782_s23 = smov 9  }
 0x254   :  { %v5964_v16 = vpop.f32.mrf.mxu0  ;;  %v5033_v15 = vld [vmem:[%s6884_s27 + $0x8] sm:$0xff]  ;;  %s7126_s27 = sld [smem:[%s7996_s0 + %s6782_s23]]  }
 0x255   :  { %v1182_v16 = vld [vmem:[%s7088_s7 + $0x28] sm:$0xff] }
 0x271   :  { %v655_v18 = vpop.f32.mrf.mxu1 }
 0x272   :  { %6001 = vmatpush3.msra.mxu0 %v655_v18 }
 0x273   :  { %v5999_v20 = vpop.f32.mrf.mxu1  ;;  %6003 = vmatmul.mubr.msk.f32.vlgmr.msra.gmra.mxu0 %vm423_vm4, %v5277_v17  ;;  %6005 = vmatprep.subr.mxu0 %v6755_v0 }
 0x274   :  { %6006 = vmatpush3.msra.mxu0 %v5311_v19  ;;  %6037 = vmatprep.mubr.msk.f32.mxu0 %vm6756_vm0, %v6755_v0  ;;  %v5313_v20 = vld [vmem:[%s6935_s1 + $0x20] sm:$0xff]  ;;  %s6783_s1 = smov 1  }
 0x275   :  { %6007 = vmatprep.subr.mxu0 %v6755_v0  ;;  %s5218_s19 = sld [smem:[%s7996_s0 + %s6783_s1]]  }
 0x276   :  { %6008 = vmatpush3.msra.mxu0 %v5310_v21 }
 0x277   :  { %6009 = vmatprep.subr.mxu0 %v6755_v0 }
 0x278   :  { %6010 = vmatpush3.msra.mxu0 %v5309_v22  ;;  %v1106_v22 = vld [vmem:[%s7126_s27 + $0x78] sm:$0xff] }
 0x279   :  { %6011 = vmatprep.subr.mxu0 %v6755_v0 }
 0x27a   :  { %6012 = vmatpush3.msra.mxu0 %v5308_v23 }
 0x27b   :  { %6013 = vmatprep.subr.mxu0 %v6755_v0 }
 0x27c   :  { %6014 = vmatpush3.msra.mxu0 %v5307_v24  ;;  %v1105_v24 = vld [vmem:[%s7126_s27 + $0x70] sm:$0xff] }
 0x27d   :  { %6015 = vmatprep.subr.mxu0 %v6755_v0 }
 0x27e   :  { %6016 = vmatpush3.msra.mxu0 %v5306_v25  ;;  %v1104_v25 = vld [vmem:[%s7126_s27 + $0x68] sm:$0xff] }
 0x27f   :  { %6017 = vmatprep.subr.mxu0 %v6755_v0 }
 0x280   :  { %6018 = vmatpush3.msra.mxu0 %v5305_v26  ;;  %v1103_v26 = vld [vmem:[%s7126_s27 + $0x60] sm:$0xff] }
 0x281   :  { %6019 = vmatprep.subr.mxu0 %v6755_v0 }
 0x282   :  { %6020 = vmatpush3.msra.mxu0 %v5304_v27  ;;  %v1102_v27 = vld [vmem:[%s7126_s27 + $0x58] sm:$0xff] }
 0x283   :  { %6021 = vmatprep.subr.mxu0 %v6755_v0 }
 0x284   :  { %6022 = vmatpush3.msra.mxu0 %v5303_v28  ;;  %v1101_v28 = vld [vmem:[%s7126_s27 + $0x50] sm:$0xff] }
 0x285   :  { %6023 = vmatprep.subr.mxu0 %v6755_v0 }
 0x286   :  { %6024 = vmatpush3.msra.mxu0 %v5302_v29  ;;  %v1100_v29 = vld [vmem:[%s7126_s27 + $0x48] sm:$0xff] }
 0x287   :  { %6025 = vmatprep.subr.mxu0 %v6755_v0 }
 0x288   :  { %6026 = vmatpush3.msra.mxu0 %v5301_v30  ;;  %v1099_v30 = vld [vmem:[%s7126_s27 + $0x40] sm:$0xff] }
 0x289   :  { %6027 = vmatprep.subr.mxu0 %v6755_v0 }
 0x28a   :  { %6028 = vmatpush3.msra.mxu0 %v5300_v31  ;;  %v1098_v31 = vld [vmem:[%s7126_s27 + $0x38] sm:$0xff] }
 0x28b   :  { %6029 = vmatprep.subr.mxu0 %v6755_v0 }
 0x28c   :  { %6030 = vmatpush3.msra.mxu0 %v5299_v32  ;;  %v1097_v32 = vld [vmem:[%s7126_s27 + $0x30] sm:$0xff] }
 0x28d   :  { %6031 = vmatprep.subr.mxu0 %v6755_v0 }
 0x28e   :  { %6032 = vmatpush3.msra.mxu0 %v5298_v33  ;;  %v1096_v33 = vld [vmem:[%s7126_s27 + $0x28] sm:$0xff] }
 0x28f   :  { %6033 = vmatprep.subr.mxu0 %v6755_v0 }
 0x290   :  { %6034 = vmatpush3.msra.mxu0 %v5297_v34  ;;  %v1095_v34 = vld [vmem:[%s7126_s27 + $0x20] sm:$0xff] }
 0x291   :  { %6035 = vmatprep.subr.mxu0 %v6755_v0 }
 0x292   :  { %6036 = vmatpush3.msra.mxu0 %v5296_v35  ;;  %v1181_v35 = vld [vmem:[%s7088_s7 + $0x20] sm:$0xff] }
 0x293   :  { %6038 = vmatmul.mubr.f32.vlgmr.msra.gmra.mxu0 %v6924_v52  ;;  %6080 = vmatprep.subr.mxu0 %v6755_v0 }
 0x294   :  { %6082 = vmatprep.mubr.msk.f32.mxu0 %vm6756_vm0, %v6755_v0 }
 0x333   :  { %v728_v36 = vpop.f32.mrf.mxu0 }
 0x334   :  { %v7022_v37 = vadd.f32 %v728_v36, %v567_v14  ;;  %v1183_v14 = vld [vmem:[%s7088_s7 + $0x30] sm:$0xff]  ;;  %v1094_v36 = vld [vmem:[%s7126_s27 + $0x18] sm:$0xff] }
 0x335   :  { %v6004_v38 = vpop.f32.mrf.mxu0 }
 0x336   :  { %v1093_v38 = vld [vmem:[%s7126_s27 + $0x10] sm:$0xff] }
 0x353   :  { %v818_v40 = vpop.f32.mrf.mxu0 }
 0x354   :  { %6041 = vmatpush3.msra.mxu1 %v818_v40  ;;  %v1092_v40 = vld [vmem:[%s7126_s27 + $0x8] sm:$0xff] }
 0x355   :  { %v6039_v42 = vpop.f32.mrf.mxu0  ;;  %6043 = vmatmul.mubr.msk.f32.vlgmr.msra.gmra.mxu1 %vm423_vm4, %v5295_v39  ;;  %6045 = vmatprep.subr.mxu1 %v6755_v0  ;;  %v1179_v39 = vld [vmem:[%s7088_s7 + $0x10] sm:$0xff] }
 0x356   :  { %6046 = vmatpush3.msra.mxu1 %v5329_v41  ;;  %6077 = vmatprep.mubr.msk.f32.mxu1 %vm6756_vm0, %v6755_v0  ;;  %v1178_v41 = vld [vmem:[%s7088_s7 + $0x8] sm:$0xff]  ;;  %v1091_v42 = vld [vmem:[%s7126_s27] sm:$0xff] }
 0x357   :  { %6047 = vmatprep.subr.mxu1 %v6755_v0 }
 0x358   :  { %6048 = vmatpush3.msra.mxu1 %v5328_v43  ;;  %v1177_v43 = vld [vmem:[%s7088_s7] sm:$0xff] }
 0x359   :  { %6049 = vmatprep.subr.mxu1 %v6755_v0 }
 0x35a   :  { %6050 = vmatpush3.msra.mxu1 %v5327_v44 }
 0x35b   :  { %6051 = vmatprep.subr.mxu1 %v6755_v0 }
 0x35c   :  { %6052 = vmatpush3.msra.mxu1 %v5326_v45  ;;  %v5331_v45 = vld [vmem:[%s5218_s19] ss:$0 sm:$0xff] }
 0x35d   :  { %6053 = vmatprep.subr.mxu1 %v6755_v0 }
 0x35e   :  { %6054 = vmatpush3.msra.mxu1 %v5325_v46 }
 0x35f   :  { %6055 = vmatprep.subr.mxu1 %v6755_v0 }
 0x360   :  { %6056 = vmatpush3.msra.mxu1 %v5324_v47 }
 0x361   :  { %6057 = vmatprep.subr.mxu1 %v6755_v0 }
 0x362   :  { %6058 = vmatpush3.msra.mxu1 %v5323_v48  ;;  %v1063_v48 = vpop.permute.xlu0 %1062 }
 0x363   :  { %6059 = vmatprep.subr.mxu1 %v6755_v0 }
 0x364   :  { %6060 = vmatpush3.msra.mxu1 %v5322_v49 }
 0x365   :  { %6061 = vmatprep.subr.mxu1 %v6755_v0 }
 0x366   :  { %6062 = vmatpush3.msra.mxu1 %v5321_v50 }
 0x367   :  { %6063 = vmatprep.subr.mxu1 %v6755_v0 }
 0x368   :  { %6064 = vmatpush3.msra.mxu1 %v5320_v51 }
 0x369   :  { %6065 = vmatprep.subr.mxu1 %v6755_v0 }
 0x36a   :  { %6066 = vmatpush3.msra.mxu1 %v5319_v53 }
 0x36b   :  { %6067 = vmatprep.subr.mxu1 %v6755_v0 }
 0x36c   :  { %6068 = vmatpush3.msra.mxu1 %v5318_v54 }
 0x36d   :  { %6069 = vmatprep.subr.mxu1 %v6755_v0 }
 0x36e   :  { %6070 = vmatpush3.msra.mxu1 %v5317_v55 }
 0x36f   :  { %6071 = vmatprep.subr.mxu1 %v6755_v0 }
 0x370   :  { %6072 = vmatpush3.msra.mxu1 %v5316_v56 }
 0x371   :  { %6073 = vmatprep.subr.mxu1 %v6755_v0 }
 0x372   :  { %6074 = vmatpush3.msra.mxu1 %v5315_v57 }
 0x373   :  { %6075 = vmatprep.subr.mxu1 %v6755_v0 }
 0x374   :  { %6076 = vmatpush3.msra.mxu1 %v5314_v58 }
 0x375   :  { %6078 = vmatmul.mubr.f32.vlgmr.msra.gmra.mxu1 %v6924_v52  ;;  %6120 = vmatprep.subr.mxu1 %v6755_v0  ;;  %v1069_v52 = vld [vmem:[%s5224_s6] sm:$0xff]  ;;  %s6787_s6 = smov 24  }
 0x376   :  { %6152 = vmatprep.mubr.msk.f32.mxu1 %vm6756_vm0, %v6755_v0  ;;  %1073 = vperm.xlu1 %6754, %v1069_v52   ;;  %s5241_s9 = sld [smem:[%s7996_s0 + %s6787_s6]]  }
 0x377   :  { %6121 = vmatpush3.msra.mxu1 %v1192_v1 }
 0x378   :  { %6122 = vmatprep.subr.mxu1 %v6755_v0 }
 0x379   :  { %6123 = vmatpush3.msra.mxu1 %v1191_v2 }
 0x37a   :  { %1086 = vperm.xlu1 %6754, %v1083_v59   ;;  %6124 = vmatprep.subr.mxu1 %v6755_v0  ;;  %v1268_v59 = vpop.permute.xlu0 %1267 }
 0x37b   :  { %6125 = vmatpush3.msra.mxu1 %v1190_v4  ;;  %v1281_v4 = vld [vmem:[%s5230_s24] sm:$0xff] }
 0x37c   :  { %6126 = vmatprep.subr.mxu1 %v6755_v0 }
 0x37d   :  { %6127 = vmatpush3.msra.mxu1 %v1189_v5 }
 0x37e   :  { %1274 = vperm.xlu1 %6754, %v1271_v60   ;;  %6128 = vmatprep.subr.mxu1 %v6755_v0 }
 0x37f   :  { %6129 = vmatpush3.msra.mxu1 %v1188_v7  ;;  %v7200_v7 = vld [vmem:[%s7191_s29 + $0x30] sm:$0xff] }
 0x380   :  { %6130 = vmatprep.subr.mxu1 %v6755_v0 }
 0x381   :  { %6131 = vmatpush3.msra.mxu1 %v1187_v8  ;;  %v7207_v8 = vld [vmem:[%s7191_s29 + $0x28] sm:$0xff] }
 0x382   :  { %1364 = vperm.xlu1 %6754, %v1361_v61   ;;  %6132 = vmatprep.subr.mxu1 %v6755_v0 }
 0x383   :  { %6133 = vmatpush3.msra.mxu1 %v1186_v10  ;;  %v7219_v10 = vld [vmem:[%s7191_s29 + $0x18] sm:$0xff] }
 0x384   :  { %6134 = vmatprep.subr.mxu1 %v6755_v0 }
 0x385   :  { %6135 = vmatpush3.msra.mxu1 %v1185_v11  ;;  %v7224_v11 = vld [vmem:[%s7191_s29 + $0x10] sm:$0xff] }
 0x386   :  { %2156 = vperm.xlu1 %6754, %v2153_v62   ;;  %6136 = vmatprep.subr.mxu1 %v6755_v0 }
 0x387   :  { %6137 = vmatpush3.msra.mxu1 %v1184_v13  ;;  %v7234_v13 = vld [vmem:[%s7191_s29] sm:$0xff] }
 0x388   :  { %6138 = vmatprep.subr.mxu1 %v6755_v0 }
 0x389   :  { %6139 = vmatpush3.msra.mxu1 %v1183_v14  ;;  %v1286_v14 = vpop.permute.xlu0 %1285 }
 0x38a   :  { %2188 = vperm.xlu1 %6754, %v2185_v63   ;;  %6140 = vmatprep.subr.mxu1 %v6755_v0 }
 0x38b   :  { %6141 = vmatpush3.msra.mxu1 %v1182_v16 }
 0x38c   :  { %6142 = vmatprep.subr.mxu1 %v6755_v0 }
 0x38d   :  { %6143 = vmatpush3.msra.mxu1 %v1181_v35 }
 0x38e   :  { %2170 = vperm.xlu1 %6754, %v2167_v3   ;;  %6144 = vmatprep.subr.mxu1 %v6755_v0 }
 0x392   :  { %2352 = vperm.xlu1 %6754, %v2349_v6   ;;  %v7195_v6 = vld [vmem:[%s7191_s29 + $0x38] sm:$0xff] }
 0x396   :  { %3099 = vperm.xlu1 %6754, %v3096_v9   ;;  %v7214_v9 = vld [vmem:[%s7191_s29 + $0x20] sm:$0xff] }
 0x39a   :  { %5027 = vperm.xlu1 %6754, %v5019_v12   ;;  %v7229_v12 = vld [vmem:[%s7191_s29 + $0x8] sm:$0xff] }
 0x39e   :  { %5041 = vperm.xlu1 %6754, %v5033_v15  }
 0x3f1   :  { %v1074_v44 = vpop.permute.xlu1 %1073 }
 0x3f2   :  { %v1082_v49 = vmul.f32 %v5331_v45, %v1074_v44  ;;  %v7332_v44 = vld [vmem:[%s7191_s29 + $0x88] sm:$0xff]  ;;  %v7337_v45 = vld [vmem:[%s7191_s29 + $0x80] sm:$0xff] }
 0x3f5   :  { %v1087_v53 = vpop.permute.xlu1 %1086 }
 0x3f6   :  { %v1089_v55 = vadd.f32 %v1087_v53, %v1082_v49 }
 0x3f9   :  { %v1275_v1 = vpop.permute.xlu1 %1274 }
 0x415   :  { %v891_v17 = vpop.f32.mrf.mxu1 }
 0x416   :  { %v7121_v18 = vadd.f32 %v891_v17, %v7022_v37  ;;  %v1180_v37 = vld [vmem:[%s7088_s7 + $0x18] sm:$0xff]  ;;  %v1365_v17 = vpop.permute.xlu1 %1364  ;;  %s5254_s7 = sld [smem:[%s7996_s0 + %s6794_s4]]  }
 0x417   :  { %v6044_v19 = vpop.f32.mrf.mxu1  ;;  %6145 = vmatpush3.msra.mxu1 %v1180_v37  ;;  %v1378_v37 = vld [vmem:[%s7291_s5] sm:$0xff] }
 0x418   :  { %6146 = vmatprep.subr.mxu1 %v6755_v0 }
 0x419   :  { %6147 = vmatpush3.msra.mxu1 %v1179_v39  ;;  %v7305_v39 = vld [vmem:[%s7191_s29 + $0xb0] sm:$0xff] }
 0x41a   :  { %6148 = vmatprep.subr.mxu1 %v6755_v0 }
 0x41b   :  { %6149 = vmatpush3.msra.mxu1 %v1178_v41  ;;  %v7317_v41 = vld [vmem:[%s7191_s29 + $0xa0] sm:$0xff] }
 0x41c   :  { %6150 = vmatprep.subr.mxu1 %v6755_v0 }
 0x41d   :  { %6151 = vmatpush3.msra.mxu1 %v1177_v43  ;;  %v7327_v43 = vld [vmem:[%s7191_s29 + $0x90] sm:$0xff] }
 0x41e   :  { %6198 = vmatprep.subr.mxu1 %v6755_v0 }
 0x435   :  { %v981_v21 = vpop.f32.mrf.mxu1 }
 0x436   :  { %6081 = vmatpush3.msra.mxu0 %v981_v21 }
 0x437   :  { %v6079_v23 = vpop.f32.mrf.mxu1  ;;  %6083 = vmatmul.mubr.msk.f32.vlgmr.msra.gmra.mxu0 %vm423_vm4, %v5313_v20  ;;  %6085 = vmatprep.subr.mxu0 %v6755_v0  ;;  %v1372_v20 = vpop.permute.xlu0 %1371 }
 0x438   :  { %6086 = vmatpush3.msra.mxu0 %v1106_v22  ;;  %6117 = vmatprep.mubr.msk.f32.mxu0 %vm6756_vm0, %v6755_v0  ;;  %v7239_v23 = vld [vmem:[%s7191_s29 + $0x78] sm:$0xff] }
 0x439   :  { %6087 = vmatprep.subr.mxu0 %v6755_v0 }
 0x43a   :  { %6088 = vmatpush3.msra.mxu0 %v1105_v24 }
 0x43b   :  { %6089 = vmatprep.subr.mxu0 %v6755_v0 }
 0x43c   :  { %6090 = vmatpush3.msra.mxu0 %v1104_v25  ;;  %v7246_v25 = vld [vmem:[%s7191_s29 + $0x70] sm:$0xff] }
 0x43d   :  { %6091 = vmatprep.subr.mxu0 %v6755_v0 }
 0x43e   :  { %6092 = vmatpush3.msra.mxu0 %v1103_v26  ;;  %v7253_v26 = vld [vmem:[%s7191_s29 + $0x68] sm:$0xff] }
 0x43f   :  { %6093 = vmatprep.subr.mxu0 %v6755_v0 }
 0x440   :  { %6094 = vmatpush3.msra.mxu0 %v1102_v27  ;;  %v7258_v27 = vld [vmem:[%s7191_s29 + $0x60] sm:$0xff] }
 0x441   :  { %6095 = vmatprep.subr.mxu0 %v6755_v0 }
 0x442   :  { %6096 = vmatpush3.msra.mxu0 %v1101_v28  ;;  %v7263_v28 = vld [vmem:[%s7191_s29 + $0x58] sm:$0xff] }
 0x443   :  { %6097 = vmatprep.subr.mxu0 %v6755_v0 }
 0x444   :  { %6098 = vmatpush3.msra.mxu0 %v1100_v29  ;;  %v7268_v29 = vld [vmem:[%s7191_s29 + $0x50] sm:$0xff] }
 0x445   :  { %6099 = vmatprep.subr.mxu0 %v6755_v0 }
 0x446   :  { %6100 = vmatpush3.msra.mxu0 %v1099_v30  ;;  %v7273_v30 = vld [vmem:[%s7191_s29 + $0x48] sm:$0xff] }
 0x447   :  { %6101 = vmatprep.subr.mxu0 %v6755_v0 }
 0x448   :  { %6102 = vmatpush3.msra.mxu0 %v1098_v31  ;;  %v7278_v31 = vld [vmem:[%s7191_s29 + $0x40] sm:$0xff] }
 0x449   :  { %6103 = vmatprep.subr.mxu0 %v6755_v0 }
 0x44a   :  { %6104 = vmatpush3.msra.mxu0 %v1097_v32 }
 0x44b   :  { %6105 = vmatprep.subr.mxu0 %v6755_v0 }
 0x44c   :  { %6106 = vmatpush3.msra.mxu0 %v1096_v33 }
 0x44d   :  { %6107 = vmatprep.subr.mxu0 %v6755_v0 }
 0x44e   :  { %6108 = vmatpush3.msra.mxu0 %v1095_v34  ;;  %v5334_v34 = vld [vmem:[%s7291_s5 + $0x8] sm:$0xff] }
 0x44f   :  { %6109 = vmatprep.subr.mxu0 %v6755_v0 }
 0x450   :  { %6110 = vmatpush3.msra.mxu0 %v1094_v36 }
 0x451   :  { %6111 = vmatprep.subr.mxu0 %v6755_v0 }
 0x452   :  { %6112 = vmatpush3.msra.mxu0 %v1093_v38  ;;  %v7301_v38 = vld [vmem:[%s7191_s29 + $0xb8] sm:$0xff] }
 0x453   :  { %6113 = vmatprep.subr.mxu0 %v6755_v0 }
 0x454   :  { %6114 = vmatpush3.msra.mxu0 %v1092_v40  ;;  %v7312_v40 = vld [vmem:[%s7191_s29 + $0xa8] sm:$0xff] }
 0x455   :  { %6115 = vmatprep.subr.mxu0 %v6755_v0 }
 0x456   :  { %6116 = vmatpush3.msra.mxu0 %v1091_v42  ;;  %v7322_v42 = vld [vmem:[%s7191_s29 + $0x98] sm:$0xff] }
 0x457   :  { %6155 = vmatprep.subr.mxu0 %v6755_v0 }
 0x4f7   :  { %v1054_v46 = vpop.f32.mrf.mxu0 }
 0x4f8   :  { %v1058_v47 = vadd.f32 %v1054_v46, %v7121_v18 }
 0x4f9   :  { %v6084_v50 = vpop.f32.mrf.mxu0 }
 0x4fa   :  { %v1065_v51 = vadd.f32 %v1063_v48, %v1058_v47 }
 0x4fc   :  { %vm1066_vm5 = vcmp.ge.f32.partialorder %v1065_v51, 0.0  ;;  %v1067_v54 = vmul.f32 0.01, %v1065_v51 }
 0x4fe   :  { %v1068_v56 = vsel %vm1066_vm5, %v1065_v51, %v1067_v54  ;;  %v5346_v51 = vld [vmem:[%s7291_s5 + $0x10] sm:$0xff]  ;;  %v7349_v54 = vld [vmem:[%s7191_s29 + $0xf8] sm:$0xff] }
 0x4ff   :  { %v1090_v57 = vadd.f32 %v1089_v55, %v1068_v56  ;;  %v7354_v56 = vld [vmem:[%s7191_s29 + $0xf0] sm:$0xff] }
 0x501   :  { %6118 = vmatmul.mubr.f32.vlgmr.msra.gmra.mxu0 %v1090_v57  ;;  %6153 = vmatmul.mubr.f32.vlgmr.msra.gmra.mxu1 %v1090_v57  ;;  %v7361_v57 = vld [vmem:[%s7191_s29 + $0xe8] sm:$0xff] }
 0x502   :  { %6157 = vmatprep.mubr.msk.f32.mxu0 %vm6756_vm0, %v6755_v0  ;;  %6200 = vmatprep.mubr.msk.f32.mxu1 %vm6756_vm0, %v6755_v0 }
 0x5c1   :  { %v1173_v58 = vpop.f32.mrf.mxu0  ;;  %v1259_v52 = vpop.f32.mrf.mxu1 }
 0x5c2   :  { %v7186_v60 = vmax.f32 %v1173_v58, %v1259_v52  ;;  %v7366_v58 = vld [vmem:[%s7191_s29 + $0xe0] sm:$0xff]  ;;  %v7371_v52 = vld [vmem:[%s7191_s29 + $0xd8] sm:$0xff] }
 0x5c3   :  { %v6119_v61 = vpop.f32.mrf.mxu0  ;;  %v6154_v62 = vpop.f32.mrf.mxu1 }
 0x5c4   :  { %v1270_v63 = vmul.f32 %v1268_v59, %v7186_v60  ;;  %v7376_v59 = vld [vmem:[%s7191_s29 + $0xd0] sm:$0xff]  ;;  %v7381_v61 = vld [vmem:[%s7191_s29 + $0xc8] sm:$0xff]  ;;  %v7386_v62 = vld [vmem:[%s7191_s29 + $0xc0] sm:$0xff] }
 0x5c6   :  { %v1277_v2 = vadd.f32 %v1275_v1, %v1270_v63 }
 0x5c8   :  { %vm1278_vm6 = vcmp.ge.f32.partialorder %v1277_v2, 0.0  ;;  %v1279_v3 = vmul.f32 0.01, %v1277_v2 }
 0x5ca   :  { %v1280_v5 = vsel %vm1278_vm6, %v1277_v2, %v1279_v3  ;;  %v5357_v3 = vld [vmem:[%s7291_s5 + $0x18] sm:$0xff] }
 0x5cb   :  { %6156 = vmatpush3.msra.mxu0 %v1280_v5  ;;  %v7398_v5 = vld [vmem:[%s7191_s29 + $0x138] sm:$0xff] }
 0x5cc   :  { %6158 = vmatmul.mubr.msk.f32.vlgmr.msra.gmra.mxu0 %vm423_vm4, %v1281_v4  ;;  %6160 = vmatprep.subr.mxu0 %v6755_v0 }
 0x5cd   :  { %6161 = vmatpush3.msra.mxu0 %v7195_v6  ;;  %6176 = vmatprep.mubr.msk.f32.mxu0 %vm6756_vm0, %v6755_v0 }
 0x5ce   :  { %6162 = vmatprep.subr.mxu0 %v6755_v0 }
 0x5cf   :  { %6163 = vmatpush3.msra.mxu0 %v7200_v7 }
 0x5d0   :  { %6164 = vmatprep.subr.mxu0 %v6755_v0 }
 0x5d1   :  { %6165 = vmatpush3.msra.mxu0 %v7207_v8 }
 0x5d2   :  { %6166 = vmatprep.subr.mxu0 %v6755_v0 }
 0x5d3   :  { %6167 = vmatpush3.msra.mxu0 %v7214_v9 }
 0x5d4   :  { %6168 = vmatprep.subr.mxu0 %v6755_v0 }
 0x5d5   :  { %6169 = vmatpush3.msra.mxu0 %v7219_v10 }
 0x5d6   :  { %6170 = vmatprep.subr.mxu0 %v6755_v0 }
 0x5d7   :  { %6171 = vmatpush3.msra.mxu0 %v7224_v11 }
 0x5d8   :  { %6172 = vmatprep.subr.mxu0 %v6755_v0 }
 0x5d9   :  { %6173 = vmatpush3.msra.mxu0 %v7229_v12 }
 0x5da   :  { %6174 = vmatprep.subr.mxu0 %v6755_v0 }
 0x5db   :  { %6175 = vmatpush3.msra.mxu0 %v7234_v13 }
 0x5dc   :  { %6179 = vmatprep.subr.mxu0 %v6755_v0 }
 0x68c   :  { %v1357_v15 = vpop.f32.mrf.mxu0 }
 0x68d   :  { %v1358_v16 = vadd.f32 %v1357_v15, %v1286_v14  ;;  %v7403_v15 = vld [vmem:[%s7191_s29 + $0x130] sm:$0xff] }
 0x68e   :  { %v6159_v18 = vpop.f32.mrf.mxu0 }
 0x68f   :  { %v1367_v19 = vmul.f32 %v1365_v17, %v1358_v16  ;;  %v7410_v16 = vld [vmem:[%s7191_s29 + $0x128] sm:$0xff]  ;;  %v7415_v17 = vld [vmem:[%s7191_s29 + $0x120] sm:$0xff]  ;;  %v7420_v18 = vld [vmem:[%s7191_s29 + $0x118] sm:$0xff] }
 0x691   :  { %v1374_v21 = vadd.f32 %v1372_v20, %v1367_v19  ;;  %v7425_v19 = vld [vmem:[%s7191_s29 + $0x110] sm:$0xff]  ;;  %v7430_v20 = vld [vmem:[%s7191_s29 + $0x108] sm:$0xff] }
 0x693   :  { %v1376_v22 = vmul.f32 0.01, %v1374_v21  ;;  %vm1375_vm7 = vcmp.ge.f32.partialorder %v1374_v21, 0.0 }
 0x695   :  { %v7241_v24 = vsel %vm1375_vm7, %v1374_v21, %v1376_v22  ;;  %v7435_v21 = vld [vmem:[%s7191_s29 + $0x100] sm:$0xff] }
 0x696   :  { %6177 = vmatmul.mubr.msk.f32.vlgmr.msra.gmra.mxu0 %vm1387_vm8, %v7241_v24 }
 0x697   :  { %6180 = vmatpush3.msra.mxu0 %v7239_v23  ;;  %6195 = vmatprep.mubr.msk.f32.mxu0 %vm6756_vm0, %v6755_v0 }
 0x698   :  { %6181 = vmatprep.subr.mxu0 %v6755_v0 }
 0x699   :  { %6182 = vmatpush3.msra.mxu0 %v7246_v25 }
 0x69a   :  { %6183 = vmatprep.subr.mxu0 %v6755_v0 }
 0x69b   :  { %6184 = vmatpush3.msra.mxu0 %v7253_v26 }
 0x69c   :  { %6185 = vmatprep.subr.mxu0 %v6755_v0 }
 0x69d   :  { %6186 = vmatpush3.msra.mxu0 %v7258_v27 }
 0x69e   :  { %6187 = vmatprep.subr.mxu0 %v6755_v0 }
 0x69f   :  { %6188 = vmatpush3.msra.mxu0 %v7263_v28 }
 0x6a0   :  { %6189 = vmatprep.subr.mxu0 %v6755_v0 }
 0x6a1   :  { %6190 = vmatpush3.msra.mxu0 %v7268_v29 }
 0x6a2   :  { %6191 = vmatprep.subr.mxu0 %v6755_v0 }
 0x6a3   :  { %6192 = vmatpush3.msra.mxu0 %v7273_v30 }
 0x6a4   :  { %6193 = vmatprep.subr.mxu0 %v6755_v0 }
 0x6a5   :  { %6194 = vmatpush3.msra.mxu0 %v7278_v31 }
 0x6a6   :  { %6196 = vmatmul.mubr.msk.f32.vlgmr.msra.gmra.mxu0 %vm1387_vm8, %v7241_v24  ;;  %6227 = vmatprep.subr.mxu0 %v6755_v0 }
 0x6a7   :  { %6229 = vmatprep.mubr.msk.f32.mxu0 %vm6756_vm0, %v6755_v0 }
 0x756   :  { %v1457_v32 = vpop.f32.mrf.mxu0 }
 0x758   :  { %v6178_v33 = vpop.f32.mrf.mxu0 }
 0x766   :  { %v1538_v35 = vpop.f32.mrf.mxu0 }
 0x767   :  { %6199 = vmatpush3.msra.mxu1 %v1538_v35 }
 0x768   :  { %v6197_v36 = vpop.f32.mrf.mxu0  ;;  %6201 = vmatmul.mubr.msk.f32.vlgmr.msra.gmra.mxu1 %vm423_vm4, %v5334_v34  ;;  %6203 = vmatprep.subr.mxu1 %v6755_v0 }
 0x769   :  { %6204 = vmatpush3.msra.mxu1 %v1457_v32  ;;  %6205 = vmatprep.mubr.msk.f32.mxu1 %vm6756_vm0, %v6755_v0 }
 0x76a   :  { %6208 = vmatprep.subr.mxu1 %v6755_v0 }
 0x76c   :  { %6206 = vmatmul.mubr.msk.f32.vlgmr.msra.gmra.mxu1 %vm423_vm4, %v1378_v37 }
 0x76d   :  { %6209 = vmatpush3.msra.mxu1 %v7301_v38  ;;  %6224 = vmatprep.mubr.msk.f32.mxu1 %vm6756_vm0, %v6755_v0 }
 0x76e   :  { %6210 = vmatprep.subr.mxu1 %v6755_v0 }
 0x76f   :  { %6211 = vmatpush3.msra.mxu1 %v7305_v39 }
 0x770   :  { %6212 = vmatprep.subr.mxu1 %v6755_v0 }
 0x771   :  { %6213 = vmatpush3.msra.mxu1 %v7312_v40 }
 0x772   :  { %6214 = vmatprep.subr.mxu1 %v6755_v0 }
 0x773   :  { %6215 = vmatpush3.msra.mxu1 %v7317_v41 }
 0x774   :  { %6216 = vmatprep.subr.mxu1 %v6755_v0 }
 0x775   :  { %6217 = vmatpush3.msra.mxu1 %v7322_v42 }
 0x776   :  { %6218 = vmatprep.subr.mxu1 %v6755_v0 }
 0x777   :  { %6219 = vmatpush3.msra.mxu1 %v7327_v43 }
 0x778   :  { %6220 = vmatprep.subr.mxu1 %v6755_v0 }
 0x779   :  { %6221 = vmatpush3.msra.mxu1 %v7332_v44 }
 0x77a   :  { %6222 = vmatprep.subr.mxu1 %v6755_v0 }
 0x77b   :  { %6223 = vmatpush3.msra.mxu1 %v7337_v45 }
 0x77c   :  { %6225 = vmatmul.mubr.msk.f32.vlgmr.msra.gmra.mxu1 %vm1387_vm8, %v7241_v24  ;;  %6251 = vmatprep.subr.mxu1 %v6755_v0 }
 0x77d   :  { %6253 = vmatprep.mubr.msk.f32.mxu1 %vm6756_vm0, %v6755_v0 }
 0x828   :  { %v1611_v46 = vpop.f32.mrf.mxu1 }
 0x82a   :  { %v6202_v47 = vpop.f32.mrf.mxu1 }
 0x82c   :  { %v1684_v48 = vpop.f32.mrf.mxu1 }
 0x82d   :  { %v1685_v49 = vadd.f32 %v1684_v48, %v1611_v46 }
 0x82e   :  { %v6207_v50 = vpop.f32.mrf.mxu1 }
 0x83c   :  { %v1765_v53 = vpop.f32.mrf.mxu1 }
 0x83d   :  { %6228 = vmatpush3.msra.mxu0 %v1765_v53 }
 0x83e   :  { %v6226_v55 = vpop.f32.mrf.mxu1  ;;  %6230 = vmatmul.mubr.msk.f32.vlgmr.msra.gmra.mxu0 %vm423_vm4, %v5346_v51  ;;  %6232 = vmatprep.subr.mxu0 %v6755_v0  ;;  %v2195_v51 = vld [vmem:[%s5241_s9] sm:$0xff] }
 0x83f   :  { %6233 = vmatpush3.msra.mxu0 %v7349_v54  ;;  %6248 = vmatprep.mubr.msk.f32.mxu0 %vm6756_vm0, %v6755_v0 }
 0x840   :  { %6234 = vmatprep.subr.mxu0 %v6755_v0 }
 0x841   :  { %6235 = vmatpush3.msra.mxu0 %v7354_v56 }
 0x842   :  { %6236 = vmatprep.subr.mxu0 %v6755_v0 }
 0x843   :  { %6237 = vmatpush3.msra.mxu0 %v7361_v57 }
 0x844   :  { %6238 = vmatprep.subr.mxu0 %v6755_v0 }
 0x845   :  { %6239 = vmatpush3.msra.mxu0 %v7366_v58 }
 0x846   :  { %6240 = vmatprep.subr.mxu0 %v6755_v0 }
 0x847   :  { %6241 = vmatpush3.msra.mxu0 %v7371_v52 }
 0x848   :  { %6242 = vmatprep.subr.mxu0 %v6755_v0 }
 0x849   :  { %6243 = vmatpush3.msra.mxu0 %v7376_v59 }
 0x84a   :  { %6244 = vmatprep.subr.mxu0 %v6755_v0 }
 0x84b   :  { %6245 = vmatpush3.msra.mxu0 %v7381_v61 }
 0x84c   :  { %6246 = vmatprep.subr.mxu0 %v6755_v0 }
 0x84d   :  { %6247 = vmatpush3.msra.mxu0 %v7386_v62 }
 0x84e   :  { %6249 = vmatmul.mubr.msk.f32.vlgmr.msra.gmra.mxu0 %vm1387_vm8, %v7241_v24  ;;  %6275 = vmatprep.subr.mxu0 %v6755_v0 }
 0x84f   :  { %6277 = vmatprep.mubr.msk.f32.mxu0 %vm6756_vm0, %v6755_v0 }
 0x8fe   :  { %v1838_v63 = vpop.f32.mrf.mxu0 }
 0x8ff   :  { %v1842_v1 = vadd.f32 %v1838_v63, %v1685_v49  ;;  %v2177_v63 = vld [vmem:[%s5238_s12] sm:$0xff] }
 0x900   :  { %v6231_v2 = vpop.f32.mrf.mxu0 }
 0x90e   :  { %v1920_v4 = vpop.f32.mrf.mxu0 }
 0x90f   :  { %6252 = vmatpush3.msra.mxu1 %v1920_v4 }
 0x910   :  { %v6250_v14 = vpop.f32.mrf.mxu0  ;;  %6254 = vmatmul.mubr.msk.f32.vlgmr.msra.gmra.mxu1 %vm423_vm4, %v5357_v3  ;;  %6256 = vmatprep.subr.mxu1 %v6755_v0 }
 0x911   :  { %6257 = vmatpush3.msra.mxu1 %v7398_v5  ;;  %6272 = vmatprep.mubr.msk.f32.mxu1 %vm6756_vm0, %v6755_v0 }
 0x912   :  { %6258 = vmatprep.subr.mxu1 %v6755_v0 }
 0x913   :  { %6259 = vmatpush3.msra.mxu1 %v7403_v15 }
 0x914   :  { %6260 = vmatprep.subr.mxu1 %v6755_v0 }
 0x915   :  { %6261 = vmatpush3.msra.mxu1 %v7410_v16 }
 0x916   :  { %6262 = vmatprep.subr.mxu1 %v6755_v0 }
 0x917   :  { %6263 = vmatpush3.msra.mxu1 %v7415_v17 }
 0x918   :  { %6264 = vmatprep.subr.mxu1 %v6755_v0 }
 0x919   :  { %6265 = vmatpush3.msra.mxu1 %v7420_v18 }
 0x91a   :  { %6266 = vmatprep.subr.mxu1 %v6755_v0 }
 0x91b   :  { %6267 = vmatpush3.msra.mxu1 %v7425_v19 }
 0x91c   :  { %6268 = vmatprep.subr.mxu1 %v6755_v0 }
 0x91d   :  { %6269 = vmatpush3.msra.mxu1 %v7430_v20 }
 0x91e   :  { %6270 = vmatprep.subr.mxu1 %v6755_v0 }
 0x91f   :  { %6271 = vmatpush3.msra.mxu1 %v7435_v21 }
 0x920   :  { %6273 = vmatmul.mubr.msk.f32.vlgmr.msra.gmra.mxu1 %vm1387_vm8, %v7241_v24  ;;  %6309 = vmatprep.subr.mxu1 %v6755_v0 }
 0x921   :  { %6310 = vmatpush3.msra.mxu1 %v7239_v23  ;;  %6325 = vmatprep.mubr.msk.f32.mxu1 %vm6756_vm0, %v6755_v0 }
 0x922   :  { %6311 = vmatprep.subr.mxu1 %v6755_v0 }
 0x923   :  { %6312 = vmatpush3.msra.mxu1 %v7246_v25  ;;  %v5368_v25 = vld [vmem:[%s7291_s5 + $0x20] sm:$0xff] }
 0x924   :  { %6313 = vmatprep.subr.mxu1 %v6755_v0 }
 0x925   :  { %6314 = vmatpush3.msra.mxu1 %v7253_v26 }
 0x926   :  { %6315 = vmatprep.subr.mxu1 %v6755_v0 }
 0x927   :  { %6316 = vmatpush3.msra.mxu1 %v7258_v27 }
 0x928   :  { %6317 = vmatprep.subr.mxu1 %v6755_v0 }
 0x929   :  { %6318 = vmatpush3.msra.mxu1 %v7263_v28  ;;  %v2157_v28 = vpop.permute.xlu1 %2156 }
 0x92a   :  { %6319 = vmatprep.subr.mxu1 %v6755_v0 }
 0x92b   :  { %6320 = vmatpush3.msra.mxu1 %v7268_v29  ;;  %v2182_v29 = vpop.permute.xlu0 %2181 }
 0x92c   :  { %6321 = vmatprep.subr.mxu1 %v6755_v0 }
 0x92d   :  { %6322 = vmatpush3.msra.mxu1 %v7273_v30  ;;  %v2189_v30 = vpop.permute.xlu1 %2188 }
 0x92e   :  { %6323 = vmatprep.subr.mxu1 %v6755_v0 }
 0x92f   :  { %6324 = vmatpush3.msra.mxu1 %v7278_v31  ;;  %v2164_v31 = vpop.permute.xlu0 %2163 }
 0x930   :  { %6333 = vmatprep.subr.mxu1 %v6755_v0  ;;  %v2166_v34 = vmul.f32 %v2164_v31, %v7186_v60 }
 0x931   :  { %v2171_v37 = vpop.permute.xlu1 %2170 }
 0x932   :  { %v2173_v47 = vadd.f32 %v2171_v37, %v2166_v34  ;;  %v3186_v34 = vld [vmem:[%s7666_s21] sm:$0xff] }
 0x933   :  { %v3111_v37 = vld [vmem:[%s7674_s26] sm:$0xff] }
 0x934   :  { %v2175_v50 = vmul.f32 0.01, %v2173_v47  ;;  %vm2174_vm10 = vcmp.ge.f32.partialorder %v2173_v47, 0.0 }
 0x935   :  { %v2353_v3 = vpop.permute.xlu1 %2352 }
 0x936   :  { %v2176_v55 = vsel %vm2174_vm10, %v2173_v47, %v2175_v50 }
 0x9d0   :  { %v1993_v22 = vpop.f32.mrf.mxu1 }
 0x9d1   :  { %v1997_v23 = vadd.f32 %v1993_v22, %v1842_v1 }
 0x9d2   :  { %v6255_v24 = vpop.f32.mrf.mxu1 }
 0x9e0   :  { %v2075_v26 = vpop.f32.mrf.mxu1 }
 0x9e1   :  { %6276 = vmatpush3.msra.mxu0 %v2075_v26 }
 0x9e2   :  { %v6274_v27 = vpop.f32.mrf.mxu1  ;;  %6278 = vmatmul.mubr.msk.f32.vlgmr.msra.gmra.mxu0 %vm423_vm4, %v5368_v25  ;;  %6280 = vmatprep.subr.mxu0 %v6755_v0  ;;  %v2366_v25 = vld [vmem:[%s7513_s15] sm:$0xff] }
 0x9e3   :  { %6282 = vmatprep.mubr.msk.f32.mxu0 %vm6756_vm0, %v6755_v0 }
 0xaa2   :  { %v2148_v32 = vpop.f32.mrf.mxu0 }
 0xaa3   :  { %v2152_v33 = vadd.f32 %v2148_v32, %v1997_v23 }
 0xaa4   :  { %v6279_v35 = vpop.f32.mrf.mxu0 }
 0xaa5   :  { %v7470_v36 = vadd.f32 %v2157_v28, %v2152_v33  ;;  %v3187_v35 = vld [vmem:[%s7666_s21 + $0x8] sm:$0xff] }
 0xaa7   :  { %v2184_v46 = vmul.f32 %v2182_v29, %v7470_v36  ;;  %v5392_v29 = vld [vmem:[%s7513_s15 + $0x20] sm:$0xff] }
 0xaa9   :  { %v2191_v48 = vadd.f32 %v2189_v30, %v2184_v46 }
 0xaab   :  { %vm2192_vm9 = vcmp.ge.f32.partialorder %v2191_v48, 0.0  ;;  %v2193_v49 = vmul.f32 0.01, %v2191_v48 }
 0xaad   :  { %v2194_v53 = vsel %vm2192_vm9, %v2191_v48, %v2193_v49  ;;  %v3112_v49 = vld [vmem:[%s7674_s26 + $0x8] sm:$0xff] }
 0xaae   :  { %6281 = vmatpush3.msra.mxu0 %v2194_v53  ;;  %v3100_v53 = vpop.permute.xlu1 %3099 }
 0xaaf   :  { %6283 = vmatmul.mubr.msk.f32.vlgmr.msra.gmra.mxu0 %vm423_vm4, %v2195_v51  ;;  %6285 = vmatprep.subr.mxu0 %v6755_v0 }
 0xab0   :  { %6286 = vmatpush3.msra.mxu0 %v2176_v55  ;;  %6287 = vmatprep.mubr.msk.f32.mxu0 %vm6756_vm0, %v6755_v0 }
 0xab1   :  { %6290 = vmatprep.subr.mxu0 %v6755_v0 }
 0xab3   :  { %6288 = vmatmul.mubr.msk.f32.vlgmr.msra.gmra.mxu0 %vm423_vm4, %v2177_v63  ;;  %v3423_v63 = vld [vmem:[%s7706_s2] sm:$0xff] }
 0xab4   :  { %6291 = vmatpush3.msra.mxu0 %v7195_v6  ;;  %6306 = vmatprep.mubr.msk.f32.mxu0 %vm6756_vm0, %v6755_v0 }
 0xab5   :  { %6292 = vmatprep.subr.mxu0 %v6755_v0 }
 0xab6   :  { %6293 = vmatpush3.msra.mxu0 %v7200_v7 }
 0xab7   :  { %6294 = vmatprep.subr.mxu0 %v6755_v0 }
 0xab8   :  { %6295 = vmatpush3.msra.mxu0 %v7207_v8  ;;  %v2346_v8 = vpop.permute.xlu0 %2345 }
 0xab9   :  { %6296 = vmatprep.subr.mxu0 %v6755_v0 }
 0xaba   :  { %6297 = vmatpush3.msra.mxu0 %v7214_v9 }
 0xabb   :  { %6298 = vmatprep.subr.mxu0 %v6755_v0 }
 0xabc   :  { %6299 = vmatpush3.msra.mxu0 %v7219_v10 }
 0xabd   :  { %6300 = vmatprep.subr.mxu0 %v6755_v0 }
 0xabe   :  { %6301 = vmatpush3.msra.mxu0 %v7224_v11  ;;  %v2360_v11 = vpop.permute.xlu0 %2359 }
 0xabf   :  { %6302 = vmatprep.subr.mxu0 %v6755_v0 }
 0xac0   :  { %6303 = vmatpush3.msra.mxu0 %v7229_v12 }
 0xac1   :  { %6304 = vmatprep.subr.mxu0 %v6755_v0 }
 0xac2   :  { %6305 = vmatpush3.msra.mxu0 %v7234_v13  ;;  %v5382_v13 = vld [vmem:[%s7513_s15 + $0x8] sm:$0xff] }
 0xac3   :  { %6328 = vmatprep.subr.mxu0 %v6755_v0 }
 0xb6f   :  { %v2265_v6 = vpop.f32.mrf.mxu0 }
 0xb71   :  { %v6284_v7 = vpop.f32.mrf.mxu0 }
 0xb73   :  { %v2338_v9 = vpop.f32.mrf.mxu0 }
 0xb74   :  { %v2339_v1 = vadd.f32 %v2338_v9, %v2265_v6 }
 0xb75   :  { %v6289_v10 = vpop.f32.mrf.mxu0 }
 0xb76   :  { %v2348_v2 = vadd.f32 %v2346_v8, %v2339_v1 }
 0xb78   :  { %v2355_v4 = vmul.f32 %v2353_v3, %v2348_v2  ;;  %v3424_v2 = vld [vmem:[%s7706_s2 + $0x8] sm:$0xff]  ;;  %v7712_v3 = vld [vmem:[%s7584_s17 + $0x78] sm:$0xff] }
 0xb7a   :  { %v2362_v14 = vadd.f32 %v2360_v11, %v2355_v4  ;;  %v7717_v11 = vld [vmem:[%s7584_s17 + $0x70] sm:$0xff] }
 0xb7c   :  { %vm2363_vm11 = vcmp.ge.f32.partialorder %v2362_v14, 0.0  ;;  %v2364_v22 = vmul.f32 0.01, %v2362_v14 }
 0xb7e   :  { %v7500_v12 = vsel %vm2363_vm11, %v2362_v14, %v2364_v22  ;;  %v7724_v14 = vld [vmem:[%s7584_s17 + $0x68] sm:$0xff]  ;;  %v7729_v22 = vld [vmem:[%s7584_s17 + $0x60] sm:$0xff] }
 0xb7f   :  { %6307 = vmatmul.mubr.msk.f32.vlgmr.msra.gmra.mxu0 %vm1387_vm8, %v7500_v12  ;;  %6326 = vmatmul.mubr.msk.f32.vlgmr.msra.gmra.mxu1 %vm1387_vm8, %v7500_v12 }
 0xb80   :  { %6330 = vmatprep.mubr.msk.f32.mxu0 %vm6756_vm0, %v6755_v0  ;;  %6335 = vmatprep.mubr.msk.f32.mxu1 %vm6756_vm0, %v6755_v0 }
 0xc3f   :  { %v2436_v23 = vpop.f32.mrf.mxu0  ;;  %v2508_v24 = vpop.f32.mrf.mxu1 }
 0xc40   :  { %6329 = vmatpush3.msra.mxu0 %v2508_v24  ;;  %6334 = vmatpush3.msra.mxu1 %v2436_v23  ;;  %v7744_v23 = vld [vmem:[%s7584_s17 + $0x48] sm:$0xff]  ;;  %v7749_v24 = vld [vmem:[%s7584_s17 + $0x40] sm:$0xff] }
 0xc41   :  { %v6308_v26 = vpop.f32.mrf.mxu0  ;;  %v6327_v27 = vpop.f32.mrf.mxu1  ;;  %6331 = vmatmul.mubr.msk.f32.vlgmr.msra.gmra.mxu0 %vm423_vm4, %v5382_v13  ;;  %6338 = vmatprep.subr.mxu0 %v6755_v0  ;;  %v7739_v13 = vld [vmem:[%s7584_s17 + $0x50] sm:$0xff] }
 0xc42   :  { %6336 = vmatmul.mubr.msk.f32.vlgmr.msra.gmra.mxu1 %vm423_vm4, %v2366_v25  ;;  %6339 = vmatpush3.msra.mxu0 %v7301_v38  ;;  %v5412_v25 = vld [vmem:[%s7674_s26 + $0x10] sm:$0xff] }
 0xc43   :  { %6340 = vmatprep.subr.mxu0 %v6755_v0  ;;  %6354 = vmatprep.mubr.msk.f32.mxu0 %vm6756_vm0, %v6755_v0 }
 0xc44   :  { %6341 = vmatpush3.msra.mxu0 %v7305_v39  ;;  %6357 = vmatprep.subr.mxu1 %v6755_v0 }
 0xc45   :  { %6342 = vmatprep.subr.mxu0 %v6755_v0  ;;  %6359 = vmatprep.mubr.msk.f32.mxu1 %vm6756_vm0, %v6755_v0 }
 0xc46   :  { %6343 = vmatpush3.msra.mxu0 %v7312_v40 }
 0xc47   :  { %6344 = vmatprep.subr.mxu0 %v6755_v0 }
 0xc48   :  { %6345 = vmatpush3.msra.mxu0 %v7317_v41 }
 0xc49   :  { %6346 = vmatprep.subr.mxu0 %v6755_v0 }
 0xc4a   :  { %6347 = vmatpush3.msra.mxu0 %v7322_v42 }
 0xc4b   :  { %6348 = vmatprep.subr.mxu0 %v6755_v0 }
 0xc4c   :  { %6349 = vmatpush3.msra.mxu0 %v7327_v43  ;;  %v5386_v43 = vld [vmem:[%s7513_s15 + $0x10] sm:$0xff] }
 0xc4d   :  { %6350 = vmatprep.subr.mxu0 %v6755_v0 }
 0xc4e   :  { %6351 = vmatpush3.msra.mxu0 %v7332_v44 }
 0xc4f   :  { %6352 = vmatprep.subr.mxu0 %v6755_v0 }
 0xc50   :  { %6353 = vmatpush3.msra.mxu0 %v7337_v45 }
 0xc51   :  { %6355 = vmatmul.mubr.msk.f32.vlgmr.msra.gmra.mxu0 %vm1387_vm8, %v7500_v12  ;;  %6381 = vmatprep.subr.mxu0 %v6755_v0 }
 0xc52   :  { %6383 = vmatprep.mubr.msk.f32.mxu0 %vm6756_vm0, %v6755_v0 }
 0xd01   :  { %v2581_v38 = vpop.f32.mrf.mxu0 }
 0xd02   :  { %v2654_v39 = vpop.f32.mrf.mxu1 }
 0xd03   :  { %v2655_v40 = vadd.f32 %v2654_v39, %v2581_v38  ;;  %v6332_v41 = vpop.f32.mrf.mxu0 }
 0xd04   :  { %v6337_v42 = vpop.f32.mrf.mxu1 }
 0xd05   :  { %v5413_v42 = vld [vmem:[%s7674_s26 + $0x18] sm:$0xff] }
 0xd11   :  { %v2726_v28 = vpop.f32.mrf.mxu0 }
 0xd12   :  { %6358 = vmatpush3.msra.mxu1 %v2726_v28  ;;  %v5417_v28 = vld [vmem:[%s7666_s21 + $0x10] sm:$0xff] }
 0xd13   :  { %v6356_v44 = vpop.f32.mrf.mxu0  ;;  %6360 = vmatmul.mubr.msk.f32.vlgmr.msra.gmra.mxu1 %vm423_vm4, %v5386_v43  ;;  %6362 = vmatprep.subr.mxu1 %v6755_v0 }
 0xd14   :  { %6363 = vmatpush3.msra.mxu1 %v7349_v54  ;;  %6378 = vmatprep.mubr.msk.f32.mxu1 %vm6756_vm0, %v6755_v0 }
 0xd15   :  { %6364 = vmatprep.subr.mxu1 %v6755_v0 }
 0xd16   :  { %6365 = vmatpush3.msra.mxu1 %v7354_v56 }
 0xd17   :  { %6366 = vmatprep.subr.mxu1 %v6755_v0 }
 0xd18   :  { %6367 = vmatpush3.msra.mxu1 %v7361_v57  ;;  %v5389_v57 = vld [vmem:[%s7513_s15 + $0x18] sm:$0xff] }
 0xd19   :  { %6368 = vmatprep.subr.mxu1 %v6755_v0 }
 0xd1a   :  { %6369 = vmatpush3.msra.mxu1 %v7366_v58 }
 0xd1b   :  { %6370 = vmatprep.subr.mxu1 %v6755_v0 }
 0xd1c   :  { %6371 = vmatpush3.msra.mxu1 %v7371_v52 }
 0xd1d   :  { %6372 = vmatprep.subr.mxu1 %v6755_v0 }
 0xd1e   :  { %6373 = vmatpush3.msra.mxu1 %v7376_v59  ;;  %v7595_v59 = vld [vmem:[%s7584_s17 + $0x38] sm:$0xff] }
 0xd1f   :  { %6374 = vmatprep.subr.mxu1 %v6755_v0 }
 0xd20   :  { %6375 = vmatpush3.msra.mxu1 %v7381_v61  ;;  %v7602_v61 = vld [vmem:[%s7584_s17 + $0x30] sm:$0xff] }
 0xd21   :  { %6376 = vmatprep.subr.mxu1 %v6755_v0 }
 0xd22   :  { %6377 = vmatpush3.msra.mxu1 %v7386_v62  ;;  %v7609_v62 = vld [vmem:[%s7584_s17 + $0x28] sm:$0xff] }
 0xd23   :  { %6379 = vmatmul.mubr.msk.f32.vlgmr.msra.gmra.mxu1 %vm1387_vm8, %v7500_v12  ;;  %6405 = vmatprep.subr.mxu1 %v6755_v0 }
 0xd24   :  { %6407 = vmatprep.mubr.msk.f32.mxu1 %vm6756_vm0, %v6755_v0 }
 0xdd3   :  { %v2799_v45 = vpop.f32.mrf.mxu1 }
 0xdd4   :  { %v2803_v54 = vadd.f32 %v2799_v45, %v2655_v40 }
 0xdd5   :  { %v6361_v56 = vpop.f32.mrf.mxu1 }
 0xde3   :  { %v2872_v58 = vpop.f32.mrf.mxu1 }
 0xde4   :  { %6382 = vmatpush3.msra.mxu0 %v2872_v58  ;;  %v5418_v58 = vld [vmem:[%s7666_s21 + $0x18] sm:$0xff] }
 0xde5   :  { %v6380_v52 = vpop.f32.mrf.mxu1  ;;  %6384 = vmatmul.mubr.msk.f32.vlgmr.msra.gmra.mxu0 %vm423_vm4, %v5389_v57  ;;  %6386 = vmatprep.subr.mxu0 %v6755_v0 }
 0xde6   :  { %6387 = vmatpush3.msra.mxu0 %v7398_v5  ;;  %6402 = vmatprep.mubr.msk.f32.mxu0 %vm6756_vm0, %v6755_v0  ;;  %v7614_v5 = vld [vmem:[%s7584_s17 + $0x20] sm:$0xff] }
 0xde7   :  { %6388 = vmatprep.subr.mxu0 %v6755_v0 }
 0xde8   :  { %6389 = vmatpush3.msra.mxu0 %v7403_v15  ;;  %v7619_v15 = vld [vmem:[%s7584_s17 + $0x18] sm:$0xff] }
 0xde9   :  { %6390 = vmatprep.subr.mxu0 %v6755_v0 }
 0xdea   :  { %6391 = vmatpush3.msra.mxu0 %v7410_v16  ;;  %v7624_v16 = vld [vmem:[%s7584_s17 + $0x10] sm:$0xff] }
 0xdeb   :  { %6392 = vmatprep.subr.mxu0 %v6755_v0 }
 0xdec   :  { %6393 = vmatpush3.msra.mxu0 %v7415_v17  ;;  %v7629_v17 = vld [vmem:[%s7584_s17 + $0x8] sm:$0xff] }
 0xded   :  { %6394 = vmatprep.subr.mxu0 %v6755_v0 }
 0xdee   :  { %6395 = vmatpush3.msra.mxu0 %v7420_v18  ;;  %v7634_v18 = vld [vmem:[%s7584_s17] sm:$0xff] }
 0xdef   :  { %6396 = vmatprep.subr.mxu0 %v6755_v0 }
 0xdf0   :  { %6397 = vmatpush3.msra.mxu0 %v7425_v19 }
 0xdf1   :  { %6398 = vmatprep.subr.mxu0 %v6755_v0 }
 0xdf2   :  { %6399 = vmatpush3.msra.mxu0 %v7430_v20 }
 0xdf3   :  { %6400 = vmatprep.subr.mxu0 %v6755_v0 }
 0xdf4   :  { %6401 = vmatpush3.msra.mxu0 %v7435_v21 }
 0xdf5   :  { %6403 = vmatmul.mubr.msk.f32.vlgmr.msra.gmra.mxu0 %vm1387_vm8, %v7500_v12  ;;  %6429 = vmatprep.subr.mxu0 %v6755_v0  ;;  %v7734_v12 = vld [vmem:[%s7584_s17 + $0x58] sm:$0xff] }
 0xdf6   :  { %6430 = vmatpush3.msra.mxu0 %v7595_v59  ;;  %6445 = vmatprep.mubr.msk.f32.mxu0 %vm6756_vm0, %v6755_v0 }
 0xdf7   :  { %6431 = vmatprep.subr.mxu0 %v6755_v0 }
 0xdf8   :  { %6432 = vmatpush3.msra.mxu0 %v7602_v61 }
 0xdf9   :  { %6433 = vmatprep.subr.mxu0 %v6755_v0 }
 0xdfa   :  { %6434 = vmatpush3.msra.mxu0 %v7609_v62 }
 0xdfb   :  { %6435 = vmatprep.subr.mxu0 %v6755_v0 }
 0xdfc   :  { %6436 = vmatpush3.msra.mxu0 %v7614_v5 }
 0xdfd   :  { %6437 = vmatprep.subr.mxu0 %v6755_v0 }
 0xdfe   :  { %6438 = vmatpush3.msra.mxu0 %v7619_v15 }
 0xdff   :  { %6439 = vmatprep.subr.mxu0 %v6755_v0 }
 0xe00   :  { %6440 = vmatpush3.msra.mxu0 %v7624_v16 }
 0xe01   :  { %6441 = vmatprep.subr.mxu0 %v6755_v0 }
 0xe02   :  { %6442 = vmatpush3.msra.mxu0 %v7629_v17 }
 0xe03   :  { %6443 = vmatprep.subr.mxu0 %v6755_v0 }
 0xe04   :  { %6444 = vmatpush3.msra.mxu0 %v7634_v18 }
 0xe05   :  { %6446 = vmatmul.mubr.msk.f32.vlgmr.msra.gmra.mxu0 %vm1387_vm8, %v7470_v36 }
 0xe06   :  { %6479 = vmatprep.mubr.msk.f32.mxu0 %vm423_vm4, %v3423_v63 }
 0xea5   :  { %v2945_v19 = vpop.f32.mrf.mxu0 }
 0xea6   :  { %v2949_v20 = vadd.f32 %v2945_v19, %v2803_v54 }
 0xea7   :  { %v6385_v21 = vpop.f32.mrf.mxu0 }
 0xea8   :  { %v7820_v21 = vld [vmem:[%s7584_s17 + $0xa8] sm:$0xff] }
 0xeb5   :  { %v3018_v30 = vpop.f32.mrf.mxu0 }
 0xeb6   :  { %6406 = vmatpush3.msra.mxu1 %v3018_v30  ;;  %v7830_v30 = vld [vmem:[%s7584_s17 + $0x98] sm:$0xff] }
 0xeb7   :  { %v6404_v31 = vpop.f32.mrf.mxu0  ;;  %6408 = vmatmul.mubr.msk.f32.vlgmr.msra.gmra.mxu1 %vm423_vm4, %v5392_v29  ;;  %6410 = vmatprep.subr.mxu1 %v6755_v0  ;;  %v7825_v29 = vld [vmem:[%s7584_s17 + $0xa0] sm:$0xff] }
 0xeb8   :  { %6411 = vmatpush3.msra.mxu1 %v7595_v59  ;;  %6426 = vmatprep.mubr.msk.f32.mxu1 %vm6756_vm0, %v6755_v0  ;;  %v7835_v31 = vld [vmem:[%s7584_s17 + $0x90] sm:$0xff] }
 0xeb9   :  { %6412 = vmatprep.subr.mxu1 %v6755_v0 }
 0xeba   :  { %6413 = vmatpush3.msra.mxu1 %v7602_v61 }
 0xebb   :  { %6414 = vmatprep.subr.mxu1 %v6755_v0 }
 0xebc   :  { %6415 = vmatpush3.msra.mxu1 %v7609_v62 }
 0xebd   :  { %6416 = vmatprep.subr.mxu1 %v6755_v0 }
 0xebe   :  { %6417 = vmatpush3.msra.mxu1 %v7614_v5 }
 0xebf   :  { %6418 = vmatprep.subr.mxu1 %v6755_v0 }
 0xec0   :  { %6419 = vmatpush3.msra.mxu1 %v7619_v15 }
 0xec1   :  { %6420 = vmatprep.subr.mxu1 %v6755_v0 }
 0xec2   :  { %6421 = vmatpush3.msra.mxu1 %v7624_v16 }
 0xec3   :  { %6422 = vmatprep.subr.mxu1 %v6755_v0 }
 0xec4   :  { %6423 = vmatpush3.msra.mxu1 %v7629_v17 }
 0xec5   :  { %6424 = vmatprep.subr.mxu1 %v6755_v0  ;;  %v3257_v32 = vpop.f32.mrf.mxu0 }
 0xec6   :  { %6425 = vmatpush3.msra.mxu1 %v7634_v18 }
 0xec7   :  { %6427 = vmatmul.mubr.msk.f32.vlgmr.msra.gmra.mxu1 %vm1387_vm8, %v7186_v60  ;;  %v6447_v33 = vpop.f32.mrf.mxu0  ;;  %6448 = vmatprep.subr.mxu1 %v3257_v32 }
 0xec8   :  { %6449 = vmatpush3.msra.mxu1 %v3257_v32  ;;  %6450 = vmatprep.mubr.msk.f32.mxu1 %vm423_vm4, %v3186_v34  ;;  %v7840_v32 = vld [vmem:[%s7584_s17 + $0x88] sm:$0xff]  ;;  %v5427_v33 = vld [vmem:[%s7584_s17 + $0x80] sm:$0xff] }
 0xec9   :  { %v5435_v34 = vld [vmem:[%s7674_s26 + $0x20] sm:$0xff] }
 0xecb   :  { %6451 = vmatmul.mubr.msk.f32.vlgmr.msra.gmra.mxu1 %vm423_vm4, %v3187_v35 }
 0xecc   :  { %6455 = vmatprep.mubr.msk.f32.mxu1 %vm423_vm4, %v3111_v37 }
 0xf77   :  { %v3091_v46 = vpop.f32.mrf.mxu1 }
 0xf78   :  { %v3095_v51 = vadd.f32 %v3091_v46, %v2949_v20  ;;  %v7813_v20 = vld [vmem:[%s7584_s17 + $0xb0] sm:$0xff] }
 0xf79   :  { %v6409_v47 = vpop.f32.mrf.mxu1 }
 0xf7a   :  { %v7697_v55 = vadd.f32 %v3100_v53, %v3095_v51  ;;  %v5440_v51 = vld [vmem:[%s7666_s21 + $0x20] sm:$0xff] }
 0xf87   :  { %v3182_v48 = vpop.f32.mrf.mxu1 }
 0xf88   :  { %6453 = vmatprep.subr.mxu1 %v3182_v48 }
 0xf89   :  { %v6428_v50 = vpop.f32.mrf.mxu1  ;;  %6454 = vmatpush3.msra.mxu1 %v3182_v48 }
 0xf8a   :  { %6456 = vmatmul.mubr.msk.f32.vlgmr.msra.gmra.mxu1 %vm423_vm4, %v3112_v49  ;;  %6458 = vmatprep.subr.mxu1 %v6755_v0  ;;  %v5436_v49 = vld [vmem:[%s7674_s26 + $0x28] sm:$0xff] }
 0xf8b   :  { %6459 = vmatpush3.msra.mxu1 %v7595_v59  ;;  %6474 = vmatprep.mubr.msk.f32.mxu1 %vm6756_vm0, %v6755_v0  ;;  %v6452_v6 = vpop.f32.mrf.mxu1  ;;  %v5422_v59 = vld [vmem:[%s7706_s2 + $0x10] sm:$0xff] }
 0xf8c   :  { %6460 = vmatprep.subr.mxu1 %v6755_v0 }
 0xf8d   :  { %6461 = vmatpush3.msra.mxu1 %v7602_v61  ;;  %v3333_v7 = vpop.f32.mrf.mxu1 }
 0xf8e   :  { %6462 = vmatprep.subr.mxu1 %v6755_v0 }
 0xf8f   :  { %6463 = vmatpush3.msra.mxu1 %v7609_v62 }
 0xf90   :  { %6464 = vmatprep.subr.mxu1 %v6755_v0 }
 0xf91   :  { %6465 = vmatpush3.msra.mxu1 %v7614_v5 }
 0xf92   :  { %6466 = vmatprep.subr.mxu1 %v6755_v0 }
 0xf93   :  { %6467 = vmatpush3.msra.mxu1 %v7619_v15 }
 0xf94   :  { %6468 = vmatprep.subr.mxu1 %v6755_v0 }
 0xf95   :  { %6469 = vmatpush3.msra.mxu1 %v7624_v16 }
 0xf96   :  { %6470 = vmatprep.subr.mxu1 %v6755_v0 }
 0xf97   :  { %6471 = vmatpush3.msra.mxu1 %v7629_v17  ;;  %v5423_v17 = vld [vmem:[%s7706_s2 + $0x18] sm:$0xff] }
 0xf98   :  { %6472 = vmatprep.subr.mxu1 %v6755_v0 }
 0xf99   :  { %6473 = vmatpush3.msra.mxu1 %v7634_v18  ;;  %v7808_v18 = vld [vmem:[%s7584_s17 + $0xb8] sm:$0xff] }
 0xf9a   :  { %6475 = vmatmul.mubr.msk.f32.vlgmr.msra.gmra.mxu1 %vm1387_vm8, %v7697_v55 }
 0xf9b   :  { %6503 = vmatprep.mubr.msk.f32.mxu1 %vm423_vm4, %v5412_v25  ;;  %v7916_v25 = vld [vmem:[%s7584_s17 + $0xe0] sm:$0xff] }
0x104a   :  { %v6457_v8 = vpop.f32.mrf.mxu1 }
0x104b   :  { %v3420_v26 = vadd.f32 %v6457_v8, %v6452_v6 }
0x104c   :  { %v3414_v9 = vpop.f32.mrf.mxu1 }
0x104d   :  { %v3415_v1 = vadd.f32 %v3414_v9, %v3333_v7  ;;  %v5441_v9 = vld [vmem:[%s7666_s21 + $0x28] sm:$0xff] }
0x105a   :  { %v3494_v10 = vpop.f32.mrf.mxu1 }
0x105b   :  { %6477 = vmatprep.subr.mxu0 %v3494_v10 }
0x105c   :  { %v6476_v4 = vpop.f32.mrf.mxu1  ;;  %6478 = vmatpush3.msra.mxu0 %v3494_v10  ;;  %v5445_v10 = vld [vmem:[%s7706_s2 + $0x20] sm:$0xff] }
0x105d   :  { %6480 = vmatmul.mubr.msk.f32.vlgmr.msra.gmra.mxu0 %vm423_vm4, %v3424_v2  ;;  %6482 = vmatprep.subr.mxu0 %v6755_v0 }
0x105e   :  { %6483 = vmatpush3.msra.mxu0 %v7712_v3  ;;  %6498 = vmatprep.mubr.msk.f32.mxu0 %vm6756_vm0, %v6755_v0 }
0x105f   :  { %6484 = vmatprep.subr.mxu0 %v6755_v0 }
0x1060   :  { %6485 = vmatpush3.msra.mxu0 %v7717_v11 }
0x1061   :  { %6486 = vmatprep.subr.mxu0 %v6755_v0 }
0x1062   :  { %6487 = vmatpush3.msra.mxu0 %v7724_v14 }
0x1063   :  { %6488 = vmatprep.subr.mxu0 %v6755_v0 }
0x1064   :  { %6489 = vmatpush3.msra.mxu0 %v7729_v22 }
0x1065   :  { %6490 = vmatprep.subr.mxu0 %v6755_v0 }
0x1066   :  { %6491 = vmatpush3.msra.mxu0 %v7734_v12 }
0x1067   :  { %6492 = vmatprep.subr.mxu0 %v6755_v0 }
0x1068   :  { %6493 = vmatpush3.msra.mxu0 %v7739_v13 }
0x1069   :  { %6494 = vmatprep.subr.mxu0 %v6755_v0 }
0x106a   :  { %6495 = vmatpush3.msra.mxu0 %v7744_v23 }
0x106b   :  { %6496 = vmatprep.subr.mxu0 %v6755_v0 }
0x106c   :  { %6497 = vmatpush3.msra.mxu0 %v7749_v24 }
0x106d   :  { %6499 = vmatmul.mubr.msk.f32.vlgmr.msra.gmra.mxu0 %vm1387_vm8, %v7186_v60 }
0x106e   :  { %6527 = vmatprep.mubr.msk.f32.mxu0 %vm423_vm4, %v5417_v28 }
0x111d   :  { %v6481_v27 = vpop.f32.mrf.mxu0 }
0x111e   :  { %v3580_v38 = vadd.f32 %v6481_v27, %v3420_v26  ;;  %v7921_v26 = vld [vmem:[%s7584_s17 + $0xd8] sm:$0xff]  ;;  %v7926_v27 = vld [vmem:[%s7584_s17 + $0xd0] sm:$0xff] }
0x111f   :  { %v3570_v39 = vpop.f32.mrf.mxu0 }
0x1120   :  { %v3579_v40 = vadd.f32 %v3570_v39, %v3415_v1  ;;  %v5450_v39 = vld [vmem:[%s7584_s17 + $0xc0] sm:$0xff] }
0x112d   :  { %v3659_v41 = vpop.f32.mrf.mxu0 }
0x112e   :  { %6501 = vmatprep.subr.mxu1 %v3659_v41 }
0x112f   :  { %v6500_v43 = vpop.f32.mrf.mxu0  ;;  %6502 = vmatpush3.msra.mxu1 %v3659_v41 }
0x1130   :  { %6504 = vmatmul.mubr.msk.f32.vlgmr.msra.gmra.mxu1 %vm423_vm4, %v5413_v42  ;;  %6506 = vmatprep.subr.mxu1 %v6755_v0 }
0x1131   :  { %6507 = vmatpush3.msra.mxu1 %v7712_v3  ;;  %6522 = vmatprep.mubr.msk.f32.mxu1 %vm6756_vm0, %v6755_v0 }
0x1132   :  { %6508 = vmatprep.subr.mxu1 %v6755_v0 }
0x1133   :  { %6509 = vmatpush3.msra.mxu1 %v7717_v11 }
0x1134   :  { %6510 = vmatprep.subr.mxu1 %v6755_v0 }
0x1135   :  { %6511 = vmatpush3.msra.mxu1 %v7724_v14 }
0x1136   :  { %6512 = vmatprep.subr.mxu1 %v6755_v0 }
0x1137   :  { %6513 = vmatpush3.msra.mxu1 %v7729_v22 }
0x1138   :  { %6514 = vmatprep.subr.mxu1 %v6755_v0 }
0x1139   :  { %6515 = vmatpush3.msra.mxu1 %v7734_v12 }
0x113a   :  { %6516 = vmatprep.subr.mxu1 %v6755_v0 }
0x113b   :  { %6517 = vmatpush3.msra.mxu1 %v7739_v13 }
0x113c   :  { %6518 = vmatprep.subr.mxu1 %v6755_v0 }
0x113d   :  { %6519 = vmatpush3.msra.mxu1 %v7744_v23 }
0x113e   :  { %6520 = vmatprep.subr.mxu1 %v6755_v0 }
0x113f   :  { %6521 = vmatpush3.msra.mxu1 %v7749_v24 }
0x1140   :  { %6523 = vmatmul.mubr.msk.f32.vlgmr.msra.gmra.mxu1 %vm1387_vm8, %v7470_v36 }
0x1141   :  { %6551 = vmatprep.mubr.msk.f32.mxu1 %vm423_vm4, %v5422_v59 }
0x11f0   :  { %v6505_v44 = vpop.f32.mrf.mxu1 }
0x11f1   :  { %v3745_v45 = vadd.f32 %v6505_v44, %v3580_v38  ;;  %v7931_v38 = vld [vmem:[%s7584_s17 + $0xc8] sm:$0xff] }
0x11f2   :  { %v3735_v54 = vpop.f32.mrf.mxu1 }
0x11f3   :  { %v3744_v56 = vadd.f32 %v3735_v54, %v3579_v40  ;;  %v5458_v40 = vld [vmem:[%s7674_s26 + $0x30] sm:$0xff] }
0x1200   :  { %v3815_v57 = vpop.f32.mrf.mxu1 }
0x1201   :  { %6525 = vmatprep.subr.mxu0 %v3815_v57 }
0x1202   :  { %v6524_v52 = vpop.f32.mrf.mxu1  ;;  %6526 = vmatpush3.msra.mxu0 %v3815_v57 }
0x1203   :  { %6528 = vmatmul.mubr.msk.f32.vlgmr.msra.gmra.mxu0 %vm423_vm4, %v5418_v58  ;;  %6530 = vmatprep.subr.mxu0 %v6755_v0 }
0x1204   :  { %6531 = vmatpush3.msra.mxu0 %v7712_v3  ;;  %6546 = vmatprep.mubr.msk.f32.mxu0 %vm6756_vm0, %v6755_v0 }
0x1205   :  { %6532 = vmatprep.subr.mxu0 %v6755_v0 }
0x1206   :  { %6533 = vmatpush3.msra.mxu0 %v7717_v11 }
0x1207   :  { %6534 = vmatprep.subr.mxu0 %v6755_v0 }
0x1208   :  { %6535 = vmatpush3.msra.mxu0 %v7724_v14 }
0x1209   :  { %6536 = vmatprep.subr.mxu0 %v6755_v0 }
0x120a   :  { %6537 = vmatpush3.msra.mxu0 %v7729_v22  ;;  %v5446_v22 = vld [vmem:[%s7706_s2 + $0x28] sm:$0xff] }
0x120b   :  { %6538 = vmatprep.subr.mxu0 %v6755_v0 }
0x120c   :  { %6539 = vmatpush3.msra.mxu0 %v7734_v12  ;;  %v7899_v12 = vld [vmem:[%s7584_s17 + $0xf8] sm:$0xff] }
0x120d   :  { %6540 = vmatprep.subr.mxu0 %v6755_v0 }
0x120e   :  { %6541 = vmatpush3.msra.mxu0 %v7739_v13 }
0x120f   :  { %6542 = vmatprep.subr.mxu0 %v6755_v0 }
0x1210   :  { %6543 = vmatpush3.msra.mxu0 %v7744_v23  ;;  %v7904_v23 = vld [vmem:[%s7584_s17 + $0xf0] sm:$0xff] }
0x1211   :  { %6544 = vmatprep.subr.mxu0 %v6755_v0 }
0x1212   :  { %6545 = vmatpush3.msra.mxu0 %v7749_v24  ;;  %v7911_v24 = vld [vmem:[%s7584_s17 + $0xe8] sm:$0xff] }
0x1213   :  { %6547 = vmatmul.mubr.msk.f32.vlgmr.msra.gmra.mxu0 %vm1387_vm8, %v7697_v55 }
0x1214   :  { %6575 = vmatprep.mubr.msk.f32.mxu0 %vm423_vm4, %v5435_v34 }
0x12c3   :  { %v6529_v61 = vpop.f32.mrf.mxu0 }
0x12c4   :  { %v3901_v62 = vadd.f32 %v6529_v61, %v3745_v45  ;;  %v5459_v45 = vld [vmem:[%s7674_s26 + $0x38] sm:$0xff] }
0x12c5   :  { %v3891_v5 = vpop.f32.mrf.mxu0  ;;  %v5464_v61 = vld [vmem:[%s7666_s21 + $0x38] sm:$0xff] }
0x12c6   :  { %v3900_v15 = vadd.f32 %v3891_v5, %v3744_v56 }
0x12d3   :  { %v3971_v16 = vpop.f32.mrf.mxu0 }
0x12d4   :  { %6549 = vmatprep.subr.mxu1 %v3971_v16 }
0x12d5   :  { %v6548_v19 = vpop.f32.mrf.mxu0  ;;  %6550 = vmatpush3.msra.mxu1 %v3971_v16 }
0x12d6   :  { %6552 = vmatmul.mubr.msk.f32.vlgmr.msra.gmra.mxu1 %vm423_vm4, %v5423_v17  ;;  %6554 = vmatprep.subr.mxu1 %v6755_v0  ;;  %v5469_v19 = vld [vmem:[%s7706_s2 + $0x38] sm:$0xff] }
0x12d7   :  { %6555 = vmatpush3.msra.mxu1 %v7808_v18  ;;  %6570 = vmatprep.mubr.msk.f32.mxu1 %vm6756_vm0, %v6755_v0 }
0x12d8   :  { %6556 = vmatprep.subr.mxu1 %v6755_v0 }
0x12d9   :  { %6557 = vmatpush3.msra.mxu1 %v7813_v20 }
0x12da   :  { %6558 = vmatprep.subr.mxu1 %v6755_v0 }
0x12db   :  { %6559 = vmatpush3.msra.mxu1 %v7820_v21 }
0x12dc   :  { %6560 = vmatprep.subr.mxu1 %v6755_v0 }
0x12dd   :  { %6561 = vmatpush3.msra.mxu1 %v7825_v29 }
0x12de   :  { %6562 = vmatprep.subr.mxu1 %v6755_v0 }
0x12df   :  { %6563 = vmatpush3.msra.mxu1 %v7830_v30 }
0x12e0   :  { %6564 = vmatprep.subr.mxu1 %v6755_v0 }
0x12e1   :  { %6565 = vmatpush3.msra.mxu1 %v7835_v31 }
0x12e2   :  { %6566 = vmatprep.subr.mxu1 %v6755_v0 }
0x12e3   :  { %6567 = vmatpush3.msra.mxu1 %v7840_v32 }
0x12e4   :  { %6568 = vmatprep.subr.mxu1 %v6755_v0 }
0x12e5   :  { %6569 = vmatpush3.msra.mxu1 %v5427_v33 }
0x12e6   :  { %6571 = vmatmul.mubr.msk.f32.vlgmr.msra.gmra.mxu1 %vm1387_vm8, %v7186_v60 }
0x12e7   :  { %6599 = vmatprep.mubr.msk.f32.mxu1 %vm423_vm4, %v5440_v51 }
0x1396   :  { %v6553_v35 = vpop.f32.mrf.mxu1 }
0x1397   :  { %v4057_v37 = vadd.f32 %v6553_v35, %v3901_v62 }
0x1398   :  { %v4047_v46 = vpop.f32.mrf.mxu1 }
0x1399   :  { %v4056_v47 = vadd.f32 %v4047_v46, %v3900_v15 }
0x13a6   :  { %v4136_v48 = vpop.f32.mrf.mxu1 }
0x13a7   :  { %6573 = vmatprep.subr.mxu0 %v4136_v48 }
0x13a8   :  { %v6572_v50 = vpop.f32.mrf.mxu1  ;;  %6574 = vmatpush3.msra.mxu0 %v4136_v48 }
0x13a9   :  { %6576 = vmatmul.mubr.msk.f32.vlgmr.msra.gmra.mxu0 %vm423_vm4, %v5436_v49  ;;  %6578 = vmatprep.subr.mxu0 %v6755_v0 }
0x13aa   :  { %6579 = vmatpush3.msra.mxu0 %v7808_v18  ;;  %6594 = vmatprep.mubr.msk.f32.mxu0 %vm6756_vm0, %v6755_v0 }
0x13ab   :  { %6580 = vmatprep.subr.mxu0 %v6755_v0 }
0x13ac   :  { %6581 = vmatpush3.msra.mxu0 %v7813_v20 }
0x13ad   :  { %6582 = vmatprep.subr.mxu0 %v6755_v0 }
0x13ae   :  { %6583 = vmatpush3.msra.mxu0 %v7820_v21 }
0x13af   :  { %6584 = vmatprep.subr.mxu0 %v6755_v0 }
0x13b0   :  { %6585 = vmatpush3.msra.mxu0 %v7825_v29 }
0x13b1   :  { %6586 = vmatprep.subr.mxu0 %v6755_v0 }
0x13b2   :  { %6587 = vmatpush3.msra.mxu0 %v7830_v30 }
0x13b3   :  { %6588 = vmatprep.subr.mxu0 %v6755_v0 }
0x13b4   :  { %6589 = vmatpush3.msra.mxu0 %v7835_v31 }
0x13b5   :  { %6590 = vmatprep.subr.mxu0 %v6755_v0 }
0x13b6   :  { %6591 = vmatpush3.msra.mxu0 %v7840_v32 }
0x13b7   :  { %6592 = vmatprep.subr.mxu0 %v6755_v0 }
0x13b8   :  { %6593 = vmatpush3.msra.mxu0 %v5427_v33 }
0x13b9   :  { %6595 = vmatmul.mubr.msk.f32.vlgmr.msra.gmra.mxu0 %vm1387_vm8, %v7470_v36 }
0x13ba   :  { %6623 = vmatprep.mubr.msk.f32.mxu0 %vm423_vm4, %v5445_v10 }
0x1469   :  { %v6577_v53 = vpop.f32.mrf.mxu0 }
0x146a   :  { %v4222_v63 = vadd.f32 %v6577_v53, %v4057_v37  ;;  %v5028_v37 = vpop.permute.xlu1 %5027 }
0x146b   :  { %v4212_v6 = vpop.f32.mrf.mxu0 }
0x146c   :  { %v4221_v7 = vadd.f32 %v4212_v6, %v4056_v47 }
0x146e   :  { %v5042_v53 = vpop.permute.xlu1 %5041 }
0x1479   :  { %v4292_v8 = vpop.f32.mrf.mxu0 }
0x147a   :  { %6597 = vmatprep.subr.mxu1 %v4292_v8 }
0x147b   :  { %v6596_v1 = vpop.f32.mrf.mxu0  ;;  %6598 = vmatpush3.msra.mxu1 %v4292_v8 }
0x147c   :  { %6600 = vmatmul.mubr.msk.f32.vlgmr.msra.gmra.mxu1 %vm423_vm4, %v5441_v9  ;;  %6602 = vmatprep.subr.mxu1 %v6755_v0 }
0x147d   :  { %6603 = vmatpush3.msra.mxu1 %v7808_v18  ;;  %6618 = vmatprep.mubr.msk.f32.mxu1 %vm6756_vm0, %v6755_v0 }
0x147e   :  { %6604 = vmatprep.subr.mxu1 %v6755_v0 }
0x147f   :  { %6605 = vmatpush3.msra.mxu1 %v7813_v20 }
0x1480   :  { %6606 = vmatprep.subr.mxu1 %v6755_v0 }
0x1481   :  { %6607 = vmatpush3.msra.mxu1 %v7820_v21  ;;  %v5046_v21 = vld [vmem:[%s5254_s7] sm:$0xff] }
0x1482   :  { %6608 = vmatprep.subr.mxu1 %v6755_v0 }
0x1483   :  { %6609 = vmatpush3.msra.mxu1 %v7825_v29  ;;  %v5475_v29 = vld [vmem:[%s5254_s7 + $0x10] sm:$0xff] }
0x1484   :  { %6610 = vmatprep.subr.mxu1 %v6755_v0 }
0x1485   :  { %6611 = vmatpush3.msra.mxu1 %v7830_v30 }
0x1486   :  { %6612 = vmatprep.subr.mxu1 %v6755_v0 }
0x1487   :  { %6613 = vmatpush3.msra.mxu1 %v7835_v31 }
0x1488   :  { %6614 = vmatprep.subr.mxu1 %v6755_v0 }
0x1489   :  { %6615 = vmatpush3.msra.mxu1 %v7840_v32 }
0x148a   :  { %6616 = vmatprep.subr.mxu1 %v6755_v0 }
0x148b   :  { %6617 = vmatpush3.msra.mxu1 %v5427_v33  ;;  %v5023_v33 = vpop.permute.xlu0 %5022 }
0x148c   :  { %6619 = vmatmul.mubr.msk.f32.vlgmr.msra.gmra.mxu1 %vm1387_vm8, %v7697_v55 }
0x148d   :  { %6647 = vmatprep.mubr.msk.f32.mxu1 %vm423_vm4, %v5458_v40 }
0x148f   :  { %v5037_v51 = vpop.permute.xlu0 %5036 }
0x153c   :  { %v6601_v2 = vpop.f32.mrf.mxu1 }
0x153d   :  { %v4378_v3 = vadd.f32 %v6601_v2, %v4222_v63 }
0x153e   :  { %v4368_v4 = vpop.f32.mrf.mxu1 }
0x153f   :  { %v4377_v11 = vadd.f32 %v4368_v4, %v4221_v7 }
0x154c   :  { %v4448_v14 = vpop.f32.mrf.mxu1 }
0x154d   :  { %6621 = vmatprep.subr.mxu0 %v4448_v14 }
0x154e   :  { %v6620_v13 = vpop.f32.mrf.mxu1  ;;  %6622 = vmatpush3.msra.mxu0 %v4448_v14 }
0x154f   :  { %6624 = vmatmul.mubr.msk.f32.vlgmr.msra.gmra.mxu0 %vm423_vm4, %v5446_v22  ;;  %6626 = vmatprep.subr.mxu0 %v6755_v0 }
0x1550   :  { %6627 = vmatpush3.msra.mxu0 %v7899_v12  ;;  %6642 = vmatprep.mubr.msk.f32.mxu0 %vm6756_vm0, %v6755_v0 }
0x1551   :  { %6628 = vmatprep.subr.mxu0 %v6755_v0 }
0x1552   :  { %6629 = vmatpush3.msra.mxu0 %v7904_v23 }
0x1553   :  { %6630 = vmatprep.subr.mxu0 %v6755_v0 }
0x1554   :  { %6631 = vmatpush3.msra.mxu0 %v7911_v24 }
0x1555   :  { %6632 = vmatprep.subr.mxu0 %v6755_v0 }
0x1556   :  { %6633 = vmatpush3.msra.mxu0 %v7916_v25 }
0x1557   :  { %6634 = vmatprep.subr.mxu0 %v6755_v0 }
0x1558   :  { %6635 = vmatpush3.msra.mxu0 %v7921_v26 }
0x1559   :  { %6636 = vmatprep.subr.mxu0 %v6755_v0 }
0x155a   :  { %6637 = vmatpush3.msra.mxu0 %v7926_v27 }
0x155b   :  { %6638 = vmatprep.subr.mxu0 %v6755_v0 }
0x155c   :  { %6639 = vmatpush3.msra.mxu0 %v7931_v38 }
0x155d   :  { %6640 = vmatprep.subr.mxu0 %v6755_v0 }
0x155e   :  { %6641 = vmatpush3.msra.mxu0 %v5450_v39 }
0x155f   :  { %6643 = vmatmul.mubr.msk.f32.vlgmr.msra.gmra.mxu0 %vm1387_vm8, %v7186_v60  ;;  %v5463_v60 = vld [vmem:[%s7666_s21 + $0x30] sm:$0xff] }
0x1560   :  { %6671 = vmatprep.mubr.msk.f32.mxu0 %vm423_vm4, %v5463_v60 }
0x160f   :  { %v6625_v41 = vpop.f32.mrf.mxu0 }
0x1610   :  { %v4534_v42 = vadd.f32 %v6625_v41, %v4378_v3 }
0x1611   :  { %v4524_v43 = vpop.f32.mrf.mxu0 }
0x1612   :  { %v4533_v28 = vadd.f32 %v4524_v43, %v4377_v11 }
0x161f   :  { %v4613_v44 = vpop.f32.mrf.mxu0 }
0x1620   :  { %6645 = vmatprep.subr.mxu1 %v4613_v44 }
0x1621   :  { %v6644_v54 = vpop.f32.mrf.mxu0  ;;  %6646 = vmatpush3.msra.mxu1 %v4613_v44 }
0x1622   :  { %6648 = vmatmul.mubr.msk.f32.vlgmr.msra.gmra.mxu1 %vm423_vm4, %v5459_v45  ;;  %6650 = vmatprep.subr.mxu1 %v6755_v0 }
0x1623   :  { %6651 = vmatpush3.msra.mxu1 %v7899_v12  ;;  %6666 = vmatprep.mubr.msk.f32.mxu1 %vm6756_vm0, %v6755_v0 }
0x1624   :  { %6652 = vmatprep.subr.mxu1 %v6755_v0 }
0x1625   :  { %6653 = vmatpush3.msra.mxu1 %v7904_v23 }
0x1626   :  { %6654 = vmatprep.subr.mxu1 %v6755_v0 }
0x1627   :  { %6655 = vmatpush3.msra.mxu1 %v7911_v24 }
0x1628   :  { %6656 = vmatprep.subr.mxu1 %v6755_v0 }
0x1629   :  { %6657 = vmatpush3.msra.mxu1 %v7916_v25 }
0x162a   :  { %6658 = vmatprep.subr.mxu1 %v6755_v0 }
0x162b   :  { %6659 = vmatpush3.msra.mxu1 %v7921_v26 }
0x162c   :  { %6660 = vmatprep.subr.mxu1 %v6755_v0 }
0x162d   :  { %6661 = vmatpush3.msra.mxu1 %v7926_v27 }
0x162e   :  { %6662 = vmatprep.subr.mxu1 %v6755_v0 }
0x162f   :  { %6663 = vmatpush3.msra.mxu1 %v7931_v38 }
0x1630   :  { %6664 = vmatprep.subr.mxu1 %v6755_v0 }
0x1631   :  { %6665 = vmatpush3.msra.mxu1 %v5450_v39 }
0x1632   :  { %6667 = vmatmul.mubr.msk.f32.vlgmr.msra.gmra.mxu1 %vm1387_vm8, %v7470_v36  ;;  %v5468_v36 = vld [vmem:[%s7706_s2 + $0x30] sm:$0xff] }
0x1633   :  { %6695 = vmatprep.mubr.msk.f32.mxu1 %vm423_vm4, %v5468_v36 }
0x16e2   :  { %v6649_v56 = vpop.f32.mrf.mxu1 }
0x16e3   :  { %v4699_v57 = vadd.f32 %v6649_v56, %v4534_v42 }
0x16e4   :  { %v4689_v58 = vpop.f32.mrf.mxu1 }
0x16e5   :  { %v4698_v52 = vadd.f32 %v4689_v58, %v4533_v28 }
0x16f2   :  { %v4769_v59 = vpop.f32.mrf.mxu1 }
0x16f3   :  { %6669 = vmatprep.subr.mxu0 %v4769_v59 }
0x16f4   :  { %v6668_v62 = vpop.f32.mrf.mxu1  ;;  %6670 = vmatpush3.msra.mxu0 %v4769_v59 }
0x16f5   :  { %6672 = vmatmul.mubr.msk.f32.vlgmr.msra.gmra.mxu0 %vm423_vm4, %v5464_v61  ;;  %6674 = vmatprep.subr.mxu0 %v6755_v0 }
0x16f6   :  { %6675 = vmatpush3.msra.mxu0 %v7899_v12  ;;  %6690 = vmatprep.mubr.msk.f32.mxu0 %vm6756_vm0, %v6755_v0 }
0x16f7   :  { %6676 = vmatprep.subr.mxu0 %v6755_v0 }
0x16f8   :  { %6677 = vmatpush3.msra.mxu0 %v7904_v23 }
0x16f9   :  { %6678 = vmatprep.subr.mxu0 %v6755_v0 }
0x16fa   :  { %6679 = vmatpush3.msra.mxu0 %v7911_v24 }
0x16fb   :  { %6680 = vmatprep.subr.mxu0 %v6755_v0 }
0x16fc   :  { %6681 = vmatpush3.msra.mxu0 %v7916_v25 }
0x16fd   :  { %6682 = vmatprep.subr.mxu0 %v6755_v0 }
0x16fe   :  { %6683 = vmatpush3.msra.mxu0 %v7921_v26 }
0x16ff   :  { %6684 = vmatprep.subr.mxu0 %v6755_v0 }
0x1700   :  { %6685 = vmatpush3.msra.mxu0 %v7926_v27 }
0x1701   :  { %6686 = vmatprep.subr.mxu0 %v6755_v0 }
0x1702   :  { %6687 = vmatpush3.msra.mxu0 %v7931_v38 }
0x1703   :  { %6688 = vmatprep.subr.mxu0 %v6755_v0  ;;  %v5047_v0 = vld [vmem:[%s5254_s7 + $0x8] sm:$0xff] }
0x1704   :  { %6689 = vmatpush3.msra.mxu0 %v5450_v39 }
0x1705   :  { %6691 = vmatmul.mubr.msk.f32.vlgmr.msra.gmra.mxu0 %vm1387_vm8, %v7697_v55  ;;  %v5476_v55 = vld [vmem:[%s5254_s7 + $0x18] sm:$0xff] }
0x1706   :  { %6705 = vmatprep.subr.mxu0 %v5476_v55 }
0x1707   :  { %6706 = vmatpush3.msra.mxu0 %v5476_v55 }
0x1708   :  { %6707 = vmatprep.subr.mxu0 %v5475_v29 }
0x1709   :  { %6708 = vmatpush3.msra.mxu0 %v5475_v29 }
0x17b5   :  { %v6673_v5 = vpop.f32.mrf.mxu0 }
0x17b6   :  { %v4855_v15 = vadd.f32 %v6673_v5, %v4699_v57 }
0x17b7   :  { %v4845_v16 = vpop.f32.mrf.mxu0 }
0x17b8   :  { %v4854_v17 = vadd.f32 %v4845_v16, %v4698_v52 }
0x17c5   :  { %v4925_v18 = vpop.f32.mrf.mxu0 }
0x17c6   :  { %6693 = vmatprep.subr.mxu1 %v4925_v18 }
0x17c7   :  { %v6692_v20 = vpop.f32.mrf.mxu0  ;;  %6694 = vmatpush3.msra.mxu1 %v4925_v18 }
0x17c8   :  { %6696 = vmatmul.mubr.msk.f32.vlgmr.msra.gmra.mxu1 %vm423_vm4, %v5469_v19  ;;  %6698 = vmatprep.subr.mxu1 %v5047_v0 }
0x17c9   :  { %6699 = vmatpush3.msra.mxu1 %v5047_v0 }
0x17ca   :  { %6700 = vmatprep.subr.mxu1 %v5046_v21 }
0x17cb   :  { %6701 = vmatpush3.msra.mxu1 %v5046_v21 }
0x1888   :  { %v6697_v30 = vpop.f32.mrf.mxu1 }
0x1889   :  { %v5011_v31 = vadd.f32 %v6697_v30, %v4855_v15 }
0x188a   :  { %v5001_v32 = vpop.f32.mrf.mxu1 }
0x188b   :  { %vm5013_vm12 = vcmp.ge.f32.partialorder %v5011_v31, 0.0  ;;  %v5015_v34 = vmul.f32 0.01, %v5011_v31  ;;  %v5010_v35 = vadd.f32 %v5001_v32, %v4854_v17 }
0x188d   :  { %v5017_v46 = vsel %vm5013_vm12, %v5011_v31, %v5015_v34  ;;  %vm5012_vm13 = vcmp.ge.f32.partialorder %v5010_v35, 0.0  ;;  %v5014_v47 = vmul.f32 0.01, %v5010_v35 }
0x188e   :  { %v5031_v48 = vmul.f32 %v5028_v37, %v5017_v46 }
0x188f   :  { %v5016_v49 = vsel %vm5012_vm13, %v5010_v35, %v5014_v47 }
0x1890   :  { %v5030_v50 = vmul.f32 %v5023_v33, %v5016_v49  ;;  %v5045_v6 = vadd.f32 %v5042_v53, %v5031_v48 }
0x1892   :  { %v5044_v63 = vadd.f32 %v5037_v51, %v5030_v50 }
0x1894   :  { %6702 = vmatprep.mubr.msk.f32.mxu1 %vm5048_vm14, %v5044_v63  ;;  %6709 = vmatprep.mubr.msk.f32.mxu0 %vm5048_vm14, %v5044_v63 }
0x1895   :  { %6703 = vmatmul.mubr.msk.f32.vlgmr.msra.gmra.mxu1 %vm5048_vm14, %v5045_v6  ;;  %6710 = vmatmul.mubr.msk.f32.vlgmr.msra.gmra.mxu0 %vm5048_vm14, %v5045_v6 }
0x1955   :  { %v6704_v7 = vpop.f32.mrf.mxu1  ;;  %v6711_v8 = vpop.f32.mrf.mxu0 }
0x1956   :  { %5132 = vst.msk [vmem:[%s5255_s10 + $0x8] sm:$0xff] %vm5130_vm15, %v6704_v7  ;;  %5480 = vst.msk [vmem:[%s5255_s10 + $0x18] sm:$0xff] %vm5130_vm15, %v6711_v8 }
0x1957   :  { %v5121_v9 = vpop.f32.mrf.mxu1  ;;  %v5202_v1 = vpop.f32.mrf.mxu0 }
0x1958   :  { %5131 = vst.msk [vmem:[%s5255_s10] sm:$0xff] %vm5130_vm15, %v5121_v9  ;;  %5479 = vst.msk [vmem:[%s5255_s10 + $0x10] sm:$0xff] %vm5130_vm15, %v5202_v1 }

</bundles_post_ra>
